<compile_context>
chip_gen: v7x
topology: tpu7x:2x2x1
jax: 0.10.0
libtpu: 0.0.40
codegen_flags: <defaults>
</compile_context>

<pallas_src>
import functools

import jax
import jax.numpy as jnp
from jax import lax
from jax.experimental import pallas as pl
from jax.experimental.pallas import tpu as pltpu


# -----------------------------------------------------------------------------
# Small static helpers
# -----------------------------------------------------------------------------
def _round_up(n, m):
    return ((n + m - 1) // m) * m


def _pick_time_chunk(S, TB, Hp, d_in, *, max_chunk=64, vmem_budget=8 * 2**20):
    """Largest time chunk whose per-chunk VMEM blocks fit a conservative budget
    (keeps the kernel inside the default scoped-VMEM limit on v5e/v6e/v7x)."""
    per_step = TB * (4 * Hp * 4          # gx scratch (f32)
                     + 2 * Hp * 2        # double-buffered y block (bf16)
                     + 2 * d_in * 4)     # double-buffered x block (<= f32)
    tc = max(1, int(vmem_budget // per_step))
    tc = min(tc, max_chunk, S)
    if tc >= 8:
        tc -= tc % 8
    return tc


def _pick_row_tile(N, max_tile=512):
    """Row tile for the head: a divisor of N (avoids an XLA-side pad copy)."""
    if N <= max_tile:
        return N
    for d in range(max_tile - max_tile % 16, 0, -16):
        if N % d == 0:
            return d
    return N


# -----------------------------------------------------------------------------
# Fused LSTM layer kernel: per grid step, one big input-projection matmul into
# VMEM scratch, then the serial recurrence; h/c persist across time chunks.
# -----------------------------------------------------------------------------
def _lstm_fused_kernel(x_ref, w_ih_ref, b_ref, w_hh_ref, y_ref,
                       gx_scr, h_scr, c_scr, *, tb, unroll):
    # x_ref:   (TC*TB, d_in)  input chunk (f32 for layer 0, bf16 afterwards)
    # w_ih_ref:(d_in, 4Hp) bf16   b_ref:(1, 4Hp) f32   w_hh_ref:(Hp, 4Hp) bf16
    # y_ref:   (TC*TB, Hp) bf16 output;  gx_scr: (TC*TB, 4Hp) f32 scratch
    @pl.when(pl.program_id(1) == 0)          # first time chunk of this tile
    def _():
        h_scr[...] = jnp.zeros_like(h_scr)
        c_scr[...] = jnp.zeros_like(c_scr)

    Hp = h_scr.shape[-1]
    n_steps = x_ref.shape[0] // tb

    # Hoisted per-chunk input projection (+ fused bias): ONE large MXU matmul,
    # completely off the serial h-dependence and never round-tripped to HBM.
    gx_scr[...] = (
        jnp.dot(x_ref[...].astype(jnp.bfloat16), w_ih_ref[...],
                preferred_element_type=jnp.float32)
        + b_ref[...])

    w_hh = w_hh_ref[...]                     # hoisted bf16 recurrent weights

    def step(t, carry):
        h, c = carry
        row = pl.multiple_of(t * tb, tb)     # sublane-aligned chunk row
        gates = gx_scr[pl.ds(row, tb), :] + jnp.dot(
            h.astype(jnp.bfloat16), w_hh, preferred_element_type=jnp.float32)
        # Gate slices are lane-aligned (Hp is a multiple of 128).
        i = jax.nn.sigmoid(gates[:, 0 * Hp:1 * Hp])
        f = jax.nn.sigmoid(gates[:, 1 * Hp:2 * Hp])
        g = jnp.tanh(gates[:, 2 * Hp:3 * Hp])
        o = jax.nn.sigmoid(gates[:, 3 * Hp:4 * Hp])
        c = f * c + i * g
        h = o * jnp.tanh(c)
        y_ref[pl.ds(row, tb), :] = h.astype(y_ref.dtype)
        return (h, c)

    # NOTE: 3 sigmoid + 2 tanh per element per step all go through the single
    # EUP slot; if that becomes the binding unit, revisit gate activations.
    h, c = lax.fori_loop(0, n_steps, step, (h_scr[...], c_scr[...]),
                         unroll=unroll)
    h_scr[...] = h                            # persist state to next time chunk
    c_scr[...] = c


def lstm_layer(x, w_ih_t, b, w_hh_t, *, TB, TC):
    """One LSTM layer over batch-tile-major input x: (n_b, S_pad*TB, d_in)."""
    n_b, R, d_in = x.shape
    Hp = w_hh_t.shape[0]
    G = 4 * Hp
    assert R % (TC * TB) == 0, (R, TC, TB)
    n_t = R // (TC * TB)

    kernel = functools.partial(_lstm_fused_kernel, tb=TB, unroll=min(TC, 8))
    # NOTE: weight/bias blocks are loop-invariant; at large H they should be
    # single-buffered (pipeline_mode=pl.Buffered(1)) or column-tiled.  At the
    # sizes used here they are a few hundred KiB, so the default is fine.
    return pl.pallas_call(
        kernel,
        out_shape=jax.ShapeDtypeStruct((n_b, R, Hp), jnp.bfloat16),
        grid=(n_b, n_t),
        in_specs=[
            pl.BlockSpec((None, TC * TB, d_in), lambda bi, ti: (bi, ti, 0)),
            pl.BlockSpec((d_in, G), lambda bi, ti: (0, 0)),
            pl.BlockSpec((1, G), lambda bi, ti: (0, 0)),
            pl.BlockSpec((Hp, G), lambda bi, ti: (0, 0)),
        ],
        out_specs=pl.BlockSpec((None, TC * TB, Hp), lambda bi, ti: (bi, ti, 0)),
        scratch_shapes=[
            pltpu.VMEM((TC * TB, G), jnp.float32),   # per-chunk gate projection
            pltpu.VMEM((TB, Hp), jnp.float32),       # h carry
            pltpu.VMEM((TB, Hp), jnp.float32),       # c carry
        ],
        compiler_params=pltpu.CompilerParams(
            # Time axis must stay "arbitrary" (state carried in scratch);
            # independent batch tiles are "parallel" (megacore-shardable).
            dimension_semantics=("parallel", "arbitrary")),
    )(x, w_ih_t, b, w_hh_t)


# -----------------------------------------------------------------------------
# Regression head: row-tiled fused Linear -> Tanh -> Linear (lane-dense output)
# -----------------------------------------------------------------------------
def _head_kernel(x_ref, w1_ref, b1_ref, w2_ref, b2_ref, o_ref):
    h = jnp.tanh(
        jnp.dot(x_ref[...].astype(jnp.bfloat16), w1_ref[...],
                preferred_element_type=jnp.float32) + b1_ref[...])
    o_ref[...] = (
        jnp.dot(h.astype(jnp.bfloat16), w2_ref[...],
                preferred_element_type=jnp.float32) + b2_ref[...])


def reg_head(x2d, w1_t, b1, w2_t, b2):
    N, Hp = x2d.shape
    Op = w2_t.shape[1]                       # out_dim padded to 128 lanes
    tn = _pick_row_tile(N)
    # TODO(synk): for very large H, additionally tile the (Hp, Hp)/(Hp, Op)
    # weights along columns so no single block exceeds the VMEM budget.
    return pl.pallas_call(
        _head_kernel,
        out_shape=jax.ShapeDtypeStruct((N, Op), jnp.float32),
        grid=(N // tn,),
        in_specs=[
            pl.BlockSpec((tn, Hp), lambda i: (i, 0)),
            pl.BlockSpec(w1_t.shape, lambda i: (0, 0)),
            pl.BlockSpec(b1.shape, lambda i: (0, 0)),
            pl.BlockSpec(w2_t.shape, lambda i: (0, 0)),
            pl.BlockSpec(b2.shape, lambda i: (0, 0)),
        ],
        out_specs=pl.BlockSpec((tn, Op), lambda i: (i, 0)),
        compiler_params=pltpu.CompilerParams(
            dimension_semantics=("parallel",)),
    )(x2d, w1_t, b1, w2_t, b2)


# -----------------------------------------------------------------------------
# Full RegLSTM forward
# -----------------------------------------------------------------------------
def reg_lstm_forward(x, kparams, *, out_dim):
    """x: (S, B, inp_dim) f32 -> (S, B, out_dim) f32."""
    S, B, inp_dim = x.shape
    Hp = kparams["lstm"][0]["w_hh_t"].shape[0]

    # Batch tile: as large as possible up to 128 rows (MXU row streaming),
    # multiple of 16 so bf16 blocks/stores sit on native (16, 128) tiles.
    TB = min(_round_up(B, 16), 128)
    B_pad = _round_up(B, TB)
    n_b = B_pad // TB
    # TODO(synk): on v7x (2 TensorCores) prefer exactly 2 balanced batch tiles
    # for large B (via pltpu.get_tpu_info) so the "parallel" axis shards.

    TC = _pick_time_chunk(S, TB, Hp, max(inp_dim, Hp))
    S_pad = _round_up(S, TC)

    # Pad once and rearrange into batch-tile-major layout (n_b, S_pad*TB, d):
    # every (TC*TB, d) kernel block is then a contiguous lane-dense 2-D slab
    # and inter-layer activations are never repacked.
    y = jnp.pad(x, ((0, S_pad - S), (0, B_pad - B), (0, 0)))
    y = y.reshape(S_pad, n_b, TB, inp_dim).transpose(1, 0, 2, 3)
    y = y.reshape(n_b, S_pad * TB, inp_dim)

    for layer in kparams["lstm"]:
        y = lstm_layer(y, layer["w_ih_t"], layer["b"], layer["w_hh_t"],
                       TB=TB, TC=TC)

    out = reg_head(y.reshape(n_b * S_pad * TB, Hp),
                   kparams["w1_t"], kparams["b1"],
                   kparams["w2_t"], kparams["b2"])
    out = out.reshape(n_b, S_pad, TB, -1).transpose(1, 0, 2, 3)
    out = out.reshape(S_pad, B_pad, -1)
    return out[:S, :B, :out_dim]


# -----------------------------------------------------------------------------
# Parameters: PyTorch-style raw weights + kernel-ready padded/bf16 weights
# -----------------------------------------------------------------------------
def init_raw_params(key, inp_dim, out_dim, mid_dim, mid_layers):
    """PyTorch-style uniform(-k, k) raw parameters (f32, unpadded)."""
    k = 1.0 / (mid_dim ** 0.5)
    raw = {"lstm": []}
    for l in range(mid_layers):
        d_in = inp_dim if l == 0 else mid_dim
        key, k1, k2, k3, k4 = jax.random.split(key, 5)
        raw["lstm"].append({
            "w_ih": jax.random.uniform(k1, (4 * mid_dim, d_in), jnp.float32, -k, k),
            "w_hh": jax.random.uniform(k2, (4 * mid_dim, mid_dim), jnp.float32, -k, k),
            "b_ih": jax.random.uniform(k3, (4 * mid_dim,), jnp.float32, -k, k),
            "b_hh": jax.random.uniform(k4, (4 * mid_dim,), jnp.float32, -k, k),
        })
    key, k1, k2, k3, k4 = jax.random.split(key, 5)
    raw["w1"] = jax.random.uniform(k1, (mid_dim, mid_dim), jnp.float32, -k, k)
    raw["b1"] = jax.random.uniform(k2, (mid_dim,), jnp.float32, -k, k)
    raw["w2"] = jax.random.uniform(k3, (out_dim, mid_dim), jnp.float32, -k, k)
    raw["b2"] = jax.random.uniform(k4, (out_dim,), jnp.float32, -k, k)
    return raw


def _pad_gate_cols(w_t, H, Hp):
    """(rows, 4H) -> (rows, 4Hp): zero-pad each of the 4 gate blocks to Hp."""
    rows = w_t.shape[0]
    w4 = jnp.pad(w_t.reshape(rows, 4, H), ((0, 0), (0, 0), (0, Hp - H)))
    return w4.reshape(rows, 4 * Hp)


def prepare_kernel_params(raw, lane=128):
    """Pad hidden/out dims to 128 lanes, transpose, fold biases, cast to bf16.
    Zero padding keeps padded hidden lanes exactly zero through the LSTM."""
    H = raw["lstm"][0]["w_hh"].shape[1]
    out_dim = raw["w2"].shape[0]
    Hp = _round_up(H, lane)
    Op = _round_up(out_dim, lane)

    layers = []
    for l, lyr in enumerate(raw["lstm"]):
        d_in = lyr["w_ih"].shape[1]
        d_in_p = d_in if l == 0 else Hp       # layers > 0 consume padded hidden
        w_ih_t = _pad_gate_cols(lyr["w_ih"].T, H, Hp)          # (d_in, 4Hp)
        w_ih_t = jnp.pad(w_ih_t, ((0, d_in_p - d_in), (0, 0)))
        w_hh_t = _pad_gate_cols(lyr["w_hh"].T, H, Hp)          # (H, 4Hp)
        w_hh_t = jnp.pad(w_hh_t, ((0, Hp - H), (0, 0)))
        b = _pad_gate_cols((lyr["b_ih"] + lyr["b_hh"])[None, :], H, Hp)
        layers.append({"w_ih_t": w_ih_t.astype(jnp.bfloat16),
                       "w_hh_t": w_hh_t.astype(jnp.bfloat16),
                       "b": b.astype(jnp.float32)})

    w1_t = jnp.pad(raw["w1"].T, ((0, Hp - H), (0, Hp - H)))
    b1 = jnp.pad(raw["b1"][None, :], ((0, 0), (0, Hp - H)))
    w2_t = jnp.pad(raw["w2"].T, ((0, Hp - H), (0, Op - out_dim)))
    b2 = jnp.pad(raw["b2"][None, :], ((0, 0), (0, Op - out_dim)))
    return {"lstm": layers,
            "w1_t": w1_t.astype(jnp.bfloat16), "b1": b1.astype(jnp.float32),
            "w2_t": w2_t.astype(jnp.bfloat16), "b2": b2.astype(jnp.float32)}


# -----------------------------------------------------------------------------
# Pure-JAX reference (matches kernel dtype behavior when match_kernel_dtypes)
# -----------------------------------------------------------------------------
def reference_forward(x, raw, *, match_kernel_dtypes=True):
    H = raw["lstm"][0]["w_hh"].shape[1]

    def mm(a, b):
        if match_kernel_dtypes:               # bf16 x bf16 -> f32, like the MXU
            a = a.astype(jnp.bfloat16)
            b = b.astype(jnp.bfloat16)
        return jnp.dot(a, b, preferred_element_type=jnp.float32)

    y = x
    for lyr in raw["lstm"]:
        B = y.shape[1]
        w_ih_t, w_hh_t = lyr["w_ih"].T, lyr["w_hh"].T
        b = (lyr["b_ih"] + lyr["b_hh"])[None, :]

        def step(carry, x_t, w_ih_t=w_ih_t, w_hh_t=w_hh_t, b=b):
            h, c = carry
            gates = mm(x_t, w_ih_t) + mm(h, w_hh_t) + b
            i = jax.nn.sigmoid(gates[:, 0 * H:1 * H])
            f = jax.nn.sigmoid(gates[:, 1 * H:2 * H])
            g = jnp.tanh(gates[:, 2 * H:3 * H])
            o = jax.nn.sigmoid(gates[:, 3 * H:4 * H])
            c = f * c + i * g
            h = o * jnp.tanh(c)
            return (h, c), h

        init = (jnp.zeros((B, H), jnp.float32), jnp.zeros((B, H), jnp.float32))
        _, y = lax.scan(step, init, y)
        if match_kernel_dtypes:               # kernel stores hidden seq as bf16
            y = y.astype(jnp.bfloat16).astype(jnp.float32)

    S, B, _ = y.shape
    y2 = y.reshape(S * B, H)
    h = jnp.tanh(mm(y2, raw["w1"].T) + raw["b1"][None, :])
    out = mm(h, raw["w2"].T) + raw["b2"][None, :]
    return out.reshape(S, B, -1)


if __name__ == "__main__":
    inp_dim, out_dim, mid_dim, mid_layers = 8, 4, 32, 2
    seq_len, batch = 8, 2

    key = jax.random.PRNGKey(0)
    key, kx = jax.random.split(key)
    x = jax.random.normal(kx, (seq_len, batch, inp_dim), jnp.float32)

    raw = init_raw_params(key, inp_dim, out_dim, mid_dim, mid_layers)
    kparams = prepare_kernel_params(raw)

    fwd = jax.jit(reg_lstm_forward, static_argnames=("out_dim",))
    out = jax.block_until_ready(fwd(x, kparams, out_dim=out_dim))

    assert out.shape == (seq_len, batch, out_dim)
    ref = reference_forward(x, raw, match_kernel_dtypes=True)
    max_err = float(jnp.max(jnp.abs(out - ref)))
    assert jnp.allclose(out, ref, rtol=2e-3, atol=2e-3), max_err

    print("KERNEL_OK")
</pallas_src>

<mosaic_0001>
module attributes {stable_mosaic.version = 11 : i64} {
  func.func @_lstm_fused_kernel(%arg0: i32, %arg1: i32, %arg2: memref<1x128x128xbf16, #tpu.memory_space<vmem>>, %arg3: memref<128x512xbf16, #tpu.memory_space<vmem>>, %arg4: memref<1x512xf32, #tpu.memory_space<vmem>>, %arg5: memref<128x512xbf16, #tpu.memory_space<vmem>>, %arg6: memref<1x128x128xbf16, #tpu.memory_space<vmem>>, %arg7: memref<128x512xf32, #tpu.memory_space<vmem>>, %arg8: memref<16x128xf32, #tpu.memory_space<vmem>>, %arg9: memref<16x128xf32, #tpu.memory_space<vmem>>) attributes {dimension_semantics = [#tpu.dimension_semantics<parallel>, #tpu.dimension_semantics<arbitrary>], iteration_bounds = array<i64: 1, 1>, scalar_prefetch = 0 : i64, scratch_operands = 3 : i64, tpu.core_type = #tpu.core_type<tc>, window_params = [{transform_indices = @transform_0, window_bounds = array<i64: 1, 128, 128>}, {pipeline_mode = #tpu.pipeline_mode<synchronous>, transform_indices = @transform_1, window_bounds = array<i64: 128, 512>}, {pipeline_mode = #tpu.pipeline_mode<synchronous>, transform_indices = @transform_2, window_bounds = array<i64: 1, 512>}, {pipeline_mode = #tpu.pipeline_mode<synchronous>, transform_indices = @transform_3, window_bounds = array<i64: 128, 512>}, {transform_indices = @transform_4, window_bounds = array<i64: 1, 128, 128>}]} {
    %c0_i32 = arith.constant 0 : i32
    %0 = arith.cmpi eq, %arg1, %c0_i32 : i32
    %1 = arith.extui %0 : i1 to i32
    %c0_i32_0 = arith.constant 0 : i32
    %2 = arith.cmpi ne, %1, %c0_i32_0 : i32
    scf.if %2 {
      %cst_83 = arith.constant 0.000000e+00 : f32
      %312 = vector.broadcast %cst_83 : f32 to vector<16x128xf32>
      %c0_84 = arith.constant 0 : index
      %c0_85 = arith.constant 0 : index
      %313 = vector.load %arg8[%c0_84, %c0_85] : memref<16x128xf32, #tpu.memory_space<vmem>>, vector<16x128xf32>
      tpu.vector_store %arg8[%c0_84, %c0_85], %312 {strides = array<i32>} : memref<16x128xf32, #tpu.memory_space<vmem>>, vector<16x128xf32>,
      %cst_86 = arith.constant 0.000000e+00 : f32
      %314 = vector.broadcast %cst_86 : f32 to vector<16x128xf32>
      %c0_87 = arith.constant 0 : index
      %c0_88 = arith.constant 0 : index
      %315 = vector.load %arg9[%c0_87, %c0_88] : memref<16x128xf32, #tpu.memory_space<vmem>>, vector<16x128xf32>
      tpu.vector_store %arg9[%c0_87, %c0_88], %314 {strides = array<i32>} : memref<16x128xf32, #tpu.memory_space<vmem>>, vector<16x128xf32>,
    } else {
    }
    %c0 = arith.constant 0 : index
    %c0_1 = arith.constant 0 : index
    %c0_2 = arith.constant 0 : index
    %3 = vector.load %arg2[%c0, %c0_1, %c0_2] : memref<1x128x128xbf16, #tpu.memory_space<vmem>>, vector<1x128x128xbf16>
    %4 = vector.shape_cast %3 : vector<1x128x128xbf16> to vector<128x128xbf16>
    %c0_3 = arith.constant 0 : index
    %c0_4 = arith.constant 0 : index
    %5 = vector.load %arg3[%c0_3, %c0_4] : memref<128x512xbf16, #tpu.memory_space<vmem>>, vector<128x512xbf16>
    %cst = arith.constant dense<0.000000e+00> : vector<128x512xf32>
    %6 = tpu.matmul %4, %5, %cst {dimension_numbers = #tpu.dot_dimension_numbers<[1], [0], [0], [1], [0, 0, 1, 1], [], []>} : vector<128x128xbf16>, vector<128x512xbf16>, vector<128x512xf32> -> vector<128x512xf32>
    %c0_5 = arith.constant 0 : index
    %c0_6 = arith.constant 0 : index
    %7 = vector.load %arg4[%c0_5, %c0_6] : memref<1x512xf32, #tpu.memory_space<vmem>>, vector<1x512xf32>
    %8 = vector.broadcast %7 : vector<1x512xf32> to vector<128x512xf32>
    %9 = arith.addf %6, %8 : vector<128x512xf32>
    %c0_7 = arith.constant 0 : index
    %c0_8 = arith.constant 0 : index
    %10 = vector.load %arg7[%c0_7, %c0_8] : memref<128x512xf32, #tpu.memory_space<vmem>>, vector<128x512xf32>
    tpu.vector_store %arg7[%c0_7, %c0_8], %9 {strides = array<i32>} : memref<128x512xf32, #tpu.memory_space<vmem>>, vector<128x512xf32>,
    %c0_9 = arith.constant 0 : index
    %c0_10 = arith.constant 0 : index
    %11 = vector.load %arg5[%c0_9, %c0_10] : memref<128x512xbf16, #tpu.memory_space<vmem>>, vector<128x512xbf16>
    %c0_11 = arith.constant 0 : index
    %c0_12 = arith.constant 0 : index
    %12 = vector.load %arg8[%c0_11, %c0_12] : memref<16x128xf32, #tpu.memory_space<vmem>>, vector<16x128xf32>
    %c0_13 = arith.constant 0 : index
    %c0_14 = arith.constant 0 : index
    %13 = vector.load %arg9[%c0_13, %c0_14] : memref<16x128xf32, #tpu.memory_space<vmem>>, vector<16x128xf32>
    %c0_i32_15 = arith.constant 0 : i32
    %c16_i32 = arith.constant 16 : i32
    %14 = arith.muli %c0_i32_15, %c16_i32 : i32
    %15 = tpu.assume_multiple %14, 16 : i32
    %16 = arith.index_cast %15 : i32 to index
    %c0_16 = arith.constant 0 : index
    %17 = vector.load %arg7[%16, %c0_16] : memref<128x512xf32, #tpu.memory_space<vmem>>, vector<16x512xf32>
    %18 = arith.truncf %12 : vector<16x128xf32> to vector<16x128xbf16>
    %cst_17 = arith.constant dense<0.000000e+00> : vector<16x512xf32>
    %19 = tpu.matmul %18, %11, %cst_17 {dimension_numbers = #tpu.dot_dimension_numbers<[1], [0], [0], [1], [0, 0, 1, 1], [], []>} : vector<16x128xbf16>, vector<128x512xbf16>, vector<16x512xf32> -> vector<16x512xf32>
    %20 = arith.addf %17, %19 : vector<16x512xf32>
    %21 = vector.extract_strided_slice %20 {offsets = [0, 0], sizes = [16, 128], strides = [1, 1]} : vector<16x512xf32> to vector<16x128xf32>
    %22 = arith.negf %21 : vector<16x128xf32>
    %23 = math.exp %22 : vector<16x128xf32>
    %cst_18 = arith.constant 1.000000e+00 : f32
    %24 = vector.broadcast %cst_18 : f32 to vector<16x128xf32>
    %25 = arith.addf %24, %23 : vector<16x128xf32>
    %26 = arith.divf %24, %25 : vector<16x128xf32>
    %27 = vector.extract_strided_slice %20 {offsets = [0, 128], sizes = [16, 128], strides = [1, 1]} : vector<16x512xf32> to vector<16x128xf32>
    %28 = arith.negf %27 : vector<16x128xf32>
    %29 = math.exp %28 : vector<16x128xf32>
    %cst_19 = arith.constant 1.000000e+00 : f32
    %30 = vector.broadcast %cst_19 : f32 to vector<16x128xf32>
    %31 = arith.addf %30, %29 : vector<16x128xf32>
    %32 = arith.divf %30, %31 : vector<16x128xf32>
    %33 = vector.extract_strided_slice %20 {offsets = [0, 256], sizes = [16, 128], strides = [1, 1]} : vector<16x512xf32> to vector<16x128xf32>
    %34 = math.tanh %33 : vector<16x128xf32>
    %35 = vector.extract_strided_slice %20 {offsets = [0, 384], sizes = [16, 128], strides = [1, 1]} : vector<16x512xf32> to vector<16x128xf32>
    %36 = arith.negf %35 : vector<16x128xf32>
    %37 = math.exp %36 : vector<16x128xf32>
    %cst_20 = arith.constant 1.000000e+00 : f32
    %38 = vector.broadcast %cst_20 : f32 to vector<16x128xf32>
    %39 = arith.addf %38, %37 : vector<16x128xf32>
    %40 = arith.divf %38, %39 : vector<16x128xf32>
    %41 = arith.mulf %32, %13 : vector<16x128xf32>
    %42 = arith.mulf %26, %34 : vector<16x128xf32>
    %43 = arith.addf %41, %42 : vector<16x128xf32>
    %44 = math.tanh %43 : vector<16x128xf32>
    %45 = arith.mulf %40, %44 : vector<16x128xf32>
    %46 = arith.truncf %45 : vector<16x128xf32> to vector<16x128xbf16>
    %c0_21 = arith.constant 0 : index
    %47 = arith.index_cast %15 : i32 to index
    %c0_22 = arith.constant 0 : index
    %48 = vector.load %arg6[%c0_21, %47, %c0_22] : memref<1x128x128xbf16, #tpu.memory_space<vmem>>, vector<1x16x128xbf16>
    %49 = vector.shape_cast %48 : vector<1x16x128xbf16> to vector<16x128xbf16>
    %50 = vector.shape_cast %46 : vector<16x128xbf16> to vector<1x16x128xbf16>
    tpu.vector_store %arg6[%c0_21, %47, %c0_22], %50 {strides = array<i32>} : memref<1x128x128xbf16, #tpu.memory_space<vmem>>, vector<1x16x128xbf16>,
    %c1_i32 = arith.constant 1 : i32
    %c16_i32_23 = arith.constant 16 : i32
    %51 = arith.muli %c1_i32, %c16_i32_23 : i32
    %52 = tpu.assume_multiple %51, 16 : i32
    %53 = arith.index_cast %52 : i32 to index
    %c0_24 = arith.constant 0 : index
    %54 = vector.load %arg7[%53, %c0_24] : memref<128x512xf32, #tpu.memory_space<vmem>>, vector<16x512xf32>
    %55 = arith.truncf %45 : vector<16x128xf32> to vector<16x128xbf16>
    %cst_25 = arith.constant dense<0.000000e+00> : vector<16x512xf32>
    %56 = tpu.matmul %55, %11, %cst_25 {dimension_numbers = #tpu.dot_dimension_numbers<[1], [0], [0], [1], [0, 0, 1, 1], [], []>} : vector<16x128xbf16>, vector<128x512xbf16>, vector<16x512xf32> -> vector<16x512xf32>
    %57 = arith.addf %54, %56 : vector<16x512xf32>
    %58 = vector.extract_strided_slice %57 {offsets = [0, 0], sizes = [16, 128], strides = [1, 1]} : vector<16x512xf32> to vector<16x128xf32>
    %59 = arith.negf %58 : vector<16x128xf32>
    %60 = math.exp %59 : vector<16x128xf32>
    %cst_26 = arith.constant 1.000000e+00 : f32
    %61 = vector.broadcast %cst_26 : f32 to vector<16x128xf32>
    %62 = arith.addf %61, %60 : vector<16x128xf32>
    %63 = arith.divf %61, %62 : vector<16x128xf32>
    %64 = vector.extract_strided_slice %57 {offsets = [0, 128], sizes = [16, 128], strides = [1, 1]} : vector<16x512xf32> to vector<16x128xf32>
    %65 = arith.negf %64 : vector<16x128xf32>
    %66 = math.exp %65 : vector<16x128xf32>
    %cst_27 = arith.constant 1.000000e+00 : f32
    %67 = vector.broadcast %cst_27 : f32 to vector<16x128xf32>
    %68 = arith.addf %67, %66 : vector<16x128xf32>
    %69 = arith.divf %67, %68 : vector<16x128xf32>
    %70 = vector.extract_strided_slice %57 {offsets = [0, 256], sizes = [16, 128], strides = [1, 1]} : vector<16x512xf32> to vector<16x128xf32>
    %71 = math.tanh %70 : vector<16x128xf32>
    %72 = vector.extract_strided_slice %57 {offsets = [0, 384], sizes = [16, 128], strides = [1, 1]} : vector<16x512xf32> to vector<16x128xf32>
    %73 = arith.negf %72 : vector<16x128xf32>
    %74 = math.exp %73 : vector<16x128xf32>
    %cst_28 = arith.constant 1.000000e+00 : f32
    %75 = vector.broadcast %cst_28 : f32 to vector<16x128xf32>
    %76 = arith.addf %75, %74 : vector<16x128xf32>
    %77 = arith.divf %75, %76 : vector<16x128xf32>
    %78 = arith.mulf %69, %43 : vector<16x128xf32>
    %79 = arith.mulf %63, %71 : vector<16x128xf32>
    %80 = arith.addf %78, %79 : vector<16x128xf32>
    %81 = math.tanh %80 : vector<16x128xf32>
    %82 = arith.mulf %77, %81 : vector<16x128xf32>
    %83 = arith.truncf %82 : vector<16x128xf32> to vector<16x128xbf16>
    %c0_29 = arith.constant 0 : index
    %84 = arith.index_cast %52 : i32 to index
    %c0_30 = arith.constant 0 : index
    %85 = vector.load %arg6[%c0_29, %84, %c0_30] : memref<1x128x128xbf16, #tpu.memory_space<vmem>>, vector<1x16x128xbf16>
    %86 = vector.shape_cast %85 : vector<1x16x128xbf16> to vector<16x128xbf16>
    %87 = vector.shape_cast %83 : vector<16x128xbf16> to vector<1x16x128xbf16>
    tpu.vector_store %arg6[%c0_29, %84, %c0_30], %87 {strides = array<i32>} : memref<1x128x128xbf16, #tpu.memory_space<vmem>>, vector<1x16x128xbf16>,
    %c2_i32 = arith.constant 2 : i32
    %c16_i32_31 = arith.constant 16 : i32
    %88 = arith.muli %c2_i32, %c16_i32_31 : i32
    %89 = tpu.assume_multiple %88, 16 : i32
    %90 = arith.index_cast %89 : i32 to index
    %c0_32 = arith.constant 0 : index
    %91 = vector.load %arg7[%90, %c0_32] : memref<128x512xf32, #tpu.memory_space<vmem>>, vector<16x512xf32>
    %92 = arith.truncf %82 : vector<16x128xf32> to vector<16x128xbf16>
    %cst_33 = arith.constant dense<0.000000e+00> : vector<16x512xf32>
    %93 = tpu.matmul %92, %11, %cst_33 {dimension_numbers = #tpu.dot_dimension_numbers<[1], [0], [0], [1], [0, 0, 1, 1], [], []>} : vector<16x128xbf16>, vector<128x512xbf16>, vector<16x512xf32> -> vector<16x512xf32>
    %94 = arith.addf %91, %93 : vector<16x512xf32>
    %95 = vector.extract_strided_slice %94 {offsets = [0, 0], sizes = [16, 128], strides = [1, 1]} : vector<16x512xf32> to vector<16x128xf32>
    %96 = arith.negf %95 : vector<16x128xf32>
    %97 = math.exp %96 : vector<16x128xf32>
    %cst_34 = arith.constant 1.000000e+00 : f32
    %98 = vector.broadcast %cst_34 : f32 to vector<16x128xf32>
    %99 = arith.addf %98, %97 : vector<16x128xf32>
    %100 = arith.divf %98, %99 : vector<16x128xf32>
    %101 = vector.extract_strided_slice %94 {offsets = [0, 128], sizes = [16, 128], strides = [1, 1]} : vector<16x512xf32> to vector<16x128xf32>
    %102 = arith.negf %101 : vector<16x128xf32>
    %103 = math.exp %102 : vector<16x128xf32>
    %cst_35 = arith.constant 1.000000e+00 : f32
    %104 = vector.broadcast %cst_35 : f32 to vector<16x128xf32>
    %105 = arith.addf %104, %103 : vector<16x128xf32>
    %106 = arith.divf %104, %105 : vector<16x128xf32>
    %107 = vector.extract_strided_slice %94 {offsets = [0, 256], sizes = [16, 128], strides = [1, 1]} : vector<16x512xf32> to vector<16x128xf32>
    %108 = math.tanh %107 : vector<16x128xf32>
    %109 = vector.extract_strided_slice %94 {offsets = [0, 384], sizes = [16, 128], strides = [1, 1]} : vector<16x512xf32> to vector<16x128xf32>
    %110 = arith.negf %109 : vector<16x128xf32>
    %111 = math.exp %110 : vector<16x128xf32>
    %cst_36 = arith.constant 1.000000e+00 : f32
    %112 = vector.broadcast %cst_36 : f32 to vector<16x128xf32>
    %113 = arith.addf %112, %111 : vector<16x128xf32>
    %114 = arith.divf %112, %113 : vector<16x128xf32>
    %115 = arith.mulf %106, %80 : vector<16x128xf32>
    %116 = arith.mulf %100, %108 : vector<16x128xf32>
    %117 = arith.addf %115, %116 : vector<16x128xf32>
    %118 = math.tanh %117 : vector<16x128xf32>
    %119 = arith.mulf %114, %118 : vector<16x128xf32>
    %120 = arith.truncf %119 : vector<16x128xf32> to vector<16x128xbf16>
    %c0_37 = arith.constant 0 : index
    %121 = arith.index_cast %89 : i32 to index
    %c0_38 = arith.constant 0 : index
    %122 = vector.load %arg6[%c0_37, %121, %c0_38] : memref<1x128x128xbf16, #tpu.memory_space<vmem>>, vector<1x16x128xbf16>
    %123 = vector.shape_cast %122 : vector<1x16x128xbf16> to vector<16x128xbf16>
    %124 = vector.shape_cast %120 : vector<16x128xbf16> to vector<1x16x128xbf16>
    tpu.vector_store %arg6[%c0_37, %121, %c0_38], %124 {strides = array<i32>} : memref<1x128x128xbf16, #tpu.memory_space<vmem>>, vector<1x16x128xbf16>,
    %c3_i32 = arith.constant 3 : i32
    %c16_i32_39 = arith.constant 16 : i32
    %125 = arith.muli %c3_i32, %c16_i32_39 : i32
    %126 = tpu.assume_multiple %125, 16 : i32
    %127 = arith.index_cast %126 : i32 to index
    %c0_40 = arith.constant 0 : index
    %128 = vector.load %arg7[%127, %c0_40] : memref<128x512xf32, #tpu.memory_space<vmem>>, vector<16x512xf32>
    %129 = arith.truncf %119 : vector<16x128xf32> to vector<16x128xbf16>
    %cst_41 = arith.constant dense<0.000000e+00> : vector<16x512xf32>
    %130 = tpu.matmul %129, %11, %cst_41 {dimension_numbers = #tpu.dot_dimension_numbers<[1], [0], [0], [1], [0, 0, 1, 1], [], []>} : vector<16x128xbf16>, vector<128x512xbf16>, vector<16x512xf32> -> vector<16x512xf32>
    %131 = arith.addf %128, %130 : vector<16x512xf32>
    %132 = vector.extract_strided_slice %131 {offsets = [0, 0], sizes = [16, 128], strides = [1, 1]} : vector<16x512xf32> to vector<16x128xf32>
    %133 = arith.negf %132 : vector<16x128xf32>
    %134 = math.exp %133 : vector<16x128xf32>
    %cst_42 = arith.constant 1.000000e+00 : f32
    %135 = vector.broadcast %cst_42 : f32 to vector<16x128xf32>
    %136 = arith.addf %135, %134 : vector<16x128xf32>
    %137 = arith.divf %135, %136 : vector<16x128xf32>
    %138 = vector.extract_strided_slice %131 {offsets = [0, 128], sizes = [16, 128], strides = [1, 1]} : vector<16x512xf32> to vector<16x128xf32>
    %139 = arith.negf %138 : vector<16x128xf32>
    %140 = math.exp %139 : vector<16x128xf32>
    %cst_43 = arith.constant 1.000000e+00 : f32
    %141 = vector.broadcast %cst_43 : f32 to vector<16x128xf32>
    %142 = arith.addf %141, %140 : vector<16x128xf32>
    %143 = arith.divf %141, %142 : vector<16x128xf32>
    %144 = vector.extract_strided_slice %131 {offsets = [0, 256], sizes = [16, 128], strides = [1, 1]} : vector<16x512xf32> to vector<16x128xf32>
    %145 = math.tanh %144 : vector<16x128xf32>
    %146 = vector.extract_strided_slice %131 {offsets = [0, 384], sizes = [16, 128], strides = [1, 1]} : vector<16x512xf32> to vector<16x128xf32>
    %147 = arith.negf %146 : vector<16x128xf32>
    %148 = math.exp %147 : vector<16x128xf32>
    %cst_44 = arith.constant 1.000000e+00 : f32
    %149 = vector.broadcast %cst_44 : f32 to vector<16x128xf32>
    %150 = arith.addf %149, %148 : vector<16x128xf32>
    %151 = arith.divf %149, %150 : vector<16x128xf32>
    %152 = arith.mulf %143, %117 : vector<16x128xf32>
    %153 = arith.mulf %137, %145 : vector<16x128xf32>
    %154 = arith.addf %152, %153 : vector<16x128xf32>
    %155 = math.tanh %154 : vector<16x128xf32>
    %156 = arith.mulf %151, %155 : vector<16x128xf32>
    %157 = arith.truncf %156 : vector<16x128xf32> to vector<16x128xbf16>
    %c0_45 = arith.constant 0 : index
    %158 = arith.index_cast %126 : i32 to index
    %c0_46 = arith.constant 0 : index
    %159 = vector.load %arg6[%c0_45, %158, %c0_46] : memref<1x128x128xbf16, #tpu.memory_space<vmem>>, vector<1x16x128xbf16>
    %160 = vector.shape_cast %159 : vector<1x16x128xbf16> to vector<16x128xbf16>
    %161 = vector.shape_cast %157 : vector<16x128xbf16> to vector<1x16x128xbf16>
    tpu.vector_store %arg6[%c0_45, %158, %c0_46], %161 {strides = array<i32>} : memref<1x128x128xbf16, #tpu.memory_space<vmem>>, vector<1x16x128xbf16>,
    %c4_i32 = arith.constant 4 : i32
    %c16_i32_47 = arith.constant 16 : i32
    %162 = arith.muli %c4_i32, %c16_i32_47 : i32
    %163 = tpu.assume_multiple %162, 16 : i32
    %164 = arith.index_cast %163 : i32 to index
    %c0_48 = arith.constant 0 : index
    %165 = vector.load %arg7[%164, %c0_48] : memref<128x512xf32, #tpu.memory_space<vmem>>, vector<16x512xf32>
    %166 = arith.truncf %156 : vector<16x128xf32> to vector<16x128xbf16>
    %cst_49 = arith.constant dense<0.000000e+00> : vector<16x512xf32>
    %167 = tpu.matmul %166, %11, %cst_49 {dimension_numbers = #tpu.dot_dimension_numbers<[1], [0], [0], [1], [0, 0, 1, 1], [], []>} : vector<16x128xbf16>, vector<128x512xbf16>, vector<16x512xf32> -> vector<16x512xf32>
    %168 = arith.addf %165, %167 : vector<16x512xf32>
    %169 = vector.extract_strided_slice %168 {offsets = [0, 0], sizes = [16, 128], strides = [1, 1]} : vector<16x512xf32> to vector<16x128xf32>
    %170 = arith.negf %169 : vector<16x128xf32>
    %171 = math.exp %170 : vector<16x128xf32>
    %cst_50 = arith.constant 1.000000e+00 : f32
    %172 = vector.broadcast %cst_50 : f32 to vector<16x128xf32>
    %173 = arith.addf %172, %171 : vector<16x128xf32>
    %174 = arith.divf %172, %173 : vector<16x128xf32>
    %175 = vector.extract_strided_slice %168 {offsets = [0, 128], sizes = [16, 128], strides = [1, 1]} : vector<16x512xf32> to vector<16x128xf32>
    %176 = arith.negf %175 : vector<16x128xf32>
    %177 = math.exp %176 : vector<16x128xf32>
    %cst_51 = arith.constant 1.000000e+00 : f32
    %178 = vector.broadcast %cst_51 : f32 to vector<16x128xf32>
    %179 = arith.addf %178, %177 : vector<16x128xf32>
    %180 = arith.divf %178, %179 : vector<16x128xf32>
    %181 = vector.extract_strided_slice %168 {offsets = [0, 256], sizes = [16, 128], strides = [1, 1]} : vector<16x512xf32> to vector<16x128xf32>
    %182 = math.tanh %181 : vector<16x128xf32>
    %183 = vector.extract_strided_slice %168 {offsets = [0, 384], sizes = [16, 128], strides = [1, 1]} : vector<16x512xf32> to vector<16x128xf32>
    %184 = arith.negf %183 : vector<16x128xf32>
    %185 = math.exp %184 : vector<16x128xf32>
    %cst_52 = arith.constant 1.000000e+00 : f32
    %186 = vector.broadcast %cst_52 : f32 to vector<16x128xf32>
    %187 = arith.addf %186, %185 : vector<16x128xf32>
    %188 = arith.divf %186, %187 : vector<16x128xf32>
    %189 = arith.mulf %180, %154 : vector<16x128xf32>
    %190 = arith.mulf %174, %182 : vector<16x128xf32>
    %191 = arith.addf %189, %190 : vector<16x128xf32>
    %192 = math.tanh %191 : vector<16x128xf32>
    %193 = arith.mulf %188, %192 : vector<16x128xf32>
    %194 = arith.truncf %193 : vector<16x128xf32> to vector<16x128xbf16>
    %c0_53 = arith.constant 0 : index
    %195 = arith.index_cast %163 : i32 to index
    %c0_54 = arith.constant 0 : index
    %196 = vector.load %arg6[%c0_53, %195, %c0_54] : memref<1x128x128xbf16, #tpu.memory_space<vmem>>, vector<1x16x128xbf16>
    %197 = vector.shape_cast %196 : vector<1x16x128xbf16> to vector<16x128xbf16>
    %198 = vector.shape_cast %194 : vector<16x128xbf16> to vector<1x16x128xbf16>
    tpu.vector_store %arg6[%c0_53, %195, %c0_54], %198 {strides = array<i32>} : memref<1x128x128xbf16, #tpu.memory_space<vmem>>, vector<1x16x128xbf16>,
    %c5_i32 = arith.constant 5 : i32
    %c16_i32_55 = arith.constant 16 : i32
    %199 = arith.muli %c5_i32, %c16_i32_55 : i32
    %200 = tpu.assume_multiple %199, 16 : i32
    %201 = arith.index_cast %200 : i32 to index
    %c0_56 = arith.constant 0 : index
    %202 = vector.load %arg7[%201, %c0_56] : memref<128x512xf32, #tpu.memory_space<vmem>>, vector<16x512xf32>
    %203 = arith.truncf %193 : vector<16x128xf32> to vector<16x128xbf16>
    %cst_57 = arith.constant dense<0.000000e+00> : vector<16x512xf32>
    %204 = tpu.matmul %203, %11, %cst_57 {dimension_numbers = #tpu.dot_dimension_numbers<[1], [0], [0], [1], [0, 0, 1, 1], [], []>} : vector<16x128xbf16>, vector<128x512xbf16>, vector<16x512xf32> -> vector<16x512xf32>
    %205 = arith.addf %202, %204 : vector<16x512xf32>
    %206 = vector.extract_strided_slice %205 {offsets = [0, 0], sizes = [16, 128], strides = [1, 1]} : vector<16x512xf32> to vector<16x128xf32>
    %207 = arith.negf %206 : vector<16x128xf32>
    %208 = math.exp %207 : vector<16x128xf32>
    %cst_58 = arith.constant 1.000000e+00 : f32
    %209 = vector.broadcast %cst_58 : f32 to vector<16x128xf32>
    %210 = arith.addf %209, %208 : vector<16x128xf32>
    %211 = arith.divf %209, %210 : vector<16x128xf32>
    %212 = vector.extract_strided_slice %205 {offsets = [0, 128], sizes = [16, 128], strides = [1, 1]} : vector<16x512xf32> to vector<16x128xf32>
    %213 = arith.negf %212 : vector<16x128xf32>
    %214 = math.exp %213 : vector<16x128xf32>
    %cst_59 = arith.constant 1.000000e+00 : f32
    %215 = vector.broadcast %cst_59 : f32 to vector<16x128xf32>
    %216 = arith.addf %215, %214 : vector<16x128xf32>
    %217 = arith.divf %215, %216 : vector<16x128xf32>
    %218 = vector.extract_strided_slice %205 {offsets = [0, 256], sizes = [16, 128], strides = [1, 1]} : vector<16x512xf32> to vector<16x128xf32>
    %219 = math.tanh %218 : vector<16x128xf32>
    %220 = vector.extract_strided_slice %205 {offsets = [0, 384], sizes = [16, 128], strides = [1, 1]} : vector<16x512xf32> to vector<16x128xf32>
    %221 = arith.negf %220 : vector<16x128xf32>
    %222 = math.exp %221 : vector<16x128xf32>
    %cst_60 = arith.constant 1.000000e+00 : f32
    %223 = vector.broadcast %cst_60 : f32 to vector<16x128xf32>
    %224 = arith.addf %223, %222 : vector<16x128xf32>
    %225 = arith.divf %223, %224 : vector<16x128xf32>
    %226 = arith.mulf %217, %191 : vector<16x128xf32>
    %227 = arith.mulf %211, %219 : vector<16x128xf32>
    %228 = arith.addf %226, %227 : vector<16x128xf32>
    %229 = math.tanh %228 : vector<16x128xf32>
    %230 = arith.mulf %225, %229 : vector<16x128xf32>
    %231 = arith.truncf %230 : vector<16x128xf32> to vector<16x128xbf16>
    %c0_61 = arith.constant 0 : index
    %232 = arith.index_cast %200 : i32 to index
    %c0_62 = arith.constant 0 : index
    %233 = vector.load %arg6[%c0_61, %232, %c0_62] : memref<1x128x128xbf16, #tpu.memory_space<vmem>>, vector<1x16x128xbf16>
    %234 = vector.shape_cast %233 : vector<1x16x128xbf16> to vector<16x128xbf16>
    %235 = vector.shape_cast %231 : vector<16x128xbf16> to vector<1x16x128xbf16>
    tpu.vector_store %arg6[%c0_61, %232, %c0_62], %235 {strides = array<i32>} : memref<1x128x128xbf16, #tpu.memory_space<vmem>>, vector<1x16x128xbf16>,
    %c6_i32 = arith.constant 6 : i32
    %c16_i32_63 = arith.constant 16 : i32
    %236 = arith.muli %c6_i32, %c16_i32_63 : i32
    %237 = tpu.assume_multiple %236, 16 : i32
    %238 = arith.index_cast %237 : i32 to index
    %c0_64 = arith.constant 0 : index
    %239 = vector.load %arg7[%238, %c0_64] : memref<128x512xf32, #tpu.memory_space<vmem>>, vector<16x512xf32>
    %240 = arith.truncf %230 : vector<16x128xf32> to vector<16x128xbf16>
    %cst_65 = arith.constant dense<0.000000e+00> : vector<16x512xf32>
    %241 = tpu.matmul %240, %11, %cst_65 {dimension_numbers = #tpu.dot_dimension_numbers<[1], [0], [0], [1], [0, 0, 1, 1], [], []>} : vector<16x128xbf16>, vector<128x512xbf16>, vector<16x512xf32> -> vector<16x512xf32>
    %242 = arith.addf %239, %241 : vector<16x512xf32>
    %243 = vector.extract_strided_slice %242 {offsets = [0, 0], sizes = [16, 128], strides = [1, 1]} : vector<16x512xf32> to vector<16x128xf32>
    %244 = arith.negf %243 : vector<16x128xf32>
    %245 = math.exp %244 : vector<16x128xf32>
    %cst_66 = arith.constant 1.000000e+00 : f32
    %246 = vector.broadcast %cst_66 : f32 to vector<16x128xf32>
    %247 = arith.addf %246, %245 : vector<16x128xf32>
    %248 = arith.divf %246, %247 : vector<16x128xf32>
    %249 = vector.extract_strided_slice %242 {offsets = [0, 128], sizes = [16, 128], strides = [1, 1]} : vector<16x512xf32> to vector<16x128xf32>
    %250 = arith.negf %249 : vector<16x128xf32>
    %251 = math.exp %250 : vector<16x128xf32>
    %cst_67 = arith.constant 1.000000e+00 : f32
    %252 = vector.broadcast %cst_67 : f32 to vector<16x128xf32>
    %253 = arith.addf %252, %251 : vector<16x128xf32>
    %254 = arith.divf %252, %253 : vector<16x128xf32>
    %255 = vector.extract_strided_slice %242 {offsets = [0, 256], sizes = [16, 128], strides = [1, 1]} : vector<16x512xf32> to vector<16x128xf32>
    %256 = math.tanh %255 : vector<16x128xf32>
    %257 = vector.extract_strided_slice %242 {offsets = [0, 384], sizes = [16, 128], strides = [1, 1]} : vector<16x512xf32> to vector<16x128xf32>
    %258 = arith.negf %257 : vector<16x128xf32>
    %259 = math.exp %258 : vector<16x128xf32>
    %cst_68 = arith.constant 1.000000e+00 : f32
    %260 = vector.broadcast %cst_68 : f32 to vector<16x128xf32>
    %261 = arith.addf %260, %259 : vector<16x128xf32>
    %262 = arith.divf %260, %261 : vector<16x128xf32>
    %263 = arith.mulf %254, %228 : vector<16x128xf32>
    %264 = arith.mulf %248, %256 : vector<16x128xf32>
    %265 = arith.addf %263, %264 : vector<16x128xf32>
    %266 = math.tanh %265 : vector<16x128xf32>
    %267 = arith.mulf %262, %266 : vector<16x128xf32>
    %268 = arith.truncf %267 : vector<16x128xf32> to vector<16x128xbf16>
    %c0_69 = arith.constant 0 : index
    %269 = arith.index_cast %237 : i32 to index
    %c0_70 = arith.constant 0 : index
    %270 = vector.load %arg6[%c0_69, %269, %c0_70] : memref<1x128x128xbf16, #tpu.memory_space<vmem>>, vector<1x16x128xbf16>
    %271 = vector.shape_cast %270 : vector<1x16x128xbf16> to vector<16x128xbf16>
    %272 = vector.shape_cast %268 : vector<16x128xbf16> to vector<1x16x128xbf16>
    tpu.vector_store %arg6[%c0_69, %269, %c0_70], %272 {strides = array<i32>} : memref<1x128x128xbf16, #tpu.memory_space<vmem>>, vector<1x16x128xbf16>,
    %c7_i32 = arith.constant 7 : i32
    %c16_i32_71 = arith.constant 16 : i32
    %273 = arith.muli %c7_i32, %c16_i32_71 : i32
    %274 = tpu.assume_multiple %273, 16 : i32
    %275 = arith.index_cast %274 : i32 to index
    %c0_72 = arith.constant 0 : index
    %276 = vector.load %arg7[%275, %c0_72] : memref<128x512xf32, #tpu.memory_space<vmem>>, vector<16x512xf32>
    %277 = arith.truncf %267 : vector<16x128xf32> to vector<16x128xbf16>
    %cst_73 = arith.constant dense<0.000000e+00> : vector<16x512xf32>
    %278 = tpu.matmul %277, %11, %cst_73 {dimension_numbers = #tpu.dot_dimension_numbers<[1], [0], [0], [1], [0, 0, 1, 1], [], []>} : vector<16x128xbf16>, vector<128x512xbf16>, vector<16x512xf32> -> vector<16x512xf32>
    %279 = arith.addf %276, %278 : vector<16x512xf32>
    %280 = vector.extract_strided_slice %279 {offsets = [0, 0], sizes = [16, 128], strides = [1, 1]} : vector<16x512xf32> to vector<16x128xf32>
    %281 = arith.negf %280 : vector<16x128xf32>
    %282 = math.exp %281 : vector<16x128xf32>
    %cst_74 = arith.constant 1.000000e+00 : f32
    %283 = vector.broadcast %cst_74 : f32 to vector<16x128xf32>
    %284 = arith.addf %283, %282 : vector<16x128xf32>
    %285 = arith.divf %283, %284 : vector<16x128xf32>
    %286 = vector.extract_strided_slice %279 {offsets = [0, 128], sizes = [16, 128], strides = [1, 1]} : vector<16x512xf32> to vector<16x128xf32>
    %287 = arith.negf %286 : vector<16x128xf32>
    %288 = math.exp %287 : vector<16x128xf32>
    %cst_75 = arith.constant 1.000000e+00 : f32
    %289 = vector.broadcast %cst_75 : f32 to vector<16x128xf32>
    %290 = arith.addf %289, %288 : vector<16x128xf32>
    %291 = arith.divf %289, %290 : vector<16x128xf32>
    %292 = vector.extract_strided_slice %279 {offsets = [0, 256], sizes = [16, 128], strides = [1, 1]} : vector<16x512xf32> to vector<16x128xf32>
    %293 = math.tanh %292 : vector<16x128xf32>
    %294 = vector.extract_strided_slice %279 {offsets = [0, 384], sizes = [16, 128], strides = [1, 1]} : vector<16x512xf32> to vector<16x128xf32>
    %295 = arith.negf %294 : vector<16x128xf32>
    %296 = math.exp %295 : vector<16x128xf32>
    %cst_76 = arith.constant 1.000000e+00 : f32
    %297 = vector.broadcast %cst_76 : f32 to vector<16x128xf32>
    %298 = arith.addf %297, %296 : vector<16x128xf32>
    %299 = arith.divf %297, %298 : vector<16x128xf32>
    %300 = arith.mulf %291, %265 : vector<16x128xf32>
    %301 = arith.mulf %285, %293 : vector<16x128xf32>
    %302 = arith.addf %300, %301 : vector<16x128xf32>
    %303 = math.tanh %302 : vector<16x128xf32>
    %304 = arith.mulf %299, %303 : vector<16x128xf32>
    %305 = arith.truncf %304 : vector<16x128xf32> to vector<16x128xbf16>
    %c0_77 = arith.constant 0 : index
    %306 = arith.index_cast %274 : i32 to index
    %c0_78 = arith.constant 0 : index
    %307 = vector.load %arg6[%c0_77, %306, %c0_78] : memref<1x128x128xbf16, #tpu.memory_space<vmem>>, vector<1x16x128xbf16>
    %308 = vector.shape_cast %307 : vector<1x16x128xbf16> to vector<16x128xbf16>
    %309 = vector.shape_cast %305 : vector<16x128xbf16> to vector<1x16x128xbf16>
    tpu.vector_store %arg6[%c0_77, %306, %c0_78], %309 {strides = array<i32>} : memref<1x128x128xbf16, #tpu.memory_space<vmem>>, vector<1x16x128xbf16>,
    %c8_i32 = arith.constant 8 : i32
    %c0_79 = arith.constant 0 : index
    %c0_80 = arith.constant 0 : index
    %310 = vector.load %arg8[%c0_79, %c0_80] : memref<16x128xf32, #tpu.memory_space<vmem>>, vector<16x128xf32>
    tpu.vector_store %arg8[%c0_79, %c0_80], %304 {strides = array<i32>} : memref<16x128xf32, #tpu.memory_space<vmem>>, vector<16x128xf32>,
    %c0_81 = arith.constant 0 : index
    %c0_82 = arith.constant 0 : index
    %311 = vector.load %arg9[%c0_81, %c0_82] : memref<16x128xf32, #tpu.memory_space<vmem>>, vector<16x128xf32>
    tpu.vector_store %arg9[%c0_81, %c0_82], %302 {strides = array<i32>} : memref<16x128xf32, #tpu.memory_space<vmem>>, vector<16x128xf32>,
    return
  }
  func.func @transform_0(%arg0: i32, %arg1: i32) -> (i32, i32, i32) {
    %c0_i32 = arith.constant 0 : i32
    %c0_i32_0 = arith.constant 0 : i32
    return %arg0, %arg1, %c0_i32 : i32, i32, i32
  }
  func.func @transform_1(%arg0: i32, %arg1: i32) -> (i32, i32) {
    %c0_i32 = arith.constant 0 : i32
    %c0_i32_0 = arith.constant 0 : i32
    %c0_i32_1 = arith.constant 0 : i32
    return %c0_i32, %c0_i32_0 : i32, i32
  }
  func.func @transform_2(%arg0: i32, %arg1: i32) -> (i32, i32) {
    %c0_i32 = arith.constant 0 : i32
    %c0_i32_0 = arith.constant 0 : i32
    %c0_i32_1 = arith.constant 0 : i32
    return %c0_i32, %c0_i32_0 : i32, i32
  }
  func.func @transform_3(%arg0: i32, %arg1: i32) -> (i32, i32) {
    %c0_i32 = arith.constant 0 : i32
    %c0_i32_0 = arith.constant 0 : i32
    %c0_i32_1 = arith.constant 0 : i32
    return %c0_i32, %c0_i32_0 : i32, i32
  }
  func.func @transform_4(%arg0: i32, %arg1: i32) -> (i32, i32, i32) {
    %c0_i32 = arith.constant 0 : i32
    %c0_i32_0 = arith.constant 0 : i32
    return %arg0, %arg1, %c0_i32 : i32, i32, i32
  }
}

module attributes {stable_mosaic.version = 11 : i64} {
  func.func @_head_kernel(%arg0: i32, %arg1: memref<128x128xbf16, #tpu.memory_space<vmem>>, %arg2: memref<128x128xbf16, #tpu.memory_space<vmem>>, %arg3: memref<1x128xf32, #tpu.memory_space<vmem>>, %arg4: memref<128x128xbf16, #tpu.memory_space<vmem>>, %arg5: memref<1x128xf32, #tpu.memory_space<vmem>>, %arg6: memref<128x128xf32, #tpu.memory_space<vmem>>) attributes {dimension_semantics = [#tpu.dimension_semantics<parallel>], iteration_bounds = array<i64: 1>, scalar_prefetch = 0 : i64, scratch_operands = 0 : i64, tpu.core_type = #tpu.core_type<tc>, window_params = [{transform_indices = @transform_0, window_bounds = array<i64: 128, 128>}, {pipeline_mode = #tpu.pipeline_mode<synchronous>, transform_indices = @transform_1, window_bounds = array<i64: 128, 128>}, {pipeline_mode = #tpu.pipeline_mode<synchronous>, transform_indices = @transform_2, window_bounds = array<i64: 1, 128>}, {pipeline_mode = #tpu.pipeline_mode<synchronous>, transform_indices = @transform_3, window_bounds = array<i64: 128, 128>}, {pipeline_mode = #tpu.pipeline_mode<synchronous>, transform_indices = @transform_4, window_bounds = array<i64: 1, 128>}, {transform_indices = @transform_5, window_bounds = array<i64: 128, 128>}]} {
    %c0 = arith.constant 0 : index
    %c0_0 = arith.constant 0 : index
    %0 = vector.load %arg1[%c0, %c0_0] : memref<128x128xbf16, #tpu.memory_space<vmem>>, vector<128x128xbf16>
    %c0_1 = arith.constant 0 : index
    %c0_2 = arith.constant 0 : index
    %1 = vector.load %arg2[%c0_1, %c0_2] : memref<128x128xbf16, #tpu.memory_space<vmem>>, vector<128x128xbf16>
    %cst = arith.constant dense<0.000000e+00> : vector<128x128xf32>
    %2 = tpu.matmul %0, %1, %cst {dimension_numbers = #tpu.dot_dimension_numbers<[1], [0], [0], [1], [0, 0, 1, 1], [], []>} : vector<128x128xbf16>, vector<128x128xbf16>, vector<128x128xf32> -> vector<128x128xf32>
    %c0_3 = arith.constant 0 : index
    %c0_4 = arith.constant 0 : index
    %3 = vector.load %arg3[%c0_3, %c0_4] : memref<1x128xf32, #tpu.memory_space<vmem>>, vector<1x128xf32>
    %4 = vector.broadcast %3 : vector<1x128xf32> to vector<128x128xf32>
    %5 = arith.addf %2, %4 : vector<128x128xf32>
    %6 = math.tanh %5 : vector<128x128xf32>
    %7 = arith.truncf %6 : vector<128x128xf32> to vector<128x128xbf16>
    %c0_5 = arith.constant 0 : index
    %c0_6 = arith.constant 0 : index
    %8 = vector.load %arg4[%c0_5, %c0_6] : memref<128x128xbf16, #tpu.memory_space<vmem>>, vector<128x128xbf16>
    %cst_7 = arith.constant dense<0.000000e+00> : vector<128x128xf32>
    %9 = tpu.matmul %7, %8, %cst_7 {dimension_numbers = #tpu.dot_dimension_numbers<[1], [0], [0], [1], [0, 0, 1, 1], [], []>} : vector<128x128xbf16>, vector<128x128xbf16>, vector<128x128xf32> -> vector<128x128xf32>
    %c0_8 = arith.constant 0 : index
    %c0_9 = arith.constant 0 : index
    %10 = vector.load %arg5[%c0_8, %c0_9] : memref<1x128xf32, #tpu.memory_space<vmem>>, vector<1x128xf32>
    %11 = vector.broadcast %10 : vector<1x128xf32> to vector<128x128xf32>
    %12 = arith.addf %9, %11 : vector<128x128xf32>
    %c0_10 = arith.constant 0 : index
    %c0_11 = arith.constant 0 : index
    %13 = vector.load %arg6[%c0_10, %c0_11] : memref<128x128xf32, #tpu.memory_space<vmem>>, vector<128x128xf32>
    tpu.vector_store %arg6[%c0_10, %c0_11], %12 {strides = array<i32>} : memref<128x128xf32, #tpu.memory_space<vmem>>, vector<128x128xf32>,
    return
  }
  func.func @transform_0(%arg0: i32) -> (i32, i32) {
    %c0_i32 = arith.constant 0 : i32
    %c0_i32_0 = arith.constant 0 : i32
    return %arg0, %c0_i32 : i32, i32
  }
  func.func @transform_1(%arg0: i32) -> (i32, i32) {
    %c0_i32 = arith.constant 0 : i32
    %c0_i32_0 = arith.constant 0 : i32
    %c0_i32_1 = arith.constant 0 : i32
    return %c0_i32, %c0_i32_0 : i32, i32
  }
  func.func @transform_2(%arg0: i32) -> (i32, i32) {
    %c0_i32 = arith.constant 0 : i32
    %c0_i32_0 = arith.constant 0 : i32
    %c0_i32_1 = arith.constant 0 : i32
    return %c0_i32, %c0_i32_0 : i32, i32
  }
  func.func @transform_3(%arg0: i32) -> (i32, i32) {
    %c0_i32 = arith.constant 0 : i32
    %c0_i32_0 = arith.constant 0 : i32
    %c0_i32_1 = arith.constant 0 : i32
    return %c0_i32, %c0_i32_0 : i32, i32
  }
  func.func @transform_4(%arg0: i32) -> (i32, i32) {
    %c0_i32 = arith.constant 0 : i32
    %c0_i32_0 = arith.constant 0 : i32
    %c0_i32_1 = arith.constant 0 : i32
    return %c0_i32, %c0_i32_0 : i32, i32
  }
  func.func @transform_5(%arg0: i32) -> (i32, i32) {
    %c0_i32 = arith.constant 0 : i32
    %c0_i32_0 = arith.constant 0 : i32
    return %arg0, %c0_i32 : i32, i32
  }
}

module attributes {stable_mosaic.version = 11 : i64} {
  func.func @_lstm_fused_kernel(%arg0: i32, %arg1: i32, %arg2: memref<1x128x8xf32, #tpu.memory_space<vmem>>, %arg3: memref<8x512xbf16, #tpu.memory_space<vmem>>, %arg4: memref<1x512xf32, #tpu.memory_space<vmem>>, %arg5: memref<128x512xbf16, #tpu.memory_space<vmem>>, %arg6: memref<1x128x128xbf16, #tpu.memory_space<vmem>>, %arg7: memref<128x512xf32, #tpu.memory_space<vmem>>, %arg8: memref<16x128xf32, #tpu.memory_space<vmem>>, %arg9: memref<16x128xf32, #tpu.memory_space<vmem>>) attributes {dimension_semantics = [#tpu.dimension_semantics<parallel>, #tpu.dimension_semantics<arbitrary>], iteration_bounds = array<i64: 1, 1>, scalar_prefetch = 0 : i64, scratch_operands = 3 : i64, tpu.core_type = #tpu.core_type<tc>, window_params = [{transform_indices = @transform_0, window_bounds = array<i64: 1, 128, 8>}, {pipeline_mode = #tpu.pipeline_mode<synchronous>, transform_indices = @transform_1, window_bounds = array<i64: 8, 512>}, {pipeline_mode = #tpu.pipeline_mode<synchronous>, transform_indices = @transform_2, window_bounds = array<i64: 1, 512>}, {pipeline_mode = #tpu.pipeline_mode<synchronous>, transform_indices = @transform_3, window_bounds = array<i64: 128, 512>}, {transform_indices = @transform_4, window_bounds = array<i64: 1, 128, 128>}]} {
    %c0_i32 = arith.constant 0 : i32
    %0 = arith.cmpi eq, %arg1, %c0_i32 : i32
    %1 = arith.extui %0 : i1 to i32
    %c0_i32_0 = arith.constant 0 : i32
    %2 = arith.cmpi ne, %1, %c0_i32_0 : i32
    scf.if %2 {
      %cst_83 = arith.constant 0.000000e+00 : f32
      %313 = vector.broadcast %cst_83 : f32 to vector<16x128xf32>
      %c0_84 = arith.constant 0 : index
      %c0_85 = arith.constant 0 : index
      %314 = vector.load %arg8[%c0_84, %c0_85] : memref<16x128xf32, #tpu.memory_space<vmem>>, vector<16x128xf32>
      tpu.vector_store %arg8[%c0_84, %c0_85], %313 {strides = array<i32>} : memref<16x128xf32, #tpu.memory_space<vmem>>, vector<16x128xf32>,
      %cst_86 = arith.constant 0.000000e+00 : f32
      %315 = vector.broadcast %cst_86 : f32 to vector<16x128xf32>
      %c0_87 = arith.constant 0 : index
      %c0_88 = arith.constant 0 : index
      %316 = vector.load %arg9[%c0_87, %c0_88] : memref<16x128xf32, #tpu.memory_space<vmem>>, vector<16x128xf32>
      tpu.vector_store %arg9[%c0_87, %c0_88], %315 {strides = array<i32>} : memref<16x128xf32, #tpu.memory_space<vmem>>, vector<16x128xf32>,
    } else {
    }
    %c0 = arith.constant 0 : index
    %c0_1 = arith.constant 0 : index
    %c0_2 = arith.constant 0 : index
    %3 = vector.load %arg2[%c0, %c0_1, %c0_2] : memref<1x128x8xf32, #tpu.memory_space<vmem>>, vector<1x128x8xf32>
    %4 = vector.shape_cast %3 : vector<1x128x8xf32> to vector<128x8xf32>
    %5 = arith.truncf %4 : vector<128x8xf32> to vector<128x8xbf16>
    %c0_3 = arith.constant 0 : index
    %c0_4 = arith.constant 0 : index
    %6 = vector.load %arg3[%c0_3, %c0_4] : memref<8x512xbf16, #tpu.memory_space<vmem>>, vector<8x512xbf16>
    %cst = arith.constant dense<0.000000e+00> : vector<128x512xf32>
    %7 = tpu.matmul %5, %6, %cst {dimension_numbers = #tpu.dot_dimension_numbers<[1], [0], [0], [1], [0, 0, 1, 1], [], []>} : vector<128x8xbf16>, vector<8x512xbf16>, vector<128x512xf32> -> vector<128x512xf32>
    %c0_5 = arith.constant 0 : index
    %c0_6 = arith.constant 0 : index
    %8 = vector.load %arg4[%c0_5, %c0_6] : memref<1x512xf32, #tpu.memory_space<vmem>>, vector<1x512xf32>
    %9 = vector.broadcast %8 : vector<1x512xf32> to vector<128x512xf32>
    %10 = arith.addf %7, %9 : vector<128x512xf32>
    %c0_7 = arith.constant 0 : index
    %c0_8 = arith.constant 0 : index
    %11 = vector.load %arg7[%c0_7, %c0_8] : memref<128x512xf32, #tpu.memory_space<vmem>>, vector<128x512xf32>
    tpu.vector_store %arg7[%c0_7, %c0_8], %10 {strides = array<i32>} : memref<128x512xf32, #tpu.memory_space<vmem>>, vector<128x512xf32>,
    %c0_9 = arith.constant 0 : index
    %c0_10 = arith.constant 0 : index
    %12 = vector.load %arg5[%c0_9, %c0_10] : memref<128x512xbf16, #tpu.memory_space<vmem>>, vector<128x512xbf16>
    %c0_11 = arith.constant 0 : index
    %c0_12 = arith.constant 0 : index
    %13 = vector.load %arg8[%c0_11, %c0_12] : memref<16x128xf32, #tpu.memory_space<vmem>>, vector<16x128xf32>
    %c0_13 = arith.constant 0 : index
    %c0_14 = arith.constant 0 : index
    %14 = vector.load %arg9[%c0_13, %c0_14] : memref<16x128xf32, #tpu.memory_space<vmem>>, vector<16x128xf32>
    %c0_i32_15 = arith.constant 0 : i32
    %c16_i32 = arith.constant 16 : i32
    %15 = arith.muli %c0_i32_15, %c16_i32 : i32
    %16 = tpu.assume_multiple %15, 16 : i32
    %17 = arith.index_cast %16 : i32 to index
    %c0_16 = arith.constant 0 : index
    %18 = vector.load %arg7[%17, %c0_16] : memref<128x512xf32, #tpu.memory_space<vmem>>, vector<16x512xf32>
    %19 = arith.truncf %13 : vector<16x128xf32> to vector<16x128xbf16>
    %cst_17 = arith.constant dense<0.000000e+00> : vector<16x512xf32>
    %20 = tpu.matmul %19, %12, %cst_17 {dimension_numbers = #tpu.dot_dimension_numbers<[1], [0], [0], [1], [0, 0, 1, 1], [], []>} : vector<16x128xbf16>, vector<128x512xbf16>, vector<16x512xf32> -> vector<16x512xf32>
    %21 = arith.addf %18, %20 : vector<16x512xf32>
    %22 = vector.extract_strided_slice %21 {offsets = [0, 0], sizes = [16, 128], strides = [1, 1]} : vector<16x512xf32> to vector<16x128xf32>
    %23 = arith.negf %22 : vector<16x128xf32>
    %24 = math.exp %23 : vector<16x128xf32>
    %cst_18 = arith.constant 1.000000e+00 : f32
    %25 = vector.broadcast %cst_18 : f32 to vector<16x128xf32>
    %26 = arith.addf %25, %24 : vector<16x128xf32>
    %27 = arith.divf %25, %26 : vector<16x128xf32>
    %28 = vector.extract_strided_slice %21 {offsets = [0, 128], sizes = [16, 128], strides = [1, 1]} : vector<16x512xf32> to vector<16x128xf32>
    %29 = arith.negf %28 : vector<16x128xf32>
    %30 = math.exp %29 : vector<16x128xf32>
    %cst_19 = arith.constant 1.000000e+00 : f32
    %31 = vector.broadcast %cst_19 : f32 to vector<16x128xf32>
    %32 = arith.addf %31, %30 : vector<16x128xf32>
    %33 = arith.divf %31, %32 : vector<16x128xf32>
    %34 = vector.extract_strided_slice %21 {offsets = [0, 256], sizes = [16, 128], strides = [1, 1]} : vector<16x512xf32> to vector<16x128xf32>
    %35 = math.tanh %34 : vector<16x128xf32>
    %36 = vector.extract_strided_slice %21 {offsets = [0, 384], sizes = [16, 128], strides = [1, 1]} : vector<16x512xf32> to vector<16x128xf32>
    %37 = arith.negf %36 : vector<16x128xf32>
    %38 = math.exp %37 : vector<16x128xf32>
    %cst_20 = arith.constant 1.000000e+00 : f32
    %39 = vector.broadcast %cst_20 : f32 to vector<16x128xf32>
    %40 = arith.addf %39, %38 : vector<16x128xf32>
    %41 = arith.divf %39, %40 : vector<16x128xf32>
    %42 = arith.mulf %33, %14 : vector<16x128xf32>
    %43 = arith.mulf %27, %35 : vector<16x128xf32>
    %44 = arith.addf %42, %43 : vector<16x128xf32>
    %45 = math.tanh %44 : vector<16x128xf32>
    %46 = arith.mulf %41, %45 : vector<16x128xf32>
    %47 = arith.truncf %46 : vector<16x128xf32> to vector<16x128xbf16>
    %c0_21 = arith.constant 0 : index
    %48 = arith.index_cast %16 : i32 to index
    %c0_22 = arith.constant 0 : index
    %49 = vector.load %arg6[%c0_21, %48, %c0_22] : memref<1x128x128xbf16, #tpu.memory_space<vmem>>, vector<1x16x128xbf16>
    %50 = vector.shape_cast %49 : vector<1x16x128xbf16> to vector<16x128xbf16>
    %51 = vector.shape_cast %47 : vector<16x128xbf16> to vector<1x16x128xbf16>
    tpu.vector_store %arg6[%c0_21, %48, %c0_22], %51 {strides = array<i32>} : memref<1x128x128xbf16, #tpu.memory_space<vmem>>, vector<1x16x128xbf16>,
    %c1_i32 = arith.constant 1 : i32
    %c16_i32_23 = arith.constant 16 : i32
    %52 = arith.muli %c1_i32, %c16_i32_23 : i32
    %53 = tpu.assume_multiple %52, 16 : i32
    %54 = arith.index_cast %53 : i32 to index
    %c0_24 = arith.constant 0 : index
    %55 = vector.load %arg7[%54, %c0_24] : memref<128x512xf32, #tpu.memory_space<vmem>>, vector<16x512xf32>
    %56 = arith.truncf %46 : vector<16x128xf32> to vector<16x128xbf16>
    %cst_25 = arith.constant dense<0.000000e+00> : vector<16x512xf32>
    %57 = tpu.matmul %56, %12, %cst_25 {dimension_numbers = #tpu.dot_dimension_numbers<[1], [0], [0], [1], [0, 0, 1, 1], [], []>} : vector<16x128xbf16>, vector<128x512xbf16>, vector<16x512xf32> -> vector<16x512xf32>
    %58 = arith.addf %55, %57 : vector<16x512xf32>
    %59 = vector.extract_strided_slice %58 {offsets = [0, 0], sizes = [16, 128], strides = [1, 1]} : vector<16x512xf32> to vector<16x128xf32>
    %60 = arith.negf %59 : vector<16x128xf32>
    %61 = math.exp %60 : vector<16x128xf32>
    %cst_26 = arith.constant 1.000000e+00 : f32
    %62 = vector.broadcast %cst_26 : f32 to vector<16x128xf32>
    %63 = arith.addf %62, %61 : vector<16x128xf32>
    %64 = arith.divf %62, %63 : vector<16x128xf32>
    %65 = vector.extract_strided_slice %58 {offsets = [0, 128], sizes = [16, 128], strides = [1, 1]} : vector<16x512xf32> to vector<16x128xf32>
    %66 = arith.negf %65 : vector<16x128xf32>
    %67 = math.exp %66 : vector<16x128xf32>
    %cst_27 = arith.constant 1.000000e+00 : f32
    %68 = vector.broadcast %cst_27 : f32 to vector<16x128xf32>
    %69 = arith.addf %68, %67 : vector<16x128xf32>
    %70 = arith.divf %68, %69 : vector<16x128xf32>
    %71 = vector.extract_strided_slice %58 {offsets = [0, 256], sizes = [16, 128], strides = [1, 1]} : vector<16x512xf32> to vector<16x128xf32>
    %72 = math.tanh %71 : vector<16x128xf32>
    %73 = vector.extract_strided_slice %58 {offsets = [0, 384], sizes = [16, 128], strides = [1, 1]} : vector<16x512xf32> to vector<16x128xf32>
    %74 = arith.negf %73 : vector<16x128xf32>
    %75 = math.exp %74 : vector<16x128xf32>
    %cst_28 = arith.constant 1.000000e+00 : f32
    %76 = vector.broadcast %cst_28 : f32 to vector<16x128xf32>
    %77 = arith.addf %76, %75 : vector<16x128xf32>
    %78 = arith.divf %76, %77 : vector<16x128xf32>
    %79 = arith.mulf %70, %44 : vector<16x128xf32>
    %80 = arith.mulf %64, %72 : vector<16x128xf32>
    %81 = arith.addf %79, %80 : vector<16x128xf32>
    %82 = math.tanh %81 : vector<16x128xf32>
    %83 = arith.mulf %78, %82 : vector<16x128xf32>
    %84 = arith.truncf %83 : vector<16x128xf32> to vector<16x128xbf16>
    %c0_29 = arith.constant 0 : index
    %85 = arith.index_cast %53 : i32 to index
    %c0_30 = arith.constant 0 : index
    %86 = vector.load %arg6[%c0_29, %85, %c0_30] : memref<1x128x128xbf16, #tpu.memory_space<vmem>>, vector<1x16x128xbf16>
    %87 = vector.shape_cast %86 : vector<1x16x128xbf16> to vector<16x128xbf16>
    %88 = vector.shape_cast %84 : vector<16x128xbf16> to vector<1x16x128xbf16>
    tpu.vector_store %arg6[%c0_29, %85, %c0_30], %88 {strides = array<i32>} : memref<1x128x128xbf16, #tpu.memory_space<vmem>>, vector<1x16x128xbf16>,
    %c2_i32 = arith.constant 2 : i32
    %c16_i32_31 = arith.constant 16 : i32
    %89 = arith.muli %c2_i32, %c16_i32_31 : i32
    %90 = tpu.assume_multiple %89, 16 : i32
    %91 = arith.index_cast %90 : i32 to index
    %c0_32 = arith.constant 0 : index
    %92 = vector.load %arg7[%91, %c0_32] : memref<128x512xf32, #tpu.memory_space<vmem>>, vector<16x512xf32>
    %93 = arith.truncf %83 : vector<16x128xf32> to vector<16x128xbf16>
    %cst_33 = arith.constant dense<0.000000e+00> : vector<16x512xf32>
    %94 = tpu.matmul %93, %12, %cst_33 {dimension_numbers = #tpu.dot_dimension_numbers<[1], [0], [0], [1], [0, 0, 1, 1], [], []>} : vector<16x128xbf16>, vector<128x512xbf16>, vector<16x512xf32> -> vector<16x512xf32>
    %95 = arith.addf %92, %94 : vector<16x512xf32>
    %96 = vector.extract_strided_slice %95 {offsets = [0, 0], sizes = [16, 128], strides = [1, 1]} : vector<16x512xf32> to vector<16x128xf32>
    %97 = arith.negf %96 : vector<16x128xf32>
    %98 = math.exp %97 : vector<16x128xf32>
    %cst_34 = arith.constant 1.000000e+00 : f32
    %99 = vector.broadcast %cst_34 : f32 to vector<16x128xf32>
    %100 = arith.addf %99, %98 : vector<16x128xf32>
    %101 = arith.divf %99, %100 : vector<16x128xf32>
    %102 = vector.extract_strided_slice %95 {offsets = [0, 128], sizes = [16, 128], strides = [1, 1]} : vector<16x512xf32> to vector<16x128xf32>
    %103 = arith.negf %102 : vector<16x128xf32>
    %104 = math.exp %103 : vector<16x128xf32>
    %cst_35 = arith.constant 1.000000e+00 : f32
    %105 = vector.broadcast %cst_35 : f32 to vector<16x128xf32>
    %106 = arith.addf %105, %104 : vector<16x128xf32>
    %107 = arith.divf %105, %106 : vector<16x128xf32>
    %108 = vector.extract_strided_slice %95 {offsets = [0, 256], sizes = [16, 128], strides = [1, 1]} : vector<16x512xf32> to vector<16x128xf32>
    %109 = math.tanh %108 : vector<16x128xf32>
    %110 = vector.extract_strided_slice %95 {offsets = [0, 384], sizes = [16, 128], strides = [1, 1]} : vector<16x512xf32> to vector<16x128xf32>
    %111 = arith.negf %110 : vector<16x128xf32>
    %112 = math.exp %111 : vector<16x128xf32>
    %cst_36 = arith.constant 1.000000e+00 : f32
    %113 = vector.broadcast %cst_36 : f32 to vector<16x128xf32>
    %114 = arith.addf %113, %112 : vector<16x128xf32>
    %115 = arith.divf %113, %114 : vector<16x128xf32>
    %116 = arith.mulf %107, %81 : vector<16x128xf32>
    %117 = arith.mulf %101, %109 : vector<16x128xf32>
    %118 = arith.addf %116, %117 : vector<16x128xf32>
    %119 = math.tanh %118 : vector<16x128xf32>
    %120 = arith.mulf %115, %119 : vector<16x128xf32>
    %121 = arith.truncf %120 : vector<16x128xf32> to vector<16x128xbf16>
    %c0_37 = arith.constant 0 : index
    %122 = arith.index_cast %90 : i32 to index
    %c0_38 = arith.constant 0 : index
    %123 = vector.load %arg6[%c0_37, %122, %c0_38] : memref<1x128x128xbf16, #tpu.memory_space<vmem>>, vector<1x16x128xbf16>
    %124 = vector.shape_cast %123 : vector<1x16x128xbf16> to vector<16x128xbf16>
    %125 = vector.shape_cast %121 : vector<16x128xbf16> to vector<1x16x128xbf16>
    tpu.vector_store %arg6[%c0_37, %122, %c0_38], %125 {strides = array<i32>} : memref<1x128x128xbf16, #tpu.memory_space<vmem>>, vector<1x16x128xbf16>,
    %c3_i32 = arith.constant 3 : i32
    %c16_i32_39 = arith.constant 16 : i32
    %126 = arith.muli %c3_i32, %c16_i32_39 : i32
    %127 = tpu.assume_multiple %126, 16 : i32
    %128 = arith.index_cast %127 : i32 to index
    %c0_40 = arith.constant 0 : index
    %129 = vector.load %arg7[%128, %c0_40] : memref<128x512xf32, #tpu.memory_space<vmem>>, vector<16x512xf32>
    %130 = arith.truncf %120 : vector<16x128xf32> to vector<16x128xbf16>
    %cst_41 = arith.constant dense<0.000000e+00> : vector<16x512xf32>
    %131 = tpu.matmul %130, %12, %cst_41 {dimension_numbers = #tpu.dot_dimension_numbers<[1], [0], [0], [1], [0, 0, 1, 1], [], []>} : vector<16x128xbf16>, vector<128x512xbf16>, vector<16x512xf32> -> vector<16x512xf32>
    %132 = arith.addf %129, %131 : vector<16x512xf32>
    %133 = vector.extract_strided_slice %132 {offsets = [0, 0], sizes = [16, 128], strides = [1, 1]} : vector<16x512xf32> to vector<16x128xf32>
    %134 = arith.negf %133 : vector<16x128xf32>
    %135 = math.exp %134 : vector<16x128xf32>
    %cst_42 = arith.constant 1.000000e+00 : f32
    %136 = vector.broadcast %cst_42 : f32 to vector<16x128xf32>
    %137 = arith.addf %136, %135 : vector<16x128xf32>
    %138 = arith.divf %136, %137 : vector<16x128xf32>
    %139 = vector.extract_strided_slice %132 {offsets = [0, 128], sizes = [16, 128], strides = [1, 1]} : vector<16x512xf32> to vector<16x128xf32>
    %140 = arith.negf %139 : vector<16x128xf32>
    %141 = math.exp %140 : vector<16x128xf32>
    %cst_43 = arith.constant 1.000000e+00 : f32
    %142 = vector.broadcast %cst_43 : f32 to vector<16x128xf32>
    %143 = arith.addf %142, %141 : vector<16x128xf32>
    %144 = arith.divf %142, %143 : vector<16x128xf32>
    %145 = vector.extract_strided_slice %132 {offsets = [0, 256], sizes = [16, 128], strides = [1, 1]} : vector<16x512xf32> to vector<16x128xf32>
    %146 = math.tanh %145 : vector<16x128xf32>
    %147 = vector.extract_strided_slice %132 {offsets = [0, 384], sizes = [16, 128], strides = [1, 1]} : vector<16x512xf32> to vector<16x128xf32>
    %148 = arith.negf %147 : vector<16x128xf32>
    %149 = math.exp %148 : vector<16x128xf32>
    %cst_44 = arith.constant 1.000000e+00 : f32
    %150 = vector.broadcast %cst_44 : f32 to vector<16x128xf32>
    %151 = arith.addf %150, %149 : vector<16x128xf32>
    %152 = arith.divf %150, %151 : vector<16x128xf32>
    %153 = arith.mulf %144, %118 : vector<16x128xf32>
    %154 = arith.mulf %138, %146 : vector<16x128xf32>
    %155 = arith.addf %153, %154 : vector<16x128xf32>
    %156 = math.tanh %155 : vector<16x128xf32>
    %157 = arith.mulf %152, %156 : vector<16x128xf32>
    %158 = arith.truncf %157 : vector<16x128xf32> to vector<16x128xbf16>
    %c0_45 = arith.constant 0 : index
    %159 = arith.index_cast %127 : i32 to index
    %c0_46 = arith.constant 0 : index
    %160 = vector.load %arg6[%c0_45, %159, %c0_46] : memref<1x128x128xbf16, #tpu.memory_space<vmem>>, vector<1x16x128xbf16>
    %161 = vector.shape_cast %160 : vector<1x16x128xbf16> to vector<16x128xbf16>
    %162 = vector.shape_cast %158 : vector<16x128xbf16> to vector<1x16x128xbf16>
    tpu.vector_store %arg6[%c0_45, %159, %c0_46], %162 {strides = array<i32>} : memref<1x128x128xbf16, #tpu.memory_space<vmem>>, vector<1x16x128xbf16>,
    %c4_i32 = arith.constant 4 : i32
    %c16_i32_47 = arith.constant 16 : i32
    %163 = arith.muli %c4_i32, %c16_i32_47 : i32
    %164 = tpu.assume_multiple %163, 16 : i32
    %165 = arith.index_cast %164 : i32 to index
    %c0_48 = arith.constant 0 : index
    %166 = vector.load %arg7[%165, %c0_48] : memref<128x512xf32, #tpu.memory_space<vmem>>, vector<16x512xf32>
    %167 = arith.truncf %157 : vector<16x128xf32> to vector<16x128xbf16>
    %cst_49 = arith.constant dense<0.000000e+00> : vector<16x512xf32>
    %168 = tpu.matmul %167, %12, %cst_49 {dimension_numbers = #tpu.dot_dimension_numbers<[1], [0], [0], [1], [0, 0, 1, 1], [], []>} : vector<16x128xbf16>, vector<128x512xbf16>, vector<16x512xf32> -> vector<16x512xf32>
    %169 = arith.addf %166, %168 : vector<16x512xf32>
    %170 = vector.extract_strided_slice %169 {offsets = [0, 0], sizes = [16, 128], strides = [1, 1]} : vector<16x512xf32> to vector<16x128xf32>
    %171 = arith.negf %170 : vector<16x128xf32>
    %172 = math.exp %171 : vector<16x128xf32>
    %cst_50 = arith.constant 1.000000e+00 : f32
    %173 = vector.broadcast %cst_50 : f32 to vector<16x128xf32>
    %174 = arith.addf %173, %172 : vector<16x128xf32>
    %175 = arith.divf %173, %174 : vector<16x128xf32>
    %176 = vector.extract_strided_slice %169 {offsets = [0, 128], sizes = [16, 128], strides = [1, 1]} : vector<16x512xf32> to vector<16x128xf32>
    %177 = arith.negf %176 : vector<16x128xf32>
    %178 = math.exp %177 : vector<16x128xf32>
    %cst_51 = arith.constant 1.000000e+00 : f32
    %179 = vector.broadcast %cst_51 : f32 to vector<16x128xf32>
    %180 = arith.addf %179, %178 : vector<16x128xf32>
    %181 = arith.divf %179, %180 : vector<16x128xf32>
    %182 = vector.extract_strided_slice %169 {offsets = [0, 256], sizes = [16, 128], strides = [1, 1]} : vector<16x512xf32> to vector<16x128xf32>
    %183 = math.tanh %182 : vector<16x128xf32>
    %184 = vector.extract_strided_slice %169 {offsets = [0, 384], sizes = [16, 128], strides = [1, 1]} : vector<16x512xf32> to vector<16x128xf32>
    %185 = arith.negf %184 : vector<16x128xf32>
    %186 = math.exp %185 : vector<16x128xf32>
    %cst_52 = arith.constant 1.000000e+00 : f32
    %187 = vector.broadcast %cst_52 : f32 to vector<16x128xf32>
    %188 = arith.addf %187, %186 : vector<16x128xf32>
    %189 = arith.divf %187, %188 : vector<16x128xf32>
    %190 = arith.mulf %181, %155 : vector<16x128xf32>
    %191 = arith.mulf %175, %183 : vector<16x128xf32>
    %192 = arith.addf %190, %191 : vector<16x128xf32>
    %193 = math.tanh %192 : vector<16x128xf32>
    %194 = arith.mulf %189, %193 : vector<16x128xf32>
    %195 = arith.truncf %194 : vector<16x128xf32> to vector<16x128xbf16>
    %c0_53 = arith.constant 0 : index
    %196 = arith.index_cast %164 : i32 to index
    %c0_54 = arith.constant 0 : index
    %197 = vector.load %arg6[%c0_53, %196, %c0_54] : memref<1x128x128xbf16, #tpu.memory_space<vmem>>, vector<1x16x128xbf16>
    %198 = vector.shape_cast %197 : vector<1x16x128xbf16> to vector<16x128xbf16>
    %199 = vector.shape_cast %195 : vector<16x128xbf16> to vector<1x16x128xbf16>
    tpu.vector_store %arg6[%c0_53, %196, %c0_54], %199 {strides = array<i32>} : memref<1x128x128xbf16, #tpu.memory_space<vmem>>, vector<1x16x128xbf16>,
    %c5_i32 = arith.constant 5 : i32
    %c16_i32_55 = arith.constant 16 : i32
    %200 = arith.muli %c5_i32, %c16_i32_55 : i32
    %201 = tpu.assume_multiple %200, 16 : i32
    %202 = arith.index_cast %201 : i32 to index
    %c0_56 = arith.constant 0 : index
    %203 = vector.load %arg7[%202, %c0_56] : memref<128x512xf32, #tpu.memory_space<vmem>>, vector<16x512xf32>
    %204 = arith.truncf %194 : vector<16x128xf32> to vector<16x128xbf16>
    %cst_57 = arith.constant dense<0.000000e+00> : vector<16x512xf32>
    %205 = tpu.matmul %204, %12, %cst_57 {dimension_numbers = #tpu.dot_dimension_numbers<[1], [0], [0], [1], [0, 0, 1, 1], [], []>} : vector<16x128xbf16>, vector<128x512xbf16>, vector<16x512xf32> -> vector<16x512xf32>
    %206 = arith.addf %203, %205 : vector<16x512xf32>
    %207 = vector.extract_strided_slice %206 {offsets = [0, 0], sizes = [16, 128], strides = [1, 1]} : vector<16x512xf32> to vector<16x128xf32>
    %208 = arith.negf %207 : vector<16x128xf32>
    %209 = math.exp %208 : vector<16x128xf32>
    %cst_58 = arith.constant 1.000000e+00 : f32
    %210 = vector.broadcast %cst_58 : f32 to vector<16x128xf32>
    %211 = arith.addf %210, %209 : vector<16x128xf32>
    %212 = arith.divf %210, %211 : vector<16x128xf32>
    %213 = vector.extract_strided_slice %206 {offsets = [0, 128], sizes = [16, 128], strides = [1, 1]} : vector<16x512xf32> to vector<16x128xf32>
    %214 = arith.negf %213 : vector<16x128xf32>
    %215 = math.exp %214 : vector<16x128xf32>
    %cst_59 = arith.constant 1.000000e+00 : f32
    %216 = vector.broadcast %cst_59 : f32 to vector<16x128xf32>
    %217 = arith.addf %216, %215 : vector<16x128xf32>
    %218 = arith.divf %216, %217 : vector<16x128xf32>
    %219 = vector.extract_strided_slice %206 {offsets = [0, 256], sizes = [16, 128], strides = [1, 1]} : vector<16x512xf32> to vector<16x128xf32>
    %220 = math.tanh %219 : vector<16x128xf32>
    %221 = vector.extract_strided_slice %206 {offsets = [0, 384], sizes = [16, 128], strides = [1, 1]} : vector<16x512xf32> to vector<16x128xf32>
    %222 = arith.negf %221 : vector<16x128xf32>
    %223 = math.exp %222 : vector<16x128xf32>
    %cst_60 = arith.constant 1.000000e+00 : f32
    %224 = vector.broadcast %cst_60 : f32 to vector<16x128xf32>
    %225 = arith.addf %224, %223 : vector<16x128xf32>
    %226 = arith.divf %224, %225 : vector<16x128xf32>
    %227 = arith.mulf %218, %192 : vector<16x128xf32>
    %228 = arith.mulf %212, %220 : vector<16x128xf32>
    %229 = arith.addf %227, %228 : vector<16x128xf32>
    %230 = math.tanh %229 : vector<16x128xf32>
    %231 = arith.mulf %226, %230 : vector<16x128xf32>
    %232 = arith.truncf %231 : vector<16x128xf32> to vector<16x128xbf16>
    %c0_61 = arith.constant 0 : index
    %233 = arith.index_cast %201 : i32 to index
    %c0_62 = arith.constant 0 : index
    %234 = vector.load %arg6[%c0_61, %233, %c0_62] : memref<1x128x128xbf16, #tpu.memory_space<vmem>>, vector<1x16x128xbf16>
    %235 = vector.shape_cast %234 : vector<1x16x128xbf16> to vector<16x128xbf16>
    %236 = vector.shape_cast %232 : vector<16x128xbf16> to vector<1x16x128xbf16>
    tpu.vector_store %arg6[%c0_61, %233, %c0_62], %236 {strides = array<i32>} : memref<1x128x128xbf16, #tpu.memory_space<vmem>>, vector<1x16x128xbf16>,
    %c6_i32 = arith.constant 6 : i32
    %c16_i32_63 = arith.constant 16 : i32
    %237 = arith.muli %c6_i32, %c16_i32_63 : i32
    %238 = tpu.assume_multiple %237, 16 : i32
    %239 = arith.index_cast %238 : i32 to index
    %c0_64 = arith.constant 0 : index
    %240 = vector.load %arg7[%239, %c0_64] : memref<128x512xf32, #tpu.memory_space<vmem>>, vector<16x512xf32>
    %241 = arith.truncf %231 : vector<16x128xf32> to vector<16x128xbf16>
    %cst_65 = arith.constant dense<0.000000e+00> : vector<16x512xf32>
    %242 = tpu.matmul %241, %12, %cst_65 {dimension_numbers = #tpu.dot_dimension_numbers<[1], [0], [0], [1], [0, 0, 1, 1], [], []>} : vector<16x128xbf16>, vector<128x512xbf16>, vector<16x512xf32> -> vector<16x512xf32>
    %243 = arith.addf %240, %242 : vector<16x512xf32>
    %244 = vector.extract_strided_slice %243 {offsets = [0, 0], sizes = [16, 128], strides = [1, 1]} : vector<16x512xf32> to vector<16x128xf32>
    %245 = arith.negf %244 : vector<16x128xf32>
    %246 = math.exp %245 : vector<16x128xf32>
    %cst_66 = arith.constant 1.000000e+00 : f32
    %247 = vector.broadcast %cst_66 : f32 to vector<16x128xf32>
    %248 = arith.addf %247, %246 : vector<16x128xf32>
    %249 = arith.divf %247, %248 : vector<16x128xf32>
    %250 = vector.extract_strided_slice %243 {offsets = [0, 128], sizes = [16, 128], strides = [1, 1]} : vector<16x512xf32> to vector<16x128xf32>
    %251 = arith.negf %250 : vector<16x128xf32>
    %252 = math.exp %251 : vector<16x128xf32>
    %cst_67 = arith.constant 1.000000e+00 : f32
    %253 = vector.broadcast %cst_67 : f32 to vector<16x128xf32>
    %254 = arith.addf %253, %252 : vector<16x128xf32>
    %255 = arith.divf %253, %254 : vector<16x128xf32>
    %256 = vector.extract_strided_slice %243 {offsets = [0, 256], sizes = [16, 128], strides = [1, 1]} : vector<16x512xf32> to vector<16x128xf32>
    %257 = math.tanh %256 : vector<16x128xf32>
    %258 = vector.extract_strided_slice %243 {offsets = [0, 384], sizes = [16, 128], strides = [1, 1]} : vector<16x512xf32> to vector<16x128xf32>
    %259 = arith.negf %258 : vector<16x128xf32>
    %260 = math.exp %259 : vector<16x128xf32>
    %cst_68 = arith.constant 1.000000e+00 : f32
    %261 = vector.broadcast %cst_68 : f32 to vector<16x128xf32>
    %262 = arith.addf %261, %260 : vector<16x128xf32>
    %263 = arith.divf %261, %262 : vector<16x128xf32>
    %264 = arith.mulf %255, %229 : vector<16x128xf32>
    %265 = arith.mulf %249, %257 : vector<16x128xf32>
    %266 = arith.addf %264, %265 : vector<16x128xf32>
    %267 = math.tanh %266 : vector<16x128xf32>
    %268 = arith.mulf %263, %267 : vector<16x128xf32>
    %269 = arith.truncf %268 : vector<16x128xf32> to vector<16x128xbf16>
    %c0_69 = arith.constant 0 : index
    %270 = arith.index_cast %238 : i32 to index
    %c0_70 = arith.constant 0 : index
    %271 = vector.load %arg6[%c0_69, %270, %c0_70] : memref<1x128x128xbf16, #tpu.memory_space<vmem>>, vector<1x16x128xbf16>
    %272 = vector.shape_cast %271 : vector<1x16x128xbf16> to vector<16x128xbf16>
    %273 = vector.shape_cast %269 : vector<16x128xbf16> to vector<1x16x128xbf16>
    tpu.vector_store %arg6[%c0_69, %270, %c0_70], %273 {strides = array<i32>} : memref<1x128x128xbf16, #tpu.memory_space<vmem>>, vector<1x16x128xbf16>,
    %c7_i32 = arith.constant 7 : i32
    %c16_i32_71 = arith.constant 16 : i32
    %274 = arith.muli %c7_i32, %c16_i32_71 : i32
    %275 = tpu.assume_multiple %274, 16 : i32
    %276 = arith.index_cast %275 : i32 to index
    %c0_72 = arith.constant 0 : index
    %277 = vector.load %arg7[%276, %c0_72] : memref<128x512xf32, #tpu.memory_space<vmem>>, vector<16x512xf32>
    %278 = arith.truncf %268 : vector<16x128xf32> to vector<16x128xbf16>
    %cst_73 = arith.constant dense<0.000000e+00> : vector<16x512xf32>
    %279 = tpu.matmul %278, %12, %cst_73 {dimension_numbers = #tpu.dot_dimension_numbers<[1], [0], [0], [1], [0, 0, 1, 1], [], []>} : vector<16x128xbf16>, vector<128x512xbf16>, vector<16x512xf32> -> vector<16x512xf32>
    %280 = arith.addf %277, %279 : vector<16x512xf32>
    %281 = vector.extract_strided_slice %280 {offsets = [0, 0], sizes = [16, 128], strides = [1, 1]} : vector<16x512xf32> to vector<16x128xf32>
    %282 = arith.negf %281 : vector<16x128xf32>
    %283 = math.exp %282 : vector<16x128xf32>
    %cst_74 = arith.constant 1.000000e+00 : f32
    %284 = vector.broadcast %cst_74 : f32 to vector<16x128xf32>
    %285 = arith.addf %284, %283 : vector<16x128xf32>
    %286 = arith.divf %284, %285 : vector<16x128xf32>
    %287 = vector.extract_strided_slice %280 {offsets = [0, 128], sizes = [16, 128], strides = [1, 1]} : vector<16x512xf32> to vector<16x128xf32>
    %288 = arith.negf %287 : vector<16x128xf32>
    %289 = math.exp %288 : vector<16x128xf32>
    %cst_75 = arith.constant 1.000000e+00 : f32
    %290 = vector.broadcast %cst_75 : f32 to vector<16x128xf32>
    %291 = arith.addf %290, %289 : vector<16x128xf32>
    %292 = arith.divf %290, %291 : vector<16x128xf32>
    %293 = vector.extract_strided_slice %280 {offsets = [0, 256], sizes = [16, 128], strides = [1, 1]} : vector<16x512xf32> to vector<16x128xf32>
    %294 = math.tanh %293 : vector<16x128xf32>
    %295 = vector.extract_strided_slice %280 {offsets = [0, 384], sizes = [16, 128], strides = [1, 1]} : vector<16x512xf32> to vector<16x128xf32>
    %296 = arith.negf %295 : vector<16x128xf32>
    %297 = math.exp %296 : vector<16x128xf32>
    %cst_76 = arith.constant 1.000000e+00 : f32
    %298 = vector.broadcast %cst_76 : f32 to vector<16x128xf32>
    %299 = arith.addf %298, %297 : vector<16x128xf32>
    %300 = arith.divf %298, %299 : vector<16x128xf32>
    %301 = arith.mulf %292, %266 : vector<16x128xf32>
    %302 = arith.mulf %286, %294 : vector<16x128xf32>
    %303 = arith.addf %301, %302 : vector<16x128xf32>
    %304 = math.tanh %303 : vector<16x128xf32>
    %305 = arith.mulf %300, %304 : vector<16x128xf32>
    %306 = arith.truncf %305 : vector<16x128xf32> to vector<16x128xbf16>
    %c0_77 = arith.constant 0 : index
    %307 = arith.index_cast %275 : i32 to index
    %c0_78 = arith.constant 0 : index
    %308 = vector.load %arg6[%c0_77, %307, %c0_78] : memref<1x128x128xbf16, #tpu.memory_space<vmem>>, vector<1x16x128xbf16>
    %309 = vector.shape_cast %308 : vector<1x16x128xbf16> to vector<16x128xbf16>
    %310 = vector.shape_cast %306 : vector<16x128xbf16> to vector<1x16x128xbf16>
    tpu.vector_store %arg6[%c0_77, %307, %c0_78], %310 {strides = array<i32>} : memref<1x128x128xbf16, #tpu.memory_space<vmem>>, vector<1x16x128xbf16>,
    %c8_i32 = arith.constant 8 : i32
    %c0_79 = arith.constant 0 : index
    %c0_80 = arith.constant 0 : index
    %311 = vector.load %arg8[%c0_79, %c0_80] : memref<16x128xf32, #tpu.memory_space<vmem>>, vector<16x128xf32>
    tpu.vector_store %arg8[%c0_79, %c0_80], %305 {strides = array<i32>} : memref<16x128xf32, #tpu.memory_space<vmem>>, vector<16x128xf32>,
    %c0_81 = arith.constant 0 : index
    %c0_82 = arith.constant 0 : index
    %312 = vector.load %arg9[%c0_81, %c0_82] : memref<16x128xf32, #tpu.memory_space<vmem>>, vector<16x128xf32>
    tpu.vector_store %arg9[%c0_81, %c0_82], %303 {strides = array<i32>} : memref<16x128xf32, #tpu.memory_space<vmem>>, vector<16x128xf32>,
    return
  }
  func.func @transform_0(%arg0: i32, %arg1: i32) -> (i32, i32, i32) {
    %c0_i32 = arith.constant 0 : i32
    %c0_i32_0 = arith.constant 0 : i32
    return %arg0, %arg1, %c0_i32 : i32, i32, i32
  }
  func.func @transform_1(%arg0: i32, %arg1: i32) -> (i32, i32) {
    %c0_i32 = arith.constant 0 : i32
    %c0_i32_0 = arith.constant 0 : i32
    %c0_i32_1 = arith.constant 0 : i32
    return %c0_i32, %c0_i32_0 : i32, i32
  }
  func.func @transform_2(%arg0: i32, %arg1: i32) -> (i32, i32) {
    %c0_i32 = arith.constant 0 : i32
    %c0_i32_0 = arith.constant 0 : i32
    %c0_i32_1 = arith.constant 0 : i32
    return %c0_i32, %c0_i32_0 : i32, i32
  }
  func.func @transform_3(%arg0: i32, %arg1: i32) -> (i32, i32) {
    %c0_i32 = arith.constant 0 : i32
    %c0_i32_0 = arith.constant 0 : i32
    %c0_i32_1 = arith.constant 0 : i32
    return %c0_i32, %c0_i32_0 : i32, i32
  }
  func.func @transform_4(%arg0: i32, %arg1: i32) -> (i32, i32, i32) {
    %c0_i32 = arith.constant 0 : i32
    %c0_i32_0 = arith.constant 0 : i32
    return %arg0, %arg1, %c0_i32 : i32, i32, i32
  }
}

</mosaic_0001>

<bundles_post_ra>
// kernel: reg_lstm_forward.5
= control target key start
LH: loop header
LB: loop body
LE: loop exit
PB: predicated region body
PF: predicated region fallthrough
CT: control target
= control target key end

     0   :  { %s799_s1 = inlined_call_operand.vmem [shape: bf16[128,128], index: 1, kind: input, shape index: {}]   ;;  %s800_s0 = inlined_call_operand.vmem [shape: bf16[128,128], index: 0, kind: input, shape index: {}]   ;;  %s801_s3 = inlined_call_operand.vmem [shape: bf16[128,128], index: 3, kind: input, shape index: {}]   ;;  %s802_s2 = inlined_call_operand.vmem [shape: f32[1,128], index: 2, kind: input, shape index: {}]   ;;  %s803_s4 = inlined_call_operand.vmem [shape: f32[1,128], index: 4, kind: input, shape index: {}]   ;;  %s804_s5 = inlined_call_operand.vmem [shape: f32[128,128], index: 5, kind: output, shape index: {}]  }
   0x1   :  { %v587_v0 = vld [vmem:[%s799_s1] sm:$0xff]   ;;  %v588_v1 = vld [vmem:[%s799_s1 + $0x8] sm:$0xff]   ;;  %v589_v2 = vld [vmem:[%s799_s1 + $0x10] sm:$0xff]  }
   0x2   :  { %523 = vmatprep.subr.bf16.mxu0 %v587_v0  ;;  %v590_v3 = vld [vmem:[%s799_s1 + $0x18] sm:$0xff]   ;;  %v595_v4 = vld [vmem:[%s800_s0] sm:$0xff]   ;;  %v592_v6 = vld [vmem:[%s799_s1 + $0x28] sm:$0xff]  }
   0x3   :  { %524 = vmatpush3.bf16.msra.mxu0 %v587_v0  ;;  %539 = vmatprep.mubr.bf16.mxu0 %v595_v4  ;;  %v591_v5 = vld [vmem:[%s799_s1 + $0x20] sm:$0xff]   ;;  %v604_v8 = vld [vmem:[%s801_s3 + $0x8] sm:$0xff]   ;;  %v593_v9 = vld [vmem:[%s799_s1 + $0x30] sm:$0xff]  }
   0x4   :  { %525 = vmatprep.subr.bf16.mxu0 %v588_v1  ;;  %v603_v7 = vld [vmem:[%s801_s3] sm:$0xff]   ;;  %v605_v10 = vld [vmem:[%s801_s3 + $0x10] sm:$0xff]   ;;  %v594_v11 = vld [vmem:[%s799_s1 + $0x38] sm:$0xff]  }
   0x5   :  { %555 = vmatprep.subr.bf16.mxu1 %v603_v7  ;;  %v596_v12 = vld [vmem:[%s800_s0 + $0x8] sm:$0xff]   ;;  %v597_v13 = vld [vmem:[%s800_s0 + $0x10] sm:$0xff]   ;;  %v598_v14 = vld [vmem:[%s800_s0 + $0x18] sm:$0xff]  }
   0x6   :  { %556 = vmatpush3.bf16.msra.mxu1 %v603_v7  ;;  %v599_v15 = vld [vmem:[%s800_s0 + $0x20] sm:$0xff]   ;;  %v600_v16 = vld [vmem:[%s800_s0 + $0x28] sm:$0xff]   ;;  %v601_v17 = vld [vmem:[%s800_s0 + $0x30] sm:$0xff]  }
   0x7   :  { %526 = vmatpush3.bf16.msra.mxu0 %v588_v1  ;;  %557 = vmatprep.subr.bf16.mxu1 %v604_v8  ;;  %v602_v18 = vld [vmem:[%s800_s0 + $0x38] sm:$0xff]   ;;  %v607_v20 = vld [vmem:[%s801_s3 + $0x20] sm:$0xff]   ;;  %v608_v21 = vld [vmem:[%s801_s3 + $0x28] sm:$0xff]  }
   0x8   :  { %527 = vmatprep.subr.bf16.mxu0 %v589_v2  ;;  %v606_v19 = vld [vmem:[%s801_s3 + $0x18] sm:$0xff]   ;;  %v609_v22 = vld [vmem:[%s801_s3 + $0x30] sm:$0xff]   ;;  %v465_v24 = vld [vmem:[%s802_s2] ss:$0 sm:$0xff] }
   0x9   :  { %v610_v23 = vld [vmem:[%s801_s3 + $0x38] sm:$0xff]  }
   0xa   :  { %558 = vmatpush3.bf16.msra.mxu1 %v604_v8 }
   0xb   :  { %528 = vmatpush3.bf16.msra.mxu0 %v589_v2  ;;  %559 = vmatprep.subr.bf16.mxu1 %v605_v10 }
   0xc   :  { %529 = vmatprep.subr.bf16.mxu0 %v590_v3 }
   0xe   :  { %560 = vmatpush3.bf16.msra.mxu1 %v605_v10 }
   0xf   :  { %530 = vmatpush3.bf16.msra.mxu0 %v590_v3  ;;  %561 = vmatprep.subr.bf16.mxu1 %v606_v19 }
  0x10   :  { %531 = vmatprep.subr.bf16.mxu0 %v591_v5 }
  0x12   :  { %562 = vmatpush3.bf16.msra.mxu1 %v606_v19 }
  0x13   :  { %532 = vmatpush3.bf16.msra.mxu0 %v591_v5  ;;  %563 = vmatprep.subr.bf16.mxu1 %v607_v20 }
  0x14   :  { %533 = vmatprep.subr.bf16.mxu0 %v592_v6 }
  0x16   :  { %564 = vmatpush3.bf16.msra.mxu1 %v607_v20 }
  0x17   :  { %534 = vmatpush3.bf16.msra.mxu0 %v592_v6  ;;  %565 = vmatprep.subr.bf16.mxu1 %v608_v21 }
  0x18   :  { %535 = vmatprep.subr.bf16.mxu0 %v593_v9 }
  0x1a   :  { %566 = vmatpush3.bf16.msra.mxu1 %v608_v21 }
  0x1b   :  { %536 = vmatpush3.bf16.msra.mxu0 %v593_v9  ;;  %567 = vmatprep.subr.bf16.mxu1 %v609_v22 }
  0x1c   :  { %537 = vmatprep.subr.bf16.mxu0 %v594_v11 }
  0x1e   :  { %568 = vmatpush3.bf16.msra.mxu1 %v609_v22 }
  0x1f   :  { %538 = vmatpush3.bf16.msra.mxu0 %v594_v11  ;;  %569 = vmatprep.subr.bf16.mxu1 %v610_v23 }
  0x22   :  { %540 = vmatmul.mubr.bf16.vlgmr.msra.gmra.mrb[0].mxu0 %v596_v12  ;;  %570 = vmatpush3.bf16.msra.mxu1 %v610_v23 }
  0x23   :  { %543 = vmatprep.mubr.bf16.mxu0 %v597_v13 }
  0x2a   :  { %544 = vmatmul.mubr.bf16.gmra.mrb[4].mxu0 %v598_v14 }
  0x2b   :  { %547 = vmatprep.mubr.bf16.mxu0 %v599_v15 }
  0x32   :  { %548 = vmatmul.mubr.bf16.gmra.mrb[8].mxu0 %v600_v16 }
  0x33   :  { %551 = vmatprep.mubr.bf16.mxu0 %v601_v17  ;;  %v482_v17 = vld [vmem:[%s803_s4] ss:$0 sm:$0xff] }
  0x3a   :  { %552 = vmatmul.mubr.bf16.gmra.mrb[12].mxu0 %v602_v18 }
  0xf5   :  { %v541_v25 = vpop.f32.mrb[0].mxu0 }
  0xf6   :  { %v199_v26 = vadd.f32 %v541_v25, %v465_v24  ;;  %v190_v27 = vpop.f32.mrb[1].mxu0 }
  0xf7   :  { %v191_v28 = vadd.f32 %v465_v24, %v190_v27  ;;  %v542_v29 = vpop.f32.mrb[2].mxu0 }
  0xf8   :  { %611 = vtanh.f32 %v199_v26  ;;  %v202_v30 = vadd.f32 %v542_v29, %v465_v24  ;;  %v193_v31 = vpop.f32.mrb[3].mxu0 }
  0xf9   :  { %613 = vtanh.f32 %v191_v28  ;;  %v194_v32 = vadd.f32 %v465_v24, %v193_v31 }
  0xfa   :  { %615 = vtanh.f32 %v202_v30 }
  0xfb   :  { %617 = vtanh.f32 %v194_v32 }
  0xfd   :  { %v545_v33 = vpop.f32.mrb[4].mxu0 }
  0xfe   :  { %v215_v34 = vadd.f32 %v545_v33, %v465_v24  ;;  %v206_v35 = vpop.f32.mrb[5].mxu0 }
  0xff   :  { %v207_v36 = vadd.f32 %v465_v24, %v206_v35  ;;  %v546_v37 = vpop.f32.mrb[6].mxu0 }
 0x100   :  { %619 = vtanh.f32 %v215_v34  ;;  %v218_v38 = vadd.f32 %v546_v37, %v465_v24  ;;  %v209_v39 = vpop.f32.mrb[7].mxu0 }
 0x101   :  { %621 = vtanh.f32 %v207_v36  ;;  %v210_v40 = vadd.f32 %v465_v24, %v209_v39 }
 0x102   :  { %v612_v41 = vpop.eup %611  ;;  %623 = vtanh.f32 %v218_v38 }
 0x103   :  { %v614_v42 = vpop.eup %613  ;;  %625 = vtanh.f32 %v210_v40 }
 0x104   :  { %v616_v43 = vpop.eup %615 }
 0x105   :  { %v618_v44 = vpop.eup %617  ;;  %v549_v45 = vpop.f32.mrb[8].mxu0  ;;  %v270_v46 = vpack.c.bf16 %v616_v43, %v612_v41 }
 0x106   :  { %v231_v47 = vadd.f32 %v549_v45, %v465_v24  ;;  %v222_v48 = vpop.f32.mrb[9].mxu0  ;;  %v269_v49 = vpack.c.bf16 %v618_v44, %v614_v42 }
 0x107   :  { %v223_v50 = vadd.f32 %v465_v24, %v222_v48  ;;  %v550_v51 = vpop.f32.mrb[10].mxu0 }
 0x108   :  { %627 = vtanh.f32 %v231_v47  ;;  %v234_v52 = vadd.f32 %v550_v51, %v465_v24  ;;  %v225_v53 = vpop.f32.mrb[11].mxu0  ;;  %571 = vmatprep.mubr.bf16.mxu1 %v269_v49 }
 0x109   :  { %629 = vtanh.f32 %v223_v50  ;;  %v226_v54 = vadd.f32 %v465_v24, %v225_v53  ;;  %572 = vmatmul.mubr.bf16.vlgmr.msra.gmra.mrb[0].mxu1 %v270_v46 }
 0x10a   :  { %v620_v55 = vpop.eup %619  ;;  %631 = vtanh.f32 %v234_v52 }
 0x10b   :  { %v622_v56 = vpop.eup %621  ;;  %633 = vtanh.f32 %v226_v54 }
 0x10c   :  { %v624_v57 = vpop.eup %623 }
 0x10d   :  { %v626_v58 = vpop.eup %625  ;;  %v553_v59 = vpop.f32.mrb[12].mxu0  ;;  %v272_v60 = vpack.c.bf16 %v624_v57, %v620_v55 }
 0x10e   :  { %v247_v61 = vadd.f32 %v553_v59, %v465_v24  ;;  %v238_v62 = vpop.f32.mrb[13].mxu0  ;;  %v271_v63 = vpack.c.bf16 %v626_v58, %v622_v56 }
 0x10f   :  { %v239_v0 = vadd.f32 %v465_v24, %v238_v62  ;;  %v554_v1 = vpop.f32.mrb[14].mxu0 }
 0x110   :  { %635 = vtanh.f32 %v247_v61  ;;  %v250_v2 = vadd.f32 %v554_v1, %v465_v24  ;;  %v241_v3 = vpop.f32.mrb[15].mxu0  ;;  %575 = vmatprep.mubr.bf16.mxu1 %v271_v63 }
 0x111   :  { %637 = vtanh.f32 %v239_v0  ;;  %v242_v4 = vadd.f32 %v465_v24, %v241_v3  ;;  %576 = vmatmul.mubr.bf16.gmra.mrb[4].mxu1 %v272_v60 }
 0x112   :  { %v628_v5 = vpop.eup %627  ;;  %639 = vtanh.f32 %v250_v2 }
 0x113   :  { %v630_v6 = vpop.eup %629  ;;  %641 = vtanh.f32 %v242_v4 }
 0x114   :  { %v632_v7 = vpop.eup %631 }
 0x115   :  { %v634_v8 = vpop.eup %633  ;;  %v274_v9 = vpack.c.bf16 %v632_v7, %v628_v5 }
 0x116   :  { %v273_v10 = vpack.c.bf16 %v634_v8, %v630_v6 }
 0x118   :  { %579 = vmatprep.mubr.bf16.mxu1 %v273_v10 }
 0x119   :  { %580 = vmatmul.mubr.bf16.gmra.mrb[8].mxu1 %v274_v9 }
 0x11a   :  { %v636_v11 = vpop.eup %635 }
 0x11b   :  { %v638_v12 = vpop.eup %637 }
 0x11c   :  { %v640_v13 = vpop.eup %639 }
 0x11d   :  { %v642_v14 = vpop.eup %641  ;;  %v276_v15 = vpack.c.bf16 %v640_v13, %v636_v11 }
 0x11e   :  { %v275_v16 = vpack.c.bf16 %v642_v14, %v638_v12 }
 0x120   :  { %583 = vmatprep.mubr.bf16.mxu1 %v275_v16 }
 0x121   :  { %584 = vmatmul.mubr.bf16.gmra.mrb[12].mxu1 %v276_v15 }
 0x1dc   :  { %v573_v18 = vpop.f32.mrb[0].mxu1 }
 0x1dd   :  { %v391_v19 = vadd.f32 %v573_v18, %v482_v17  ;;  %v382_v20 = vpop.f32.mrb[1].mxu1 }
 0x1de   :  { %v383_v21 = vadd.f32 %v482_v17, %v382_v20  ;;  %v574_v22 = vpop.f32.mrb[2].mxu1 }
 0x1df   :  { %447 = vst [vmem:[%s804_s5 + $0x10] sm:$0xff] %v391_v19  ;;  %v394_v23 = vadd.f32 %v574_v22, %v482_v17  ;;  %v385_v24 = vpop.f32.mrb[3].mxu1 }
 0x1e0   :  { %445 = vst [vmem:[%s804_s5] sm:$0xff] %v383_v21  ;;  %v386_v25 = vadd.f32 %v482_v17, %v385_v24 }
 0x1e1   :  { %448 = vst [vmem:[%s804_s5 + $0x18] sm:$0xff] %v394_v23 }
 0x1e2   :  { %446 = vst [vmem:[%s804_s5 + $0x8] sm:$0xff] %v386_v25 }
 0x1e4   :  { %v577_v26 = vpop.f32.mrb[4].mxu1 }
 0x1e5   :  { %v407_v27 = vadd.f32 %v577_v26, %v482_v17  ;;  %v398_v28 = vpop.f32.mrb[5].mxu1 }
 0x1e6   :  { %v399_v29 = vadd.f32 %v482_v17, %v398_v28  ;;  %v578_v30 = vpop.f32.mrb[6].mxu1 }
 0x1e7   :  { %451 = vst [vmem:[%s804_s5 + $0x30] sm:$0xff] %v407_v27  ;;  %v410_v31 = vadd.f32 %v578_v30, %v482_v17  ;;  %v401_v32 = vpop.f32.mrb[7].mxu1 }
 0x1e8   :  { %449 = vst [vmem:[%s804_s5 + $0x20] sm:$0xff] %v399_v29  ;;  %v402_v33 = vadd.f32 %v482_v17, %v401_v32 }
 0x1e9   :  { %452 = vst [vmem:[%s804_s5 + $0x38] sm:$0xff] %v410_v31 }
 0x1ea   :  { %450 = vst [vmem:[%s804_s5 + $0x28] sm:$0xff] %v402_v33 }
 0x1ec   :  { %v581_v34 = vpop.f32.mrb[8].mxu1 }
 0x1ed   :  { %v423_v35 = vadd.f32 %v581_v34, %v482_v17  ;;  %v414_v36 = vpop.f32.mrb[9].mxu1 }
 0x1ee   :  { %v415_v37 = vadd.f32 %v482_v17, %v414_v36  ;;  %v582_v38 = vpop.f32.mrb[10].mxu1 }
 0x1ef   :  { %455 = vst [vmem:[%s804_s5 + $0x50] sm:$0xff] %v423_v35  ;;  %v426_v39 = vadd.f32 %v582_v38, %v482_v17  ;;  %v417_v40 = vpop.f32.mrb[11].mxu1 }
 0x1f0   :  { %453 = vst [vmem:[%s804_s5 + $0x40] sm:$0xff] %v415_v37  ;;  %v418_v41 = vadd.f32 %v482_v17, %v417_v40 }
 0x1f1   :  { %456 = vst [vmem:[%s804_s5 + $0x58] sm:$0xff] %v426_v39 }
 0x1f2   :  { %454 = vst [vmem:[%s804_s5 + $0x48] sm:$0xff] %v418_v41 }
 0x1f4   :  { %v585_v42 = vpop.f32.mrb[12].mxu1 }
 0x1f5   :  { %v439_v43 = vadd.f32 %v585_v42, %v482_v17  ;;  %v430_v44 = vpop.f32.mrb[13].mxu1 }
 0x1f6   :  { %v431_v45 = vadd.f32 %v482_v17, %v430_v44  ;;  %v586_v46 = vpop.f32.mrb[14].mxu1 }
 0x1f7   :  { %459 = vst [vmem:[%s804_s5 + $0x70] sm:$0xff] %v439_v43  ;;  %v442_v47 = vadd.f32 %v586_v46, %v482_v17  ;;  %v433_v48 = vpop.f32.mrb[15].mxu1 }
 0x1f8   :  { %457 = vst [vmem:[%s804_s5 + $0x60] sm:$0xff] %v431_v45  ;;  %v434_v49 = vadd.f32 %v482_v17, %v433_v48 }
 0x1f9   :  { %460 = vst [vmem:[%s804_s5 + $0x78] sm:$0xff] %v442_v47 }
 0x1fa   :  { %458 = vst [vmem:[%s804_s5 + $0x68] sm:$0xff] %v434_v49 }

// kernel: reg_lstm_forward.4
= control target key start
LH: loop header
LB: loop body
LE: loop exit
PB: predicated region body
PF: predicated region fallthrough
CT: control target
= control target key end

     0   :  { %v2852_v1 = vmov 0   ;;  %s3762_s1 = inlined_call_operand.vmem [shape: bf16[128,512], index: 1, kind: input, shape index: {}]   ;;  %s3763_s0 = inlined_call_operand.vmem [shape: bf16[1,128,128], index: 0, kind: input, shape index: {}]   ;;  %s3764_s3 = inlined_call_operand.vmem [shape: bf16[128,512], index: 3, kind: input, shape index: {}]   ;;  %s3765_s2 = inlined_call_operand.vmem [shape: f32[1,512], index: 2, kind: input, shape index: {}]   ;;  %s3766_s4 = inlined_call_operand.vmem [shape: bf16[1,128,128], index: 4, kind: output, shape index: {}]  }
   0x1   :  { %v2460_v0 = vld [vmem:[%s3762_s1 + $0x4] ss:$16 sps:$4 sm:$0xff]   ;;  %336 = vmatprep.mubr.bf16.mxu0 %v2852_v1  ;;  %449 = vmatprep.mubr.bf16.mxu1 %v2852_v1  ;;  %v2462_v2 = vld [vmem:[%s3762_s1 + $0xc] ss:$16 sps:$4 sm:$0xff]   ;;  %v2464_v3 = vld [vmem:[%s3762_s1] ss:$16 sps:$4 sm:$0xff]  }
   0x2   :  { %304 = vmatprep.subr.bf16.mxu0 %v2460_v0  ;;  %v2465_v4 = vld [vmem:[%s3762_s1 + $0x8] ss:$16 sps:$4 sm:$0xff]   ;;  %417 = vmatprep.subr.bf16.mxu1 %v2462_v2  ;;  %v2466_v5 = vld [vmem:[%s3762_s1 + $0x24] ss:$16 sps:$4 sm:$0xff]   ;;  %v2468_v6 = vld [vmem:[%s3762_s1 + $0x2c] ss:$16 sps:$4 sm:$0xff]  }
   0x3   :  { %305 = vmatpush1.bf16.msra.mxu0 %v2464_v3  ;;  %418 = vmatpush1.bf16.msra.mxu1 %v2465_v4  ;;  %v2470_v7 = vld [vmem:[%s3762_s1 + $0x20] ss:$16 sps:$4 sm:$0xff]   ;;  %v2471_v8 = vld [vmem:[%s3762_s1 + $0x28] ss:$16 sps:$4 sm:$0xff]   ;;  %v2472_v9 = vld [vmem:[%s3762_s1 + $0x44] ss:$16 sps:$4 sm:$0xff]  }
   0x4   :  { %306 = vmatprep.subr.bf16.mxu0 %v2466_v5  ;;  %419 = vmatprep.subr.bf16.mxu1 %v2468_v6  ;;  %v2474_v10 = vld [vmem:[%s3762_s1 + $0x4c] ss:$16 sps:$4 sm:$0xff]   ;;  %v2476_v11 = vld [vmem:[%s3762_s1 + $0x40] ss:$16 sps:$4 sm:$0xff]   ;;  %v2477_v12 = vld [vmem:[%s3762_s1 + $0x48] ss:$16 sps:$4 sm:$0xff]  }
   0x5   :  { %v2478_v13 = vld [vmem:[%s3762_s1 + $0x64] ss:$16 sps:$4 sm:$0xff]   ;;  %v2480_v14 = vld [vmem:[%s3762_s1 + $0x6c] ss:$16 sps:$4 sm:$0xff]   ;;  %v2482_v15 = vld [vmem:[%s3762_s1 + $0x60] ss:$16 sps:$4 sm:$0xff]  }
   0x6   :  { %v2483_v16 = vld [vmem:[%s3762_s1 + $0x68] ss:$16 sps:$4 sm:$0xff]   ;;  %v2484_v17 = vld [vmem:[%s3762_s1 + $0x84] ss:$16 sps:$4 sm:$0xff]   ;;  %v2486_v18 = vld [vmem:[%s3762_s1 + $0x8c] ss:$16 sps:$4 sm:$0xff]  }
   0x7   :  { %307 = vmatpush1.bf16.msra.mxu0 %v2470_v7  ;;  %420 = vmatpush1.bf16.msra.mxu1 %v2471_v8  ;;  %v2488_v19 = vld [vmem:[%s3762_s1 + $0x80] ss:$16 sps:$4 sm:$0xff]   ;;  %v2489_v20 = vld [vmem:[%s3762_s1 + $0x88] ss:$16 sps:$4 sm:$0xff]   ;;  %v2490_v21 = vld [vmem:[%s3762_s1 + $0xa4] ss:$16 sps:$4 sm:$0xff]  }
   0x8   :  { %308 = vmatprep.subr.bf16.mxu0 %v2472_v9  ;;  %421 = vmatprep.subr.bf16.mxu1 %v2474_v10  ;;  %v2492_v22 = vld [vmem:[%s3762_s1 + $0xac] ss:$16 sps:$4 sm:$0xff]   ;;  %v2494_v23 = vld [vmem:[%s3762_s1 + $0xa0] ss:$16 sps:$4 sm:$0xff]   ;;  %v2495_v24 = vld [vmem:[%s3762_s1 + $0xa8] ss:$16 sps:$4 sm:$0xff]  }
   0x9   :  { %v2496_v25 = vld [vmem:[%s3762_s1 + $0xc4] ss:$16 sps:$4 sm:$0xff]   ;;  %v2498_v26 = vld [vmem:[%s3762_s1 + $0xcc] ss:$16 sps:$4 sm:$0xff]   ;;  %v2500_v27 = vld [vmem:[%s3762_s1 + $0xc0] ss:$16 sps:$4 sm:$0xff]  }
   0xa   :  { %v2501_v28 = vld [vmem:[%s3762_s1 + $0xc8] ss:$16 sps:$4 sm:$0xff]   ;;  %v2502_v29 = vld [vmem:[%s3762_s1 + $0xe4] ss:$16 sps:$4 sm:$0xff]   ;;  %v2504_v30 = vld [vmem:[%s3762_s1 + $0xec] ss:$16 sps:$4 sm:$0xff]  }
   0xb   :  { %309 = vmatpush1.bf16.msra.mxu0 %v2476_v11  ;;  %422 = vmatpush1.bf16.msra.mxu1 %v2477_v12  ;;  %v2506_v31 = vld [vmem:[%s3762_s1 + $0xe0] ss:$16 sps:$4 sm:$0xff]   ;;  %v2507_v32 = vld [vmem:[%s3762_s1 + $0xe8] ss:$16 sps:$4 sm:$0xff]   ;;  %v2980_v33 = vld [vmem:[%s3764_s3 + $0x4] ss:$16 sps:$4 sm:$0xff]   ;;  %v76_v11 = vlaneseq }
   0xc   :  { %310 = vmatprep.subr.bf16.mxu0 %v2478_v13  ;;  %423 = vmatprep.subr.bf16.mxu1 %v2480_v14  ;;  %v2985_v34 = vld [vmem:[%s3764_s3 + $0xc] ss:$16 sps:$4 sm:$0xff]   ;;  %v2508_v35 = vld [vmem:[%s3763_s0] sm:$0xff]   ;;  %v3005_v38 = vld [vmem:[%s3764_s3 + $0x8] ss:$16 sps:$4 sm:$0xff]   ;;  %v2853_v10 = vmov 0.0|0.0  }
   0xd   :  { %v2993_v36 = vld [vmem:[%s3764_s3] ss:$16 sps:$4 sm:$0xff]   ;;  %v2999_v37 = vld [vmem:[%s3764_s3 + $0x24] ss:$16 sps:$4 sm:$0xff]   ;;  %v3010_v39 = vld [vmem:[%s3764_s3 + $0x2c] ss:$16 sps:$4 sm:$0xff]  }
   0xe   :  { %v3017_v40 = vld [vmem:[%s3764_s3 + $0x20] ss:$16 sps:$4 sm:$0xff]   ;;  %v3024_v41 = vld [vmem:[%s3764_s3 + $0x44] ss:$16 sps:$4 sm:$0xff]   ;;  %v3030_v42 = vld [vmem:[%s3764_s3 + $0x28] ss:$16 sps:$4 sm:$0xff]  }
   0xf   :  { %311 = vmatpush1.bf16.msra.mxu0 %v2482_v15  ;;  %424 = vmatpush1.bf16.msra.mxu1 %v2483_v16  ;;  %v2512_v43 = vld [vmem:[%s3763_s0 + $0x8] sm:$0xff]   ;;  %v3040_v44 = vld [vmem:[%s3764_s3 + $0x40] ss:$16 sps:$4 sm:$0xff]   ;;  %v3045_v45 = vld [vmem:[%s3764_s3 + $0x64] ss:$16 sps:$4 sm:$0xff]   ;;  %v77_v12 = vshrl.u32 %v76_v11, 7 }
  0x10   :  { %312 = vmatprep.subr.bf16.mxu0 %v2484_v17  ;;  %425 = vmatprep.subr.bf16.mxu1 %v2486_v18  ;;  %v3051_v46 = vld [vmem:[%s3764_s3 + $0x4c] ss:$16 sps:$4 sm:$0xff]   ;;  %v3057_v47 = vld [vmem:[%s3764_s3 + $0x48] ss:$16 sps:$4 sm:$0xff]   ;;  %v3070_v49 = vld [vmem:[%s3764_s3 + $0x60] ss:$16 sps:$4 sm:$0xff]  }
  0x11   :  { %v3062_v48 = vld [vmem:[%s3764_s3 + $0x6c] ss:$16 sps:$4 sm:$0xff]   ;;  %v3076_v50 = vld [vmem:[%s3764_s3 + $0x84] ss:$16 sps:$4 sm:$0xff]   ;;  %v3083_v51 = vld [vmem:[%s3764_s3 + $0x68] ss:$16 sps:$4 sm:$0xff]  }
  0x12   :  { %v2518_v52 = vld [vmem:[%s3763_s0 + $0x10] sm:$0xff]   ;;  %v3098_v54 = vld [vmem:[%s3764_s3 + $0x8c] ss:$16 sps:$4 sm:$0xff]   ;;  %v3110_v56 = vld [vmem:[%s3764_s3 + $0x88] ss:$16 sps:$4 sm:$0xff]   ;;  %v78_v13 = vsub.s32 0, %v77_v12 }
  0x13   :  { %313 = vmatpush1.bf16.msra.mxu0 %v2488_v19  ;;  %426 = vmatpush1.bf16.msra.mxu1 %v2489_v20  ;;  %v3092_v53 = vld [vmem:[%s3764_s3 + $0x80] ss:$16 sps:$4 sm:$0xff]   ;;  %v3104_v55 = vld [vmem:[%s3764_s3 + $0xa4] ss:$16 sps:$4 sm:$0xff]   ;;  %v3115_v57 = vld [vmem:[%s3764_s3 + $0xac] ss:$16 sps:$4 sm:$0xff]  }
  0x14   :  { %314 = vmatprep.subr.bf16.mxu0 %v2490_v21  ;;  %427 = vmatprep.subr.bf16.mxu1 %v2492_v22  ;;  %v3123_v58 = vld [vmem:[%s3764_s3 + $0xa0] ss:$16 sps:$4 sm:$0xff]   ;;  %v3130_v59 = vld [vmem:[%s3764_s3 + $0xc4] ss:$16 sps:$4 sm:$0xff]   ;;  %v3136_v60 = vld [vmem:[%s3764_s3 + $0xa8] ss:$16 sps:$4 sm:$0xff]  }
  0x15   :  { %v2525_v61 = vld [vmem:[%s3763_s0 + $0x18] sm:$0xff]   ;;  %v3146_v62 = vld [vmem:[%s3764_s3 + $0xc0] ss:$16 sps:$4 sm:$0xff]   ;;  %v3158_v0 = vld [vmem:[%s3764_s3 + $0xe4] ss:$16 sps:$4 sm:$0xff]   ;;  %v82_v15 = vsub.s32 1, %v77_v12 }
  0x16   :  { %v3151_v63 = vld [vmem:[%s3764_s3 + $0xcc] ss:$16 sps:$4 sm:$0xff]   ;;  %v3163_v2 = vld [vmem:[%s3764_s3 + $0xc8] ss:$16 sps:$4 sm:$0xff]   ;;  %v3177_v4 = vld [vmem:[%s3764_s3 + $0xe0] ss:$16 sps:$4 sm:$0xff]  }
  0x17   :  { %315 = vmatpush1.bf16.msra.mxu0 %v2494_v23  ;;  %428 = vmatpush1.bf16.msra.mxu1 %v2495_v24  ;;  %v3168_v3 = vld [vmem:[%s3764_s3 + $0xec] ss:$16 sps:$4 sm:$0xff]   ;;  %v3184_v5 = vld [vmem:[%s3764_s3 + $0xe8] ss:$16 sps:$4 sm:$0xff]   ;;  %v2532_v6 = vld [vmem:[%s3763_s0 + $0x20] sm:$0xff]   ;;  %v90_v20 = vsub.s32 3, %v77_v12 }
  0x18   :  { %316 = vmatprep.subr.bf16.mxu0 %v2496_v25  ;;  %429 = vmatprep.subr.bf16.mxu1 %v2498_v26  ;;  %v2539_v7 = vld [vmem:[%s3763_s0 + $0x28] sm:$0xff]   ;;  %v2546_v8 = vld [vmem:[%s3763_s0 + $0x30] sm:$0xff]   ;;  %v2554_v9 = vld [vmem:[%s3763_s0 + $0x38] sm:$0xff]  }
  0x19   :  { %v74_v14 = vld [vmem:[%s3765_s2] sm:$0xf] }
  0x1a   :  { %v3248_v16 = vrot.slane %v74_v14, %v78_v13  ;;  %v3250_v17 = vrot.slane %v74_v14, %v82_v15 }
  0x1b   :  { %317 = vmatpush1.bf16.msra.mxu0 %v2500_v27  ;;  %430 = vmatpush1.bf16.msra.mxu1 %v2501_v28  ;;  %v86_v28 = vsub.s32 2, %v77_v12 }
  0x1c   :  { %318 = vmatprep.subr.bf16.mxu0 %v2502_v29  ;;  %431 = vmatprep.subr.bf16.mxu1 %v2504_v30 }
  0x1f   :  { %319 = vmatpush1.bf16.msra.mxu0 %v2506_v31  ;;  %432 = vmatpush1.bf16.msra.mxu1 %v2507_v32 }
  0x20   :  { %802 = vmatprep.subr.bf16.mxu0 %v2980_v33  ;;  %845 = vmatprep.subr.bf16.mxu1 %v2985_v34 }
  0x22   :  { %337 = vmatmul.mubr.bf16.vlgmr.msra.gmra.mrb[0].mxu0 %v2508_v35  ;;  %450 = vmatmul.mubr.bf16.vlgmr.msra.gmra.mrb[0].mxu1 %v2508_v35  ;;  %v3255_v35 = vrot.slane %v74_v14, %v90_v20 }
  0x23   :  { %803 = vmatpush1.bf16.msra.mxu0 %v2993_v36  ;;  %346 = vmatprep.mubr.bf16.mxu0 %v2852_v1 }
  0x24   :  { %459 = vmatprep.mubr.bf16.mxu1 %v2852_v1  ;;  %804 = vmatprep.subr.bf16.mxu0 %v2999_v37 }
  0x25   :  { %846 = vmatpush1.bf16.msra.mxu1 %v3005_v38 }
  0x26   :  { %847 = vmatprep.subr.bf16.mxu1 %v3010_v39 }
  0x27   :  { %805 = vmatpush1.bf16.msra.mxu0 %v3017_v40 }
  0x28   :  { %806 = vmatprep.subr.bf16.mxu0 %v3024_v41 }
  0x29   :  { %848 = vmatpush1.bf16.msra.mxu1 %v3030_v42 }
  0x2a   :  { %347 = vmatmul.mubr.bf16.gmra.mrb[4].mxu0 %v2512_v43  ;;  %460 = vmatmul.mubr.bf16.gmra.mrb[4].mxu1 %v2512_v43 }
  0x2b   :  { %356 = vmatprep.mubr.bf16.mxu0 %v2852_v1  ;;  %469 = vmatprep.mubr.bf16.mxu1 %v2852_v1 }
  0x2c   :  { %807 = vmatpush1.bf16.msra.mxu0 %v3040_v44  ;;  %849 = vmatprep.subr.bf16.mxu1 %v3051_v46 }
  0x2d   :  { %808 = vmatprep.subr.bf16.mxu0 %v3045_v45  ;;  %850 = vmatpush1.bf16.msra.mxu1 %v3057_v47 }
  0x2e   :  { %851 = vmatprep.subr.bf16.mxu1 %v3062_v48 }
  0x30   :  { %809 = vmatpush1.bf16.msra.mxu0 %v3070_v49 }
  0x31   :  { %810 = vmatprep.subr.bf16.mxu0 %v3076_v50  ;;  %852 = vmatpush1.bf16.msra.mxu1 %v3083_v51 }
  0x32   :  { %357 = vmatmul.mubr.bf16.gmra.mrb[8].mxu0 %v2518_v52  ;;  %470 = vmatmul.mubr.bf16.gmra.mrb[8].mxu1 %v2518_v52 }
  0x33   :  { %366 = vmatprep.mubr.bf16.mxu0 %v2852_v1  ;;  %479 = vmatprep.mubr.bf16.mxu1 %v2852_v1 }
  0x34   :  { %811 = vmatpush1.bf16.msra.mxu0 %v3092_v53  ;;  %853 = vmatprep.subr.bf16.mxu1 %v3098_v54 }
  0x35   :  { %812 = vmatprep.subr.bf16.mxu0 %v3104_v55  ;;  %854 = vmatpush1.bf16.msra.mxu1 %v3110_v56 }
  0x36   :  { %855 = vmatprep.subr.bf16.mxu1 %v3115_v57 }
  0x38   :  { %813 = vmatpush1.bf16.msra.mxu0 %v3123_v58 }
  0x39   :  { %814 = vmatprep.subr.bf16.mxu0 %v3130_v59  ;;  %856 = vmatpush1.bf16.msra.mxu1 %v3136_v60 }
  0x3a   :  { %367 = vmatmul.mubr.bf16.gmra.mrb[12].mxu0 %v2525_v61  ;;  %480 = vmatmul.mubr.bf16.gmra.mrb[12].mxu1 %v2525_v61 }
  0x3b   :  { %376 = vmatprep.mubr.bf16.mxu0 %v2852_v1  ;;  %489 = vmatprep.mubr.bf16.mxu1 %v2852_v1 }
  0x3c   :  { %815 = vmatpush1.bf16.msra.mxu0 %v3146_v62  ;;  %857 = vmatprep.subr.bf16.mxu1 %v3151_v63 }
  0x3d   :  { %816 = vmatprep.subr.bf16.mxu0 %v3158_v0  ;;  %858 = vmatpush1.bf16.msra.mxu1 %v3163_v2 }
  0x3e   :  { %859 = vmatprep.subr.bf16.mxu1 %v3168_v3 }
  0x40   :  { %817 = vmatpush1.bf16.msra.mxu0 %v3177_v4 }
  0x41   :  { %860 = vmatpush1.bf16.msra.mxu1 %v3184_v5  ;;  %965 = vmatprep.subr.bf16.mxu0 %v2980_v33 }
  0x42   :  { %377 = vmatmul.mubr.bf16.gmra.mrb[16].mxu0 %v2532_v6  ;;  %490 = vmatmul.mubr.bf16.gmra.mrb[16].mxu1 %v2532_v6  ;;  %v3258_v6 = vrot.slane %v74_v14, %v86_v28 }
  0x43   :  { %386 = vmatprep.mubr.bf16.mxu0 %v2852_v1  ;;  %499 = vmatprep.mubr.bf16.mxu1 %v2852_v1 }
  0x44   :  { %1008 = vmatprep.subr.bf16.mxu1 %v2985_v34 }
  0x4a   :  { %387 = vmatmul.mubr.bf16.gmra.mrb[20].mxu0 %v2539_v7  ;;  %500 = vmatmul.mubr.bf16.gmra.mrb[20].mxu1 %v2539_v7 }
  0x4b   :  { %396 = vmatprep.mubr.bf16.mxu0 %v2852_v1  ;;  %509 = vmatprep.mubr.bf16.mxu1 %v2852_v1 }
  0x52   :  { %397 = vmatmul.mubr.bf16.gmra.mrb[24].mxu0 %v2546_v8  ;;  %510 = vmatmul.mubr.bf16.gmra.mrb[24].mxu1 %v2546_v8 }
  0x53   :  { %406 = vmatprep.mubr.bf16.mxu0 %v2852_v1  ;;  %519 = vmatprep.mubr.bf16.mxu1 %v2852_v1 }
  0x5a   :  { %407 = vmatmul.mubr.bf16.gmra.mrb[28].mxu0 %v2554_v9  ;;  %520 = vmatmul.mubr.bf16.gmra.mrb[28].mxu1 %v2554_v9 }
  0x5b   :  { %834 = vmatprep.mubr.bf16.mxu0 %v2852_v1  ;;  %877 = vmatprep.mubr.bf16.mxu1 %v2852_v1 }
  0x62   :  { %835 = vmatmul.mubr.bf16.vlgmr.msra.gmra.mrb[0].mxu0 %v2853_v10  ;;  %878 = vmatmul.mubr.bf16.vlgmr.msra.gmra.mrb[0].mxu1 %v2853_v10 }
  0x63   :  { %966 = vmatpush1.bf16.msra.mxu0 %v2993_v36  ;;  %1009 = vmatpush1.bf16.msra.mxu1 %v3005_v38 }
  0x64   :  { %967 = vmatprep.subr.bf16.mxu0 %v2999_v37  ;;  %1010 = vmatprep.subr.bf16.mxu1 %v3010_v39 }
  0x65   :  { %997 = vmatprep.mubr.bf16.mxu0 %v2852_v1  ;;  %1040 = vmatprep.mubr.bf16.mxu1 %v2852_v1 }
  0x67   :  { %968 = vmatpush1.bf16.msra.mxu0 %v3017_v40  ;;  %1011 = vmatpush1.bf16.msra.mxu1 %v3030_v42 }
  0x68   :  { %969 = vmatprep.subr.bf16.mxu0 %v3024_v41  ;;  %1012 = vmatprep.subr.bf16.mxu1 %v3051_v46 }
  0x6b   :  { %970 = vmatpush1.bf16.msra.mxu0 %v3040_v44  ;;  %1013 = vmatpush1.bf16.msra.mxu1 %v3057_v47 }
  0x6c   :  { %971 = vmatprep.subr.bf16.mxu0 %v3045_v45  ;;  %1014 = vmatprep.subr.bf16.mxu1 %v3062_v48 }
  0x6f   :  { %972 = vmatpush1.bf16.msra.mxu0 %v3070_v49  ;;  %1015 = vmatpush1.bf16.msra.mxu1 %v3083_v51 }
  0x70   :  { %973 = vmatprep.subr.bf16.mxu0 %v3076_v50  ;;  %1016 = vmatprep.subr.bf16.mxu1 %v3098_v54 }
  0x73   :  { %974 = vmatpush1.bf16.msra.mxu0 %v3092_v53  ;;  %1017 = vmatpush1.bf16.msra.mxu1 %v3110_v56 }
  0x74   :  { %975 = vmatprep.subr.bf16.mxu0 %v3104_v55  ;;  %1018 = vmatprep.subr.bf16.mxu1 %v3115_v57 }
  0x77   :  { %976 = vmatpush1.bf16.msra.mxu0 %v3123_v58  ;;  %1019 = vmatpush1.bf16.msra.mxu1 %v3136_v60 }
  0x78   :  { %977 = vmatprep.subr.bf16.mxu0 %v3130_v59  ;;  %1020 = vmatprep.subr.bf16.mxu1 %v3151_v63 }
  0x7b   :  { %978 = vmatpush1.bf16.msra.mxu0 %v3146_v62  ;;  %1021 = vmatpush1.bf16.msra.mxu1 %v3163_v2 }
  0x7c   :  { %979 = vmatprep.subr.bf16.mxu0 %v3158_v0  ;;  %1022 = vmatprep.subr.bf16.mxu1 %v3168_v3 }
  0x7f   :  { %980 = vmatpush1.bf16.msra.mxu0 %v3177_v4  ;;  %1023 = vmatpush1.bf16.msra.mxu1 %v3184_v5 }
  0x80   :  { %1129 = vmatprep.subr.bf16.mxu0 %v2980_v33  ;;  %1172 = vmatprep.subr.bf16.mxu1 %v2985_v34 }
 0x135   :  { %v836_v18 = vpop.f32.mrb[0].mxu0  ;;  %v879_v19 = vpop.f32.mrb[0].mxu1 }
 0x136   :  { %v2330_v21 = vadd.f32 %v836_v18, %v3248_v16  ;;  %v838_v22 = vpop.f32.mrb[1].mxu0  ;;  %v881_v23 = vpop.f32.mrb[1].mxu1  ;;  %v2362_v8 = vadd.f32 %v879_v19, %v3258_v6 }
 0x137   :  { %v2331_v24 = vadd.f32 %v838_v22, %v3250_v17  ;;  %v840_v25 = vpop.f32.mrb[2].mxu0  ;;  %v883_v26 = vpop.f32.mrb[2].mxu1  ;;  %v2363_v7 = vadd.f32 %v881_v23, %v3255_v35 }
 0x138   :  { %v2189_v27 = vmul.f32 -1.442695, %v2330_v21  ;;  %v2332_v29 = vadd.f32 %v840_v25, %v3248_v16  ;;  %v842_v30 = vpop.f32.mrb[3].mxu0  ;;  %v885_v31 = vpop.f32.mrb[3].mxu1  ;;  %v2364_v11 = vadd.f32 %v883_v26, %v3258_v6 }
 0x139   :  { %v2191_v32 = vmul.f32 -1.442695, %v2331_v24  ;;  %v2333_v43 = vadd.f32 %v842_v30, %v3250_v17  ;;  %v2193_v9 = vmul.f32 -1.442695, %v2363_v7  ;;  %v2365_v10 = vadd.f32 %v885_v31, %v3255_v35 }
 0x13a   :  { %2564 = vpow2.f32 %v2189_v27  ;;  %v2190_v52 = vmul.f32 -1.442695, %v2332_v29 }
 0x13b   :  { %2566 = vpow2.f32 %v2191_v32  ;;  %v2192_v61 = vmul.f32 -1.442695, %v2333_v43  ;;  %v2194_v18 = vmul.f32 -1.442695, %v2365_v10 }
 0x13c   :  { %2568 = vpow2.f32 %v2190_v52 }
 0x13d   :  { %2570 = vpow2.f32 %v2192_v61 }
 0x13e   :  { %2572 = vtanh.f32 %v2362_v8 }
 0x13f   :  { %2574 = vpow2.f32 %v2193_v9 }
 0x140   :  { %2576 = vtanh.f32 %v2364_v11 }
 0x144   :  { %v2565_v12 = vpop.eup %2564 }
 0x145   :  { %v2567_v13 = vpop.eup %2566  ;;  %v902_v15 = vadd.f32 1.0, %v2565_v12 }
 0x146   :  { %v914_v20 = vadd.f32 1.0, %v2567_v13  ;;  %v2569_v14 = vpop.eup %2568 }
 0x147   :  { %2578 = vrcp.f32 %v902_v15  ;;  %v903_v21 = vadd.f32 1.0, %v2569_v14  ;;  %v2571_v22 = vpop.eup %2570 }
 0x148   :  { %2580 = vrcp.f32 %v914_v20  ;;  %v915_v19 = vadd.f32 1.0, %v2571_v22  ;;  %v2573_v23 = vpop.eup %2572 }
 0x149   :  { %2582 = vpow2.f32 %v2194_v18  ;;  %v2575_v24 = vpop.eup %2574 }
 0x14a   :  { %2584 = vrcp.f32 %v903_v21  ;;  %v2577_v25 = vpop.eup %2576  ;;  %v928_v32 = vadd.f32 1.0, %v2575_v24 }
 0x14b   :  { %2586 = vrcp.f32 %v915_v19 }
 0x14c   :  { %2588 = vrcp.f32 %v928_v32 }
 0x151   :  { %v2579_v26 = vpop.eup %2578 }
 0x152   :  { %v2581_v27 = vpop.eup %2580  ;;  %v936_v28 = vmul.f32 %v2579_v26, %v2573_v23 }
 0x153   :  { %v2583_v29 = vpop.eup %2582  ;;  %v934_v30 = vmul.f32 0.0, %v2581_v27 }
 0x154   :  { %v2585_v31 = vpop.eup %2584  ;;  %v929_v7 = vadd.f32 1.0, %v2583_v29 }
 0x155   :  { %v3264_v43 = vadd.f32 %v936_v28, %v934_v30  ;;  %v937_v52 = vmul.f32 %v2585_v31, %v2577_v25  ;;  %v2587_v61 = vpop.eup %2586 }
 0x156   :  { %v935_v8 = vmul.f32 0.0, %v2587_v61  ;;  %v2589_v10 = vpop.eup %2588 }
 0x157   :  { %2590 = vtanh.f32 %v3264_v43 }
 0x158   :  { %v3267_v9 = vadd.f32 %v937_v52, %v935_v8  ;;  %2592 = vrcp.f32 %v929_v7 }
 0x15a   :  { %2594 = vtanh.f32 %v3267_v9 }
 0x161   :  { %v2591_v11 = vpop.eup %2590 }
 0x162   :  { %v2593_v12 = vpop.eup %2592  ;;  %v942_v15 = vmul.f32 %v2591_v11, %v2589_v10 }
 0x164   :  { %v2595_v13 = vpop.eup %2594 }
 0x165   :  { %v943_v18 = vmul.f32 %v2595_v13, %v2593_v12 }
 0x167   :  { %v944_v20 = vpack.c.bf16 %v943_v18, %v942_v15 }
 0x169   :  { %2287 = vst [vmem:[%s3766_s4] sm:$0xff] %v944_v20   ;;  %998 = vmatmul.mubr.bf16.vlgmr.msra.gmra.mrb[4].mxu0 %v944_v20  ;;  %1041 = vmatmul.mubr.bf16.vlgmr.msra.gmra.mrb[4].mxu1 %v944_v20 }
 0x16a   :  { %1130 = vmatpush1.bf16.msra.mxu0 %v2993_v36  ;;  %1173 = vmatpush1.bf16.msra.mxu1 %v3005_v38 }
 0x16b   :  { %1131 = vmatprep.subr.bf16.mxu0 %v2999_v37  ;;  %1174 = vmatprep.subr.bf16.mxu1 %v3010_v39 }
 0x16c   :  { %1161 = vmatprep.mubr.bf16.mxu0 %v2852_v1  ;;  %1204 = vmatprep.mubr.bf16.mxu1 %v2852_v1 }
 0x16e   :  { %1132 = vmatpush1.bf16.msra.mxu0 %v3017_v40  ;;  %1175 = vmatpush1.bf16.msra.mxu1 %v3030_v42 }
 0x16f   :  { %1133 = vmatprep.subr.bf16.mxu0 %v3024_v41  ;;  %1176 = vmatprep.subr.bf16.mxu1 %v3051_v46 }
 0x172   :  { %1134 = vmatpush1.bf16.msra.mxu0 %v3040_v44  ;;  %1177 = vmatpush1.bf16.msra.mxu1 %v3057_v47 }
 0x173   :  { %1135 = vmatprep.subr.bf16.mxu0 %v3045_v45  ;;  %1178 = vmatprep.subr.bf16.mxu1 %v3062_v48 }
 0x176   :  { %1136 = vmatpush1.bf16.msra.mxu0 %v3070_v49  ;;  %1179 = vmatpush1.bf16.msra.mxu1 %v3083_v51 }
 0x177   :  { %1137 = vmatprep.subr.bf16.mxu0 %v3076_v50  ;;  %1180 = vmatprep.subr.bf16.mxu1 %v3098_v54 }
 0x17a   :  { %1138 = vmatpush1.bf16.msra.mxu0 %v3092_v53  ;;  %1181 = vmatpush1.bf16.msra.mxu1 %v3110_v56 }
 0x17b   :  { %1139 = vmatprep.subr.bf16.mxu0 %v3104_v55  ;;  %1182 = vmatprep.subr.bf16.mxu1 %v3115_v57 }
 0x17e   :  { %1140 = vmatpush1.bf16.msra.mxu0 %v3123_v58  ;;  %1183 = vmatpush1.bf16.msra.mxu1 %v3136_v60 }
 0x17f   :  { %1141 = vmatprep.subr.bf16.mxu0 %v3130_v59  ;;  %1184 = vmatprep.subr.bf16.mxu1 %v3151_v63 }
 0x182   :  { %1142 = vmatpush1.bf16.msra.mxu0 %v3146_v62  ;;  %1185 = vmatpush1.bf16.msra.mxu1 %v3163_v2 }
 0x183   :  { %1143 = vmatprep.subr.bf16.mxu0 %v3158_v0  ;;  %1186 = vmatprep.subr.bf16.mxu1 %v3168_v3 }
 0x186   :  { %1144 = vmatpush1.bf16.msra.mxu0 %v3177_v4  ;;  %1187 = vmatpush1.bf16.msra.mxu1 %v3184_v5 }
 0x187   :  { %1293 = vmatprep.subr.bf16.mxu0 %v2980_v33  ;;  %1336 = vmatprep.subr.bf16.mxu1 %v2985_v34 }
 0x23c   :  { %v999_v14 = vpop.f32.mrb[4].mxu0  ;;  %v1042_v21 = vpop.f32.mrb[4].mxu1 }
 0x23d   :  { %v2334_v22 = vadd.f32 %v999_v14, %v3248_v16  ;;  %v1001_v19 = vpop.f32.mrb[5].mxu0  ;;  %v1044_v23 = vpop.f32.mrb[5].mxu1  ;;  %v2366_v8 = vadd.f32 %v1042_v21, %v3258_v6 }
 0x23e   :  { %v2335_v24 = vadd.f32 %v1001_v19, %v3250_v17  ;;  %v1003_v25 = vpop.f32.mrb[6].mxu0  ;;  %v1046_v26 = vpop.f32.mrb[6].mxu1  ;;  %v2367_v7 = vadd.f32 %v1044_v23, %v3255_v35 }
 0x23f   :  { %v2197_v27 = vmul.f32 -1.442695, %v2334_v22  ;;  %v2336_v28 = vadd.f32 %v1003_v25, %v3248_v16  ;;  %v1005_v29 = vpop.f32.mrb[7].mxu0  ;;  %v1048_v30 = vpop.f32.mrb[7].mxu1  ;;  %v2368_v12 = vadd.f32 %v1046_v26, %v3258_v6 }
 0x240   :  { %v2199_v31 = vmul.f32 -1.442695, %v2335_v24  ;;  %v2337_v32 = vadd.f32 %v1005_v29, %v3250_v17  ;;  %v2201_v10 = vmul.f32 -1.442695, %v2367_v7  ;;  %v2369_v11 = vadd.f32 %v1048_v30, %v3255_v35 }
 0x241   :  { %2596 = vpow2.f32 %v2197_v27  ;;  %v2198_v52 = vmul.f32 -1.442695, %v2336_v28 }
 0x242   :  { %2598 = vpow2.f32 %v2199_v31  ;;  %v2200_v61 = vmul.f32 -1.442695, %v2337_v32  ;;  %v2202_v20 = vmul.f32 -1.442695, %v2369_v11 }
 0x243   :  { %2600 = vpow2.f32 %v2198_v52 }
 0x244   :  { %2602 = vpow2.f32 %v2200_v61 }
 0x245   :  { %2604 = vtanh.f32 %v2366_v8 }
 0x246   :  { %2606 = vpow2.f32 %v2201_v10 }
 0x247   :  { %2608 = vtanh.f32 %v2368_v12 }
 0x24b   :  { %v2597_v13 = vpop.eup %2596 }
 0x24c   :  { %v2599_v15 = vpop.eup %2598  ;;  %v1065_v18 = vadd.f32 1.0, %v2597_v13 }
 0x24d   :  { %v1077_v14 = vadd.f32 1.0, %v2599_v15  ;;  %v2601_v22 = vpop.eup %2600 }
 0x24e   :  { %2610 = vrcp.f32 %v1065_v18  ;;  %v1066_v19 = vadd.f32 1.0, %v2601_v22  ;;  %v2603_v23 = vpop.eup %2602 }
 0x24f   :  { %2612 = vrcp.f32 %v1077_v14  ;;  %v1078_v21 = vadd.f32 1.0, %v2603_v23  ;;  %v2605_v24 = vpop.eup %2604 }
 0x250   :  { %2614 = vpow2.f32 %v2202_v20  ;;  %v2607_v25 = vpop.eup %2606 }
 0x251   :  { %2616 = vrcp.f32 %v1066_v19  ;;  %v2609_v26 = vpop.eup %2608  ;;  %v1091_v52 = vadd.f32 1.0, %v2607_v25 }
 0x252   :  { %2618 = vrcp.f32 %v1078_v21 }
 0x253   :  { %2620 = vrcp.f32 %v1091_v52 }
 0x258   :  { %v2611_v27 = vpop.eup %2610 }
 0x259   :  { %v2613_v28 = vpop.eup %2612  ;;  %v1099_v29 = vmul.f32 %v2611_v27, %v2605_v24 }
 0x25a   :  { %v2615_v30 = vpop.eup %2614  ;;  %v1097_v31 = vmul.f32 %v2613_v28, %v3264_v43 }
 0x25b   :  { %v2617_v32 = vpop.eup %2616  ;;  %v1092_v10 = vadd.f32 1.0, %v2615_v30 }
 0x25c   :  { %v3316_v61 = vadd.f32 %v1099_v29, %v1097_v31  ;;  %v1100_v7 = vmul.f32 %v2617_v32, %v2609_v26  ;;  %v2619_v8 = vpop.eup %2618 }
 0x25d   :  { %v1098_v11 = vmul.f32 %v2619_v8, %v3267_v9  ;;  %v2621_v13 = vpop.eup %2620 }
 0x25e   :  { %2622 = vtanh.f32 %v3316_v61 }
 0x25f   :  { %v3320_v12 = vadd.f32 %v1100_v7, %v1098_v11  ;;  %2624 = vrcp.f32 %v1092_v10 }
 0x261   :  { %2626 = vtanh.f32 %v3320_v12 }
 0x268   :  { %v2623_v15 = vpop.eup %2622 }
 0x269   :  { %v2625_v43 = vpop.eup %2624  ;;  %v1105_v20 = vmul.f32 %v2623_v15, %v2621_v13 }
 0x26b   :  { %v2627_v18 = vpop.eup %2626 }
 0x26c   :  { %v1106_v14 = vmul.f32 %v2627_v18, %v2625_v43 }
 0x26e   :  { %v1107_v22 = vpack.c.bf16 %v1106_v14, %v1105_v20 }
 0x270   :  { %2323 = vst [vmem:[%s3766_s4 + $0x8] sm:$0xff] %v1107_v22   ;;  %1162 = vmatmul.mubr.bf16.vlgmr.msra.gmra.mrb[8].mxu0 %v1107_v22  ;;  %1205 = vmatmul.mubr.bf16.vlgmr.msra.gmra.mrb[8].mxu1 %v1107_v22 }
 0x271   :  { %1294 = vmatpush1.bf16.msra.mxu0 %v2993_v36  ;;  %1337 = vmatpush1.bf16.msra.mxu1 %v3005_v38 }
 0x272   :  { %1295 = vmatprep.subr.bf16.mxu0 %v2999_v37  ;;  %1338 = vmatprep.subr.bf16.mxu1 %v3010_v39 }
 0x273   :  { %1325 = vmatprep.mubr.bf16.mxu0 %v2852_v1  ;;  %1368 = vmatprep.mubr.bf16.mxu1 %v2852_v1 }
 0x275   :  { %1296 = vmatpush1.bf16.msra.mxu0 %v3017_v40  ;;  %1339 = vmatpush1.bf16.msra.mxu1 %v3030_v42 }
 0x276   :  { %1297 = vmatprep.subr.bf16.mxu0 %v3024_v41  ;;  %1340 = vmatprep.subr.bf16.mxu1 %v3051_v46 }
 0x279   :  { %1298 = vmatpush1.bf16.msra.mxu0 %v3040_v44  ;;  %1341 = vmatpush1.bf16.msra.mxu1 %v3057_v47 }
 0x27a   :  { %1299 = vmatprep.subr.bf16.mxu0 %v3045_v45  ;;  %1342 = vmatprep.subr.bf16.mxu1 %v3062_v48 }
 0x27d   :  { %1300 = vmatpush1.bf16.msra.mxu0 %v3070_v49  ;;  %1343 = vmatpush1.bf16.msra.mxu1 %v3083_v51 }
 0x27e   :  { %1301 = vmatprep.subr.bf16.mxu0 %v3076_v50  ;;  %1344 = vmatprep.subr.bf16.mxu1 %v3098_v54 }
 0x281   :  { %1302 = vmatpush1.bf16.msra.mxu0 %v3092_v53  ;;  %1345 = vmatpush1.bf16.msra.mxu1 %v3110_v56 }
 0x282   :  { %1303 = vmatprep.subr.bf16.mxu0 %v3104_v55  ;;  %1346 = vmatprep.subr.bf16.mxu1 %v3115_v57 }
 0x285   :  { %1304 = vmatpush1.bf16.msra.mxu0 %v3123_v58  ;;  %1347 = vmatpush1.bf16.msra.mxu1 %v3136_v60 }
 0x286   :  { %1305 = vmatprep.subr.bf16.mxu0 %v3130_v59  ;;  %1348 = vmatprep.subr.bf16.mxu1 %v3151_v63 }
 0x289   :  { %1306 = vmatpush1.bf16.msra.mxu0 %v3146_v62  ;;  %1349 = vmatpush1.bf16.msra.mxu1 %v3163_v2 }
 0x28a   :  { %1307 = vmatprep.subr.bf16.mxu0 %v3158_v0  ;;  %1350 = vmatprep.subr.bf16.mxu1 %v3168_v3 }
 0x28d   :  { %1308 = vmatpush1.bf16.msra.mxu0 %v3177_v4  ;;  %1351 = vmatpush1.bf16.msra.mxu1 %v3184_v5 }
 0x28e   :  { %1457 = vmatprep.subr.bf16.mxu0 %v2980_v33  ;;  %1500 = vmatprep.subr.bf16.mxu1 %v2985_v34 }
 0x343   :  { %v1163_v9 = vpop.f32.mrb[8].mxu0  ;;  %v1206_v19 = vpop.f32.mrb[8].mxu1 }
 0x344   :  { %v2338_v23 = vadd.f32 %v1163_v9, %v3248_v16  ;;  %v1165_v21 = vpop.f32.mrb[9].mxu0  ;;  %v1208_v24 = vpop.f32.mrb[9].mxu1  ;;  %v2370_v11 = vadd.f32 %v1206_v19, %v3258_v6 }
 0x345   :  { %v2339_v25 = vadd.f32 %v1165_v21, %v3250_v17  ;;  %v1167_v26 = vpop.f32.mrb[10].mxu0  ;;  %v1210_v27 = vpop.f32.mrb[10].mxu1  ;;  %v2371_v10 = vadd.f32 %v1208_v24, %v3255_v35 }
 0x346   :  { %v2207_v28 = vmul.f32 -1.442695, %v2338_v23  ;;  %v2340_v29 = vadd.f32 %v1167_v26, %v3248_v16  ;;  %v1169_v30 = vpop.f32.mrb[11].mxu0  ;;  %v1212_v31 = vpop.f32.mrb[11].mxu1  ;;  %v2372_v43 = vadd.f32 %v1210_v27, %v3258_v6 }
 0x347   :  { %v2209_v32 = vmul.f32 -1.442695, %v2339_v25  ;;  %v2341_v52 = vadd.f32 %v1169_v30, %v3250_v17  ;;  %v2211_v13 = vmul.f32 -1.442695, %v2371_v10  ;;  %v2373_v15 = vadd.f32 %v1212_v31, %v3255_v35 }
 0x348   :  { %2628 = vpow2.f32 %v2207_v28  ;;  %v2208_v7 = vmul.f32 -1.442695, %v2340_v29 }
 0x349   :  { %2630 = vpow2.f32 %v2209_v32  ;;  %v2210_v8 = vmul.f32 -1.442695, %v2341_v52  ;;  %v2212_v22 = vmul.f32 -1.442695, %v2373_v15 }
 0x34a   :  { %2632 = vpow2.f32 %v2208_v7 }
 0x34b   :  { %2634 = vpow2.f32 %v2210_v8 }
 0x34c   :  { %2636 = vtanh.f32 %v2370_v11 }
 0x34d   :  { %2638 = vpow2.f32 %v2211_v13 }
 0x34e   :  { %2640 = vtanh.f32 %v2372_v43 }
 0x352   :  { %v2629_v18 = vpop.eup %2628 }
 0x353   :  { %v2631_v20 = vpop.eup %2630  ;;  %v1229_v14 = vadd.f32 1.0, %v2629_v18 }
 0x354   :  { %v1241_v9 = vadd.f32 1.0, %v2631_v20  ;;  %v2633_v23 = vpop.eup %2632 }
 0x355   :  { %2642 = vrcp.f32 %v1229_v14  ;;  %v1230_v21 = vadd.f32 1.0, %v2633_v23  ;;  %v2635_v24 = vpop.eup %2634 }
 0x356   :  { %2644 = vrcp.f32 %v1241_v9  ;;  %v1242_v19 = vadd.f32 1.0, %v2635_v24  ;;  %v2637_v25 = vpop.eup %2636 }
 0x357   :  { %2646 = vpow2.f32 %v2212_v22  ;;  %v2639_v26 = vpop.eup %2638 }
 0x358   :  { %2648 = vrcp.f32 %v1230_v21  ;;  %v2641_v27 = vpop.eup %2640  ;;  %v1255_v7 = vadd.f32 1.0, %v2639_v26 }
 0x359   :  { %2650 = vrcp.f32 %v1242_v19 }
 0x35a   :  { %2652 = vrcp.f32 %v1255_v7 }
 0x35f   :  { %v2643_v28 = vpop.eup %2642 }
 0x360   :  { %v2645_v29 = vpop.eup %2644  ;;  %v1263_v30 = vmul.f32 %v2643_v28, %v2637_v25 }
 0x361   :  { %v2647_v31 = vpop.eup %2646  ;;  %v1261_v32 = vmul.f32 %v2645_v29, %v3316_v61 }
 0x362   :  { %v2649_v52 = vpop.eup %2648  ;;  %v1256_v13 = vadd.f32 1.0, %v2647_v31 }
 0x363   :  { %v3369_v8 = vadd.f32 %v1263_v30, %v1261_v32  ;;  %v1264_v10 = vmul.f32 %v2649_v52, %v2641_v27  ;;  %v2651_v11 = vpop.eup %2650 }
 0x364   :  { %v1262_v15 = vmul.f32 %v2651_v11, %v3320_v12  ;;  %v2653_v18 = vpop.eup %2652 }
 0x365   :  { %2654 = vtanh.f32 %v3369_v8 }
 0x366   :  { %v3373_v43 = vadd.f32 %v1264_v10, %v1262_v15  ;;  %2656 = vrcp.f32 %v1256_v13 }
 0x368   :  { %2658 = vtanh.f32 %v3373_v43 }
 0x36f   :  { %v2655_v20 = vpop.eup %2654 }
 0x370   :  { %v2657_v61 = vpop.eup %2656  ;;  %v1269_v22 = vmul.f32 %v2655_v20, %v2653_v18 }
 0x372   :  { %v2659_v14 = vpop.eup %2658 }
 0x373   :  { %v1270_v9 = vmul.f32 %v2659_v14, %v2657_v61 }
 0x375   :  { %v1271_v23 = vpack.c.bf16 %v1270_v9, %v1269_v22 }
 0x377   :  { %2324 = vst [vmem:[%s3766_s4 + $0x10] sm:$0xff] %v1271_v23   ;;  %1326 = vmatmul.mubr.bf16.vlgmr.msra.gmra.mrb[12].mxu0 %v1271_v23  ;;  %1369 = vmatmul.mubr.bf16.vlgmr.msra.gmra.mrb[12].mxu1 %v1271_v23 }
 0x378   :  { %1458 = vmatpush1.bf16.msra.mxu0 %v2993_v36  ;;  %1501 = vmatpush1.bf16.msra.mxu1 %v3005_v38 }
 0x379   :  { %1459 = vmatprep.subr.bf16.mxu0 %v2999_v37  ;;  %1502 = vmatprep.subr.bf16.mxu1 %v3010_v39 }
 0x37a   :  { %1489 = vmatprep.mubr.bf16.mxu0 %v2852_v1  ;;  %1532 = vmatprep.mubr.bf16.mxu1 %v2852_v1 }
 0x37c   :  { %1460 = vmatpush1.bf16.msra.mxu0 %v3017_v40  ;;  %1503 = vmatpush1.bf16.msra.mxu1 %v3030_v42 }
 0x37d   :  { %1461 = vmatprep.subr.bf16.mxu0 %v3024_v41  ;;  %1504 = vmatprep.subr.bf16.mxu1 %v3051_v46 }
 0x380   :  { %1462 = vmatpush1.bf16.msra.mxu0 %v3040_v44  ;;  %1505 = vmatpush1.bf16.msra.mxu1 %v3057_v47 }
 0x381   :  { %1463 = vmatprep.subr.bf16.mxu0 %v3045_v45  ;;  %1506 = vmatprep.subr.bf16.mxu1 %v3062_v48 }
 0x384   :  { %1464 = vmatpush1.bf16.msra.mxu0 %v3070_v49  ;;  %1507 = vmatpush1.bf16.msra.mxu1 %v3083_v51 }
 0x385   :  { %1465 = vmatprep.subr.bf16.mxu0 %v3076_v50  ;;  %1508 = vmatprep.subr.bf16.mxu1 %v3098_v54 }
 0x388   :  { %1466 = vmatpush1.bf16.msra.mxu0 %v3092_v53  ;;  %1509 = vmatpush1.bf16.msra.mxu1 %v3110_v56 }
 0x389   :  { %1467 = vmatprep.subr.bf16.mxu0 %v3104_v55  ;;  %1510 = vmatprep.subr.bf16.mxu1 %v3115_v57 }
 0x38c   :  { %1468 = vmatpush1.bf16.msra.mxu0 %v3123_v58  ;;  %1511 = vmatpush1.bf16.msra.mxu1 %v3136_v60 }
 0x38d   :  { %1469 = vmatprep.subr.bf16.mxu0 %v3130_v59  ;;  %1512 = vmatprep.subr.bf16.mxu1 %v3151_v63 }
 0x390   :  { %1470 = vmatpush1.bf16.msra.mxu0 %v3146_v62  ;;  %1513 = vmatpush1.bf16.msra.mxu1 %v3163_v2 }
 0x391   :  { %1471 = vmatprep.subr.bf16.mxu0 %v3158_v0  ;;  %1514 = vmatprep.subr.bf16.mxu1 %v3168_v3 }
 0x394   :  { %1472 = vmatpush1.bf16.msra.mxu0 %v3177_v4  ;;  %1515 = vmatpush1.bf16.msra.mxu1 %v3184_v5 }
 0x395   :  { %1621 = vmatprep.subr.bf16.mxu0 %v2980_v33  ;;  %1664 = vmatprep.subr.bf16.mxu1 %v2985_v34 }
 0x44a   :  { %v1327_v36 = vpop.f32.mrb[12].mxu0  ;;  %v1370_v37 = vpop.f32.mrb[12].mxu1 }
 0x44b   :  { %v2342_v38 = vadd.f32 %v1327_v36, %v3248_v16  ;;  %v1329_v39 = vpop.f32.mrb[13].mxu0  ;;  %v1372_v40 = vpop.f32.mrb[13].mxu1  ;;  %v2374_v53 = vadd.f32 %v1370_v37, %v3258_v6 }
 0x44c   :  { %v2343_v41 = vadd.f32 %v1329_v39, %v3250_v17  ;;  %v1331_v42 = vpop.f32.mrb[14].mxu0  ;;  %v1374_v44 = vpop.f32.mrb[14].mxu1  ;;  %v2375_v51 = vadd.f32 %v1372_v40, %v3255_v35  ;;  %v3441_v39 = vld [vmem:[%s3764_s3 + $0x8] ss:$16 sps:$4 sm:$0xff]   ;;  %v3447_v40 = vld [vmem:[%s3764_s3 + $0x24] ss:$16 sps:$4 sm:$0xff]  }
 0x44d   :  { %v2217_v45 = vmul.f32 -1.442695, %v2342_v38  ;;  %v2344_v46 = vadd.f32 %v1331_v42, %v3248_v16  ;;  %v1333_v47 = vpop.f32.mrb[15].mxu0  ;;  %v1376_v48 = vpop.f32.mrb[15].mxu1  ;;  %v2376_v56 = vadd.f32 %v1374_v44, %v3258_v6  ;;  %v3461_v42 = vld [vmem:[%s3764_s3 + $0x20] ss:$16 sps:$4 sm:$0xff]  }
 0x44e   :  { %v2219_v49 = vmul.f32 -1.442695, %v2343_v41  ;;  %v2345_v33 = vadd.f32 %v1333_v47, %v3250_v17  ;;  %v2221_v54 = vmul.f32 -1.442695, %v2375_v51  ;;  %v2377_v55 = vadd.f32 %v1376_v48, %v3255_v35  ;;  %v3453_v41 = vld [vmem:[%s3764_s3 + $0x2c] ss:$16 sps:$4 sm:$0xff]  }
 0x44f   :  { %2660 = vpow2.f32 %v2217_v45  ;;  %v2218_v34 = vmul.f32 -1.442695, %v2344_v46  ;;  %v3467_v44 = vld [vmem:[%s3764_s3 + $0x28] ss:$16 sps:$4 sm:$0xff]   ;;  %v3473_v45 = vld [vmem:[%s3764_s3 + $0x44] ss:$16 sps:$4 sm:$0xff]  }
 0x450   :  { %2662 = vpow2.f32 %v2219_v49  ;;  %v2220_v50 = vmul.f32 -1.442695, %v2345_v33  ;;  %v2222_v12 = vmul.f32 -1.442695, %v2377_v55  ;;  %v3479_v46 = vld [vmem:[%s3764_s3 + $0x4c] ss:$16 sps:$4 sm:$0xff]  }
 0x451   :  { %2664 = vpow2.f32 %v2218_v34  ;;  %v3485_v47 = vld [vmem:[%s3764_s3 + $0x40] ss:$16 sps:$4 sm:$0xff]   ;;  %v3491_v48 = vld [vmem:[%s3764_s3 + $0x48] ss:$16 sps:$4 sm:$0xff]   ;;  %v3497_v49 = vld [vmem:[%s3764_s3 + $0x64] ss:$16 sps:$4 sm:$0xff]  }
 0x452   :  { %2666 = vpow2.f32 %v2220_v50  ;;  %v3503_v33 = vld [vmem:[%s3764_s3 + $0x6c] ss:$16 sps:$4 sm:$0xff]   ;;  %v3509_v34 = vld [vmem:[%s3764_s3 + $0x60] ss:$16 sps:$4 sm:$0xff]   ;;  %v3515_v50 = vld [vmem:[%s3764_s3 + $0x68] ss:$16 sps:$4 sm:$0xff]  }
 0x453   :  { %2668 = vtanh.f32 %v2374_v53  ;;  %v3521_v51 = vld [vmem:[%s3764_s3 + $0x84] ss:$16 sps:$4 sm:$0xff]   ;;  %v3527_v53 = vld [vmem:[%s3764_s3 + $0x8c] ss:$16 sps:$4 sm:$0xff]   ;;  %v3539_v55 = vld [vmem:[%s3764_s3 + $0x88] ss:$16 sps:$4 sm:$0xff]  }
 0x454   :  { %2670 = vpow2.f32 %v2221_v54  ;;  %v3533_v54 = vld [vmem:[%s3764_s3 + $0x80] ss:$16 sps:$4 sm:$0xff]  }
 0x455   :  { %2672 = vtanh.f32 %v2376_v56  ;;  %v3545_v56 = vld [vmem:[%s3764_s3 + $0xa4] ss:$16 sps:$4 sm:$0xff]  }
 0x459   :  { %v2661_v57 = vpop.eup %2660 }
 0x45a   :  { %v2663_v58 = vpop.eup %2662  ;;  %v1393_v59 = vadd.f32 1.0, %v2661_v57  ;;  %v3551_v57 = vld [vmem:[%s3764_s3 + $0xac] ss:$16 sps:$4 sm:$0xff]  }
 0x45b   :  { %v1405_v21 = vadd.f32 1.0, %v2663_v58  ;;  %v2665_v24 = vpop.eup %2664  ;;  %v3557_v58 = vld [vmem:[%s3764_s3 + $0xa0] ss:$16 sps:$4 sm:$0xff]  }
 0x45c   :  { %2674 = vrcp.f32 %v1393_v59  ;;  %v1394_v19 = vadd.f32 1.0, %v2665_v24  ;;  %v2667_v25 = vpop.eup %2666  ;;  %v3564_v59 = vld [vmem:[%s3764_s3 + $0xc4] ss:$16 sps:$4 sm:$0xff]  }
 0x45d   :  { %2676 = vrcp.f32 %v1405_v21  ;;  %v1406_v26 = vadd.f32 1.0, %v2667_v25  ;;  %v2669_v27 = vpop.eup %2668 }
 0x45e   :  { %2678 = vpow2.f32 %v2222_v12  ;;  %v2671_v28 = vpop.eup %2670 }
 0x45f   :  { %2680 = vrcp.f32 %v1394_v19  ;;  %v2673_v29 = vpop.eup %2672  ;;  %v1419_v11 = vadd.f32 1.0, %v2671_v28 }
 0x460   :  { %2682 = vrcp.f32 %v1406_v26 }
 0x461   :  { %2684 = vrcp.f32 %v1419_v11 }
 0x466   :  { %v2675_v30 = vpop.eup %2674 }
 0x467   :  { %v2677_v31 = vpop.eup %2676  ;;  %v1427_v32 = vmul.f32 %v2675_v30, %v2669_v27 }
 0x468   :  { %v2679_v52 = vpop.eup %2678  ;;  %v1425_v7 = vmul.f32 %v2677_v31, %v3369_v8 }
 0x469   :  { %v2681_v10 = vpop.eup %2680  ;;  %v1420_v20 = vadd.f32 1.0, %v2679_v52 }
 0x46a   :  { %v3422_v13 = vadd.f32 %v1427_v32, %v1425_v7  ;;  %v1428_v15 = vmul.f32 %v2681_v10, %v2673_v29  ;;  %v2683_v18 = vpop.eup %2682 }
 0x46b   :  { %v1426_v61 = vmul.f32 %v2683_v18, %v3373_v43  ;;  %v2685_v22 = vpop.eup %2684  ;;  %v3435_v43 = vld [vmem:[%s3764_s3] ss:$16 sps:$4 sm:$0xff]  }
 0x46c   :  { %2686 = vtanh.f32 %v3422_v13 }
 0x46d   :  { %v3426_v14 = vadd.f32 %v1428_v15, %v1426_v61  ;;  %2688 = vrcp.f32 %v1420_v20 }
 0x46f   :  { %2690 = vtanh.f32 %v3426_v14 }
 0x476   :  { %v2687_v9 = vpop.eup %2686 }
 0x477   :  { %v2689_v8 = vpop.eup %2688  ;;  %v1433_v36 = vmul.f32 %v2687_v9, %v2685_v22 }
 0x479   :  { %v2691_v23 = vpop.eup %2690 }
 0x47a   :  { %v1434_v37 = vmul.f32 %v2691_v23, %v2689_v8 }
 0x47c   :  { %v1435_v38 = vpack.c.bf16 %v1434_v37, %v1433_v36 }
 0x47e   :  { %2325 = vst [vmem:[%s3766_s4 + $0x18] sm:$0xff] %v1435_v38   ;;  %1490 = vmatmul.mubr.bf16.vlgmr.msra.gmra.mrb[16].mxu0 %v1435_v38  ;;  %1533 = vmatmul.mubr.bf16.vlgmr.msra.gmra.mrb[16].mxu1 %v1435_v38 }
 0x47f   :  { %1622 = vmatpush1.bf16.msra.mxu0 %v3435_v43  ;;  %1665 = vmatpush1.bf16.msra.mxu1 %v3441_v39 }
 0x480   :  { %1623 = vmatprep.subr.bf16.mxu0 %v3447_v40  ;;  %1666 = vmatprep.subr.bf16.mxu1 %v3453_v41 }
 0x481   :  { %1653 = vmatprep.mubr.bf16.mxu0 %v2852_v1  ;;  %1696 = vmatprep.mubr.bf16.mxu1 %v2852_v1 }
 0x483   :  { %1624 = vmatpush1.bf16.msra.mxu0 %v3461_v42  ;;  %1667 = vmatpush1.bf16.msra.mxu1 %v3467_v44 }
 0x484   :  { %1625 = vmatprep.subr.bf16.mxu0 %v3473_v45  ;;  %1668 = vmatprep.subr.bf16.mxu1 %v3479_v46 }
 0x487   :  { %1626 = vmatpush1.bf16.msra.mxu0 %v3485_v47  ;;  %1669 = vmatpush1.bf16.msra.mxu1 %v3491_v48 }
 0x488   :  { %1627 = vmatprep.subr.bf16.mxu0 %v3497_v49  ;;  %1670 = vmatprep.subr.bf16.mxu1 %v3503_v33 }
 0x48b   :  { %1628 = vmatpush1.bf16.msra.mxu0 %v3509_v34  ;;  %1671 = vmatpush1.bf16.msra.mxu1 %v3515_v50 }
 0x48c   :  { %1629 = vmatprep.subr.bf16.mxu0 %v3521_v51  ;;  %1672 = vmatprep.subr.bf16.mxu1 %v3527_v53 }
 0x48f   :  { %1630 = vmatpush1.bf16.msra.mxu0 %v3533_v54  ;;  %1673 = vmatpush1.bf16.msra.mxu1 %v3539_v55 }
 0x490   :  { %1631 = vmatprep.subr.bf16.mxu0 %v3545_v56  ;;  %1674 = vmatprep.subr.bf16.mxu1 %v3551_v57 }
 0x493   :  { %1632 = vmatpush1.bf16.msra.mxu0 %v3557_v58  ;;  %1675 = vmatpush1.bf16.msra.mxu1 %v3136_v60  ;;  %v3577_v60 = vld [vmem:[%s3764_s3 + $0x4] ss:$16 sps:$4 sm:$0xff]  }
 0x494   :  { %1633 = vmatprep.subr.bf16.mxu0 %v3564_v59  ;;  %1676 = vmatprep.subr.bf16.mxu1 %v3151_v63 }
 0x497   :  { %1634 = vmatpush1.bf16.msra.mxu0 %v3146_v62  ;;  %1677 = vmatpush1.bf16.msra.mxu1 %v3163_v2  ;;  %v3583_v62 = vld [vmem:[%s3764_s3 + $0xc] ss:$16 sps:$4 sm:$0xff]  }
 0x498   :  { %1635 = vmatprep.subr.bf16.mxu0 %v3158_v0  ;;  %1678 = vmatprep.subr.bf16.mxu1 %v3168_v3 }
 0x49b   :  { %1636 = vmatpush1.bf16.msra.mxu0 %v3177_v4  ;;  %1679 = vmatpush1.bf16.msra.mxu1 %v3184_v5 }
 0x49c   :  { %1785 = vmatprep.subr.bf16.mxu0 %v3577_v60  ;;  %1828 = vmatprep.subr.bf16.mxu1 %v3583_v62 }
 0x551   :  { %v1491_v63 = vpop.f32.mrb[16].mxu0  ;;  %v1534_v0 = vpop.f32.mrb[16].mxu1 }
 0x552   :  { %v2346_v2 = vadd.f32 %v1491_v63, %v3248_v16  ;;  %v1493_v3 = vpop.f32.mrb[17].mxu0  ;;  %v1536_v4 = vpop.f32.mrb[17].mxu1  ;;  %v2378_v32 = vadd.f32 %v1534_v0, %v3258_v6 }
 0x553   :  { %v2347_v5 = vadd.f32 %v1493_v3, %v3250_v17  ;;  %v1495_v12 = vpop.f32.mrb[18].mxu0  ;;  %v1538_v21 = vpop.f32.mrb[18].mxu1  ;;  %v2379_v31 = vadd.f32 %v1536_v4, %v3255_v35 }
 0x554   :  { %v2227_v24 = vmul.f32 -1.442695, %v2346_v2  ;;  %v2348_v19 = vadd.f32 %v1495_v12, %v3248_v16  ;;  %v1497_v25 = vpop.f32.mrb[19].mxu0  ;;  %v1540_v26 = vpop.f32.mrb[19].mxu1  ;;  %v2380_v10 = vadd.f32 %v1538_v21, %v3258_v6 }
 0x555   :  { %v2229_v27 = vmul.f32 -1.442695, %v2347_v5  ;;  %v2349_v28 = vadd.f32 %v1497_v25, %v3250_v17  ;;  %v2231_v52 = vmul.f32 -1.442695, %v2379_v31  ;;  %v2381_v7 = vadd.f32 %v1540_v26, %v3255_v35 }
 0x556   :  { %2692 = vpow2.f32 %v2227_v24  ;;  %v2228_v29 = vmul.f32 -1.442695, %v2348_v19 }
 0x557   :  { %2694 = vpow2.f32 %v2229_v27  ;;  %v2230_v30 = vmul.f32 -1.442695, %v2349_v28  ;;  %v2232_v20 = vmul.f32 -1.442695, %v2381_v7  ;;  %v3638_v7 = vld [vmem:[%s3764_s3 + $0xcc] ss:$16 sps:$4 sm:$0xff]  }
 0x558   :  { %2696 = vpow2.f32 %v2228_v29 }
 0x559   :  { %2698 = vpow2.f32 %v2230_v30 }
 0x55a   :  { %2700 = vtanh.f32 %v2378_v32 }
 0x55b   :  { %2702 = vpow2.f32 %v2231_v52 }
 0x55c   :  { %2704 = vtanh.f32 %v2380_v10  ;;  %v3644_v10 = vld [vmem:[%s3764_s3 + $0xc0] ss:$16 sps:$4 sm:$0xff]  }
 0x560   :  { %v2693_v11 = vpop.eup %2692 }
 0x561   :  { %v2695_v15 = vpop.eup %2694  ;;  %v1557_v18 = vadd.f32 1.0, %v2693_v11  ;;  %v3650_v11 = vld [vmem:[%s3764_s3 + $0xc8] ss:$16 sps:$4 sm:$0xff]  }
 0x562   :  { %v1569_v61 = vadd.f32 1.0, %v2695_v15  ;;  %v2697_v22 = vpop.eup %2696  ;;  %v3656_v15 = vld [vmem:[%s3764_s3 + $0xe4] ss:$16 sps:$4 sm:$0xff]  }
 0x563   :  { %2706 = vrcp.f32 %v1557_v18  ;;  %v1558_v9 = vadd.f32 1.0, %v2697_v22  ;;  %v2699_v8 = vpop.eup %2698  ;;  %v3662_v18 = vld [vmem:[%s3764_s3 + $0xec] ss:$16 sps:$4 sm:$0xff]  }
 0x564   :  { %2708 = vrcp.f32 %v1569_v61  ;;  %v1570_v23 = vadd.f32 1.0, %v2699_v8  ;;  %v2701_v36 = vpop.eup %2700  ;;  %v3674_v61 = vld [vmem:[%s3764_s3 + $0xe8] ss:$16 sps:$4 sm:$0xff]  }
 0x565   :  { %2710 = vpow2.f32 %v2232_v20  ;;  %v2703_v37 = vpop.eup %2702  ;;  %v3668_v20 = vld [vmem:[%s3764_s3 + $0xe0] ss:$16 sps:$4 sm:$0xff]  }
 0x566   :  { %2712 = vrcp.f32 %v1558_v9  ;;  %v2705_v38 = vpop.eup %2704  ;;  %v1583_v12 = vadd.f32 1.0, %v2703_v37 }
 0x567   :  { %2714 = vrcp.f32 %v1570_v23 }
 0x568   :  { %2716 = vrcp.f32 %v1583_v12 }
 0x56d   :  { %v2707_v63 = vpop.eup %2706 }
 0x56e   :  { %v2709_v0 = vpop.eup %2708  ;;  %v1591_v2 = vmul.f32 %v2707_v63, %v2701_v36 }
 0x56f   :  { %v2711_v3 = vpop.eup %2710  ;;  %v1589_v4 = vmul.f32 %v2709_v0, %v3422_v13 }
 0x570   :  { %v2713_v5 = vpop.eup %2712  ;;  %v1584_v25 = vadd.f32 1.0, %v2711_v3 }
 0x571   :  { %v3595_v21 = vadd.f32 %v1591_v2, %v1589_v4  ;;  %v1592_v24 = vmul.f32 %v2713_v5, %v2705_v38  ;;  %v2715_v19 = vpop.eup %2714 }
 0x572   :  { %v1590_v26 = vmul.f32 %v2715_v19, %v3426_v14  ;;  %v2717_v28 = vpop.eup %2716  ;;  %v3631_v14 = vld [vmem:[%s3764_s3 + $0xa8] ss:$16 sps:$4 sm:$0xff]  }
 0x573   :  { %2718 = vtanh.f32 %v3595_v21 }
 0x574   :  { %v3599_v27 = vadd.f32 %v1592_v24, %v1590_v26  ;;  %2720 = vrcp.f32 %v1584_v25 }
 0x576   :  { %2722 = vtanh.f32 %v3599_v27 }
 0x57d   :  { %v2719_v29 = vpop.eup %2718 }
 0x57e   :  { %v2721_v13 = vpop.eup %2720  ;;  %v1597_v31 = vmul.f32 %v2719_v29, %v2717_v28 }
 0x580   :  { %v2723_v30 = vpop.eup %2722 }
 0x581   :  { %v1598_v32 = vmul.f32 %v2723_v30, %v2721_v13 }
 0x583   :  { %v1599_v52 = vpack.c.bf16 %v1598_v32, %v1597_v31 }
 0x585   :  { %2326 = vst [vmem:[%s3766_s4 + $0x20] sm:$0xff] %v1599_v52   ;;  %1654 = vmatmul.mubr.bf16.vlgmr.msra.gmra.mrb[20].mxu0 %v1599_v52  ;;  %1697 = vmatmul.mubr.bf16.vlgmr.msra.gmra.mrb[20].mxu1 %v1599_v52 }
 0x586   :  { %1786 = vmatpush1.bf16.msra.mxu0 %v3435_v43  ;;  %1829 = vmatpush1.bf16.msra.mxu1 %v3441_v39 }
 0x587   :  { %1787 = vmatprep.subr.bf16.mxu0 %v3447_v40  ;;  %1830 = vmatprep.subr.bf16.mxu1 %v3453_v41 }
 0x588   :  { %1817 = vmatprep.mubr.bf16.mxu0 %v2852_v1  ;;  %1860 = vmatprep.mubr.bf16.mxu1 %v2852_v1 }
 0x58a   :  { %1788 = vmatpush1.bf16.msra.mxu0 %v3461_v42  ;;  %1831 = vmatpush1.bf16.msra.mxu1 %v3467_v44 }
 0x58b   :  { %1789 = vmatprep.subr.bf16.mxu0 %v3473_v45  ;;  %1832 = vmatprep.subr.bf16.mxu1 %v3479_v46 }
 0x58e   :  { %1790 = vmatpush1.bf16.msra.mxu0 %v3485_v47  ;;  %1833 = vmatpush1.bf16.msra.mxu1 %v3491_v48 }
 0x58f   :  { %1791 = vmatprep.subr.bf16.mxu0 %v3497_v49  ;;  %1834 = vmatprep.subr.bf16.mxu1 %v3503_v33 }
 0x592   :  { %1792 = vmatpush1.bf16.msra.mxu0 %v3509_v34  ;;  %1835 = vmatpush1.bf16.msra.mxu1 %v3515_v50 }
 0x593   :  { %1793 = vmatprep.subr.bf16.mxu0 %v3521_v51  ;;  %1836 = vmatprep.subr.bf16.mxu1 %v3527_v53 }
 0x596   :  { %1794 = vmatpush1.bf16.msra.mxu0 %v3533_v54  ;;  %1837 = vmatpush1.bf16.msra.mxu1 %v3539_v55 }
 0x597   :  { %1795 = vmatprep.subr.bf16.mxu0 %v3545_v56  ;;  %1838 = vmatprep.subr.bf16.mxu1 %v3551_v57 }
 0x59a   :  { %1796 = vmatpush1.bf16.msra.mxu0 %v3557_v58  ;;  %1839 = vmatpush1.bf16.msra.mxu1 %v3631_v14 }
 0x59b   :  { %1797 = vmatprep.subr.bf16.mxu0 %v3564_v59  ;;  %1840 = vmatprep.subr.bf16.mxu1 %v3638_v7 }
 0x59e   :  { %1798 = vmatpush1.bf16.msra.mxu0 %v3644_v10  ;;  %1841 = vmatpush1.bf16.msra.mxu1 %v3650_v11 }
 0x59f   :  { %1799 = vmatprep.subr.bf16.mxu0 %v3656_v15  ;;  %1842 = vmatprep.subr.bf16.mxu1 %v3662_v18 }
 0x5a2   :  { %1800 = vmatpush1.bf16.msra.mxu0 %v3668_v20  ;;  %1843 = vmatpush1.bf16.msra.mxu1 %v3674_v61 }
 0x5a3   :  { %1949 = vmatprep.subr.bf16.mxu0 %v3577_v60  ;;  %1992 = vmatprep.subr.bf16.mxu1 %v3583_v62 }
 0x658   :  { %v1655_v22 = vpop.f32.mrb[20].mxu0  ;;  %v1698_v9 = vpop.f32.mrb[20].mxu1 }
 0x659   :  { %v2350_v8 = vadd.f32 %v1655_v22, %v3248_v16  ;;  %v1657_v23 = vpop.f32.mrb[21].mxu0  ;;  %v1700_v36 = vpop.f32.mrb[21].mxu1  ;;  %v2382_v19 = vadd.f32 %v1698_v9, %v3258_v6 }
 0x65a   :  { %v2351_v37 = vadd.f32 %v1657_v23, %v3250_v17  ;;  %v1659_v38 = vpop.f32.mrb[22].mxu0  ;;  %v1702_v63 = vpop.f32.mrb[22].mxu1  ;;  %v2383_v24 = vadd.f32 %v1700_v36, %v3255_v35 }
 0x65b   :  { %v2237_v0 = vmul.f32 -1.442695, %v2350_v8  ;;  %v2352_v2 = vadd.f32 %v1659_v38, %v3248_v16  ;;  %v1661_v3 = vpop.f32.mrb[23].mxu0  ;;  %v1704_v4 = vpop.f32.mrb[23].mxu1  ;;  %v2384_v28 = vadd.f32 %v1702_v63, %v3258_v6 }
 0x65c   :  { %v2239_v5 = vmul.f32 -1.442695, %v2351_v37  ;;  %v2353_v60 = vadd.f32 %v1661_v3, %v3250_v17  ;;  %v2241_v25 = vmul.f32 -1.442695, %v2383_v24  ;;  %v2385_v26 = vadd.f32 %v1704_v4, %v3255_v35 }
 0x65d   :  { %2724 = vpow2.f32 %v2237_v0  ;;  %v2238_v62 = vmul.f32 -1.442695, %v2352_v2 }
 0x65e   :  { %2726 = vpow2.f32 %v2239_v5  ;;  %v2240_v12 = vmul.f32 -1.442695, %v2353_v60  ;;  %v2242_v31 = vmul.f32 -1.442695, %v2385_v26 }
 0x65f   :  { %2728 = vpow2.f32 %v2238_v62 }
 0x660   :  { %2730 = vpow2.f32 %v2240_v12 }
 0x661   :  { %2732 = vtanh.f32 %v2382_v19 }
 0x662   :  { %2734 = vpow2.f32 %v2241_v25 }
 0x663   :  { %2736 = vtanh.f32 %v2384_v28 }
 0x667   :  { %v2725_v29 = vpop.eup %2724 }
 0x668   :  { %v2727_v13 = vpop.eup %2726  ;;  %v1721_v30 = vadd.f32 1.0, %v2725_v29 }
 0x669   :  { %v1733_v32 = vadd.f32 1.0, %v2727_v13  ;;  %v2729_v52 = vpop.eup %2728 }
 0x66a   :  { %2738 = vrcp.f32 %v1721_v30  ;;  %v1722_v22 = vadd.f32 1.0, %v2729_v52  ;;  %v2731_v8 = vpop.eup %2730 }
 0x66b   :  { %2740 = vrcp.f32 %v1733_v32  ;;  %v1734_v9 = vadd.f32 1.0, %v2731_v8  ;;  %v2733_v23 = vpop.eup %2732 }
 0x66c   :  { %2742 = vpow2.f32 %v2242_v31  ;;  %v2735_v36 = vpop.eup %2734 }
 0x66d   :  { %2744 = vrcp.f32 %v1722_v22  ;;  %v2737_v37 = vpop.eup %2736  ;;  %v1747_v5 = vadd.f32 1.0, %v2735_v36 }
 0x66e   :  { %2746 = vrcp.f32 %v1734_v9 }
 0x66f   :  { %2748 = vrcp.f32 %v1747_v5 }
 0x674   :  { %v2739_v38 = vpop.eup %2738 }
 0x675   :  { %v2741_v63 = vpop.eup %2740  ;;  %v1755_v0 = vmul.f32 %v2739_v38, %v2733_v23 }
 0x676   :  { %v2743_v2 = vpop.eup %2742  ;;  %v1753_v3 = vmul.f32 %v2741_v63, %v3595_v21 }
 0x677   :  { %v2745_v4 = vpop.eup %2744  ;;  %v1748_v24 = vadd.f32 1.0, %v2743_v2 }
 0x678   :  { %v3688_v60 = vadd.f32 %v1755_v0, %v1753_v3  ;;  %v1756_v62 = vmul.f32 %v2745_v4, %v2737_v37  ;;  %v2747_v12 = vpop.eup %2746 }
 0x679   :  { %v1754_v19 = vmul.f32 %v2747_v12, %v3599_v27  ;;  %v2749_v26 = vpop.eup %2748 }
 0x67a   :  { %2750 = vtanh.f32 %v3688_v60 }
 0x67b   :  { %v3692_v25 = vadd.f32 %v1756_v62, %v1754_v19  ;;  %2752 = vrcp.f32 %v1748_v24 }
 0x67d   :  { %2754 = vtanh.f32 %v3692_v25 }
 0x684   :  { %v2751_v28 = vpop.eup %2750 }
 0x685   :  { %v2753_v21 = vpop.eup %2752  ;;  %v1761_v13 = vmul.f32 %v2751_v28, %v2749_v26 }
 0x687   :  { %v2755_v29 = vpop.eup %2754 }
 0x688   :  { %v1762_v30 = vmul.f32 %v2755_v29, %v2753_v21 }
 0x68a   :  { %v1763_v31 = vpack.c.bf16 %v1762_v30, %v1761_v13 }
 0x68c   :  { %2327 = vst [vmem:[%s3766_s4 + $0x28] sm:$0xff] %v1763_v31   ;;  %1818 = vmatmul.mubr.bf16.vlgmr.msra.gmra.mrb[24].mxu0 %v1763_v31  ;;  %1861 = vmatmul.mubr.bf16.vlgmr.msra.gmra.mrb[24].mxu1 %v1763_v31 }
 0x68d   :  { %1950 = vmatpush1.bf16.msra.mxu0 %v3435_v43  ;;  %1993 = vmatpush1.bf16.msra.mxu1 %v3441_v39 }
 0x68e   :  { %1951 = vmatprep.subr.bf16.mxu0 %v3447_v40  ;;  %1994 = vmatprep.subr.bf16.mxu1 %v3453_v41 }
 0x68f   :  { %1981 = vmatprep.mubr.bf16.mxu0 %v2852_v1  ;;  %2024 = vmatprep.mubr.bf16.mxu1 %v2852_v1 }
 0x691   :  { %1952 = vmatpush1.bf16.msra.mxu0 %v3461_v42  ;;  %1995 = vmatpush1.bf16.msra.mxu1 %v3467_v44 }
 0x692   :  { %1953 = vmatprep.subr.bf16.mxu0 %v3473_v45  ;;  %1996 = vmatprep.subr.bf16.mxu1 %v3479_v46 }
 0x695   :  { %1954 = vmatpush1.bf16.msra.mxu0 %v3485_v47  ;;  %1997 = vmatpush1.bf16.msra.mxu1 %v3491_v48 }
 0x696   :  { %1955 = vmatprep.subr.bf16.mxu0 %v3497_v49  ;;  %1998 = vmatprep.subr.bf16.mxu1 %v3503_v33 }
 0x699   :  { %1956 = vmatpush1.bf16.msra.mxu0 %v3509_v34  ;;  %1999 = vmatpush1.bf16.msra.mxu1 %v3515_v50 }
 0x69a   :  { %1957 = vmatprep.subr.bf16.mxu0 %v3521_v51  ;;  %2000 = vmatprep.subr.bf16.mxu1 %v3527_v53 }
 0x69d   :  { %1958 = vmatpush1.bf16.msra.mxu0 %v3533_v54  ;;  %2001 = vmatpush1.bf16.msra.mxu1 %v3539_v55 }
 0x69e   :  { %1959 = vmatprep.subr.bf16.mxu0 %v3545_v56  ;;  %2002 = vmatprep.subr.bf16.mxu1 %v3551_v57 }
 0x6a1   :  { %1960 = vmatpush1.bf16.msra.mxu0 %v3557_v58  ;;  %2003 = vmatpush1.bf16.msra.mxu1 %v3631_v14 }
 0x6a2   :  { %1961 = vmatprep.subr.bf16.mxu0 %v3564_v59  ;;  %2004 = vmatprep.subr.bf16.mxu1 %v3638_v7 }
 0x6a5   :  { %1962 = vmatpush1.bf16.msra.mxu0 %v3644_v10  ;;  %2005 = vmatpush1.bf16.msra.mxu1 %v3650_v11 }
 0x6a6   :  { %1963 = vmatprep.subr.bf16.mxu0 %v3656_v15  ;;  %2006 = vmatprep.subr.bf16.mxu1 %v3662_v18 }
 0x6a9   :  { %1964 = vmatpush1.bf16.msra.mxu0 %v3668_v20  ;;  %2007 = vmatpush1.bf16.msra.mxu1 %v3674_v61 }
 0x75f   :  { %v1819_v1 = vpop.f32.mrb[24].mxu0  ;;  %v1862_v43 = vpop.f32.mrb[24].mxu1 }
 0x760   :  { %v2354_v39 = vadd.f32 %v1819_v1, %v3248_v16  ;;  %v1821_v40 = vpop.f32.mrb[25].mxu0  ;;  %v1864_v41 = vpop.f32.mrb[25].mxu1  ;;  %v2386_v54 = vadd.f32 %v1862_v43, %v3258_v6 }
 0x761   :  { %v2355_v42 = vadd.f32 %v1821_v40, %v3250_v17  ;;  %v1823_v44 = vpop.f32.mrb[26].mxu0  ;;  %v1866_v45 = vpop.f32.mrb[26].mxu1  ;;  %v2387_v53 = vadd.f32 %v1864_v41, %v3255_v35 }
 0x762   :  { %v2247_v46 = vmul.f32 -1.442695, %v2354_v39  ;;  %v2356_v47 = vadd.f32 %v1823_v44, %v3248_v16  ;;  %v1825_v48 = vpop.f32.mrb[27].mxu0  ;;  %v1868_v49 = vpop.f32.mrb[27].mxu1  ;;  %v2388_v57 = vadd.f32 %v1866_v45, %v3258_v6 }
 0x763   :  { %v2249_v33 = vmul.f32 -1.442695, %v2355_v42  ;;  %v2357_v34 = vadd.f32 %v1825_v48, %v3250_v17  ;;  %v2251_v55 = vmul.f32 -1.442695, %v2387_v53  ;;  %v2389_v56 = vadd.f32 %v1868_v49, %v3255_v35 }
 0x764   :  { %2756 = vpow2.f32 %v2247_v46  ;;  %v2248_v50 = vmul.f32 -1.442695, %v2356_v47 }
 0x765   :  { %2758 = vpow2.f32 %v2249_v33  ;;  %v2250_v51 = vmul.f32 -1.442695, %v2357_v34  ;;  %v2252_v14 = vmul.f32 -1.442695, %v2389_v56 }
 0x766   :  { %2760 = vpow2.f32 %v2248_v50 }
 0x767   :  { %2762 = vpow2.f32 %v2250_v51 }
 0x768   :  { %2764 = vtanh.f32 %v2386_v54 }
 0x769   :  { %2766 = vpow2.f32 %v2251_v55 }
 0x76a   :  { %2768 = vtanh.f32 %v2388_v57 }
 0x76e   :  { %v2757_v58 = vpop.eup %2756 }
 0x76f   :  { %v2759_v59 = vpop.eup %2758  ;;  %v1885_v27 = vadd.f32 1.0, %v2757_v58 }
 0x770   :  { %v1897_v7 = vadd.f32 1.0, %v2759_v59  ;;  %v2761_v10 = vpop.eup %2760 }
 0x771   :  { %2770 = vrcp.f32 %v1885_v27  ;;  %v1886_v11 = vadd.f32 1.0, %v2761_v10  ;;  %v2763_v15 = vpop.eup %2762 }
 0x772   :  { %2772 = vrcp.f32 %v1897_v7  ;;  %v1898_v18 = vadd.f32 1.0, %v2763_v15  ;;  %v2765_v20 = vpop.eup %2764 }
 0x773   :  { %2774 = vpow2.f32 %v2252_v14  ;;  %v2767_v61 = vpop.eup %2766 }
 0x774   :  { %2776 = vrcp.f32 %v1886_v11  ;;  %v2769_v32 = vpop.eup %2768  ;;  %v1911_v37 = vadd.f32 1.0, %v2767_v61 }
 0x775   :  { %2778 = vrcp.f32 %v1898_v18 }
 0x776   :  { %2780 = vrcp.f32 %v1911_v37 }
 0x77b   :  { %v2771_v52 = vpop.eup %2770 }
 0x77c   :  { %v2773_v22 = vpop.eup %2772  ;;  %v1919_v8 = vmul.f32 %v2771_v52, %v2765_v20 }
 0x77d   :  { %v2775_v9 = vpop.eup %2774  ;;  %v1917_v23 = vmul.f32 %v2773_v22, %v3688_v60 }
 0x77e   :  { %v2777_v36 = vpop.eup %2776  ;;  %v1912_v2 = vadd.f32 1.0, %v2775_v9 }
 0x77f   :  { %v3739_v38 = vadd.f32 %v1919_v8, %v1917_v23  ;;  %v1920_v63 = vmul.f32 %v2777_v36, %v2769_v32  ;;  %v2779_v0 = vpop.eup %2778 }
 0x780   :  { %v1918_v3 = vmul.f32 %v2779_v0, %v3692_v25  ;;  %v2781_v5 = vpop.eup %2780 }
 0x781   :  { %2782 = vtanh.f32 %v3739_v38 }
 0x782   :  { %v3743_v4 = vadd.f32 %v1920_v63, %v1918_v3  ;;  %2784 = vrcp.f32 %v1912_v2 }
 0x784   :  { %2786 = vtanh.f32 %v3743_v4 }
 0x78b   :  { %v2783_v62 = vpop.eup %2782 }
 0x78c   :  { %v2785_v60 = vpop.eup %2784  ;;  %v1925_v24 = vmul.f32 %v2783_v62, %v2781_v5 }
 0x78e   :  { %v2787_v12 = vpop.eup %2786 }
 0x78f   :  { %v1926_v19 = vmul.f32 %v2787_v12, %v2785_v60 }
 0x791   :  { %v1927_v26 = vpack.c.bf16 %v1926_v19, %v1925_v24 }
 0x793   :  { %2328 = vst [vmem:[%s3766_s4 + $0x30] sm:$0xff] %v1927_v26   ;;  %1982 = vmatmul.mubr.bf16.vlgmr.msra.gmra.mrb[28].mxu0 %v1927_v26  ;;  %2025 = vmatmul.mubr.bf16.vlgmr.msra.gmra.mrb[28].mxu1 %v1927_v26 }
 0x866   :  { %v1983_v25 = vpop.f32.mrb[28].mxu0  ;;  %v2026_v28 = vpop.f32.mrb[28].mxu1 }
 0x867   :  { %v2358_v21 = vadd.f32 %v1983_v25, %v3248_v16  ;;  %v1985_v29 = vpop.f32.mrb[29].mxu0  ;;  %v2028_v13 = vpop.f32.mrb[29].mxu1  ;;  %v2390_v48 = vadd.f32 %v2026_v28, %v3258_v6 }
 0x868   :  { %v2359_v30 = vadd.f32 %v1985_v29, %v3250_v17  ;;  %v1987_v31 = vpop.f32.mrb[30].mxu0  ;;  %v2030_v1 = vpop.f32.mrb[30].mxu1  ;;  %v2391_v47 = vadd.f32 %v2028_v13, %v3255_v35 }
 0x869   :  { %v2257_v43 = vmul.f32 -1.442695, %v2358_v21  ;;  %v2360_v39 = vadd.f32 %v1987_v31, %v3248_v16  ;;  %v1989_v40 = vpop.f32.mrb[31].mxu0  ;;  %v2032_v41 = vpop.f32.mrb[31].mxu1  ;;  %v2392_v16 = vadd.f32 %v2030_v1, %v3258_v6 }
 0x86a   :  { %v2259_v42 = vmul.f32 -1.442695, %v2359_v30  ;;  %v2361_v44 = vadd.f32 %v1989_v40, %v3250_v17  ;;  %v2261_v49 = vmul.f32 -1.442695, %v2391_v47  ;;  %v2393_v33 = vadd.f32 %v2032_v41, %v3255_v35 }
 0x86b   :  { %2788 = vpow2.f32 %v2257_v43  ;;  %v2258_v45 = vmul.f32 -1.442695, %v2360_v39 }
 0x86c   :  { %2790 = vpow2.f32 %v2259_v42  ;;  %v2260_v46 = vmul.f32 -1.442695, %v2361_v44  ;;  %v2262_v17 = vmul.f32 -1.442695, %v2393_v33 }
 0x86d   :  { %2792 = vpow2.f32 %v2258_v45 }
 0x86e   :  { %2794 = vpow2.f32 %v2260_v46 }
 0x86f   :  { %2796 = vtanh.f32 %v2390_v48 }
 0x870   :  { %2798 = vpow2.f32 %v2261_v49 }
 0x871   :  { %2800 = vtanh.f32 %v2392_v16 }
 0x875   :  { %v2789_v34 = vpop.eup %2788 }
 0x876   :  { %v2791_v50 = vpop.eup %2790  ;;  %v2049_v51 = vadd.f32 1.0, %v2789_v34 }
 0x877   :  { %v2061_v53 = vadd.f32 1.0, %v2791_v50  ;;  %v2793_v54 = vpop.eup %2792 }
 0x878   :  { %2802 = vrcp.f32 %v2049_v51  ;;  %v2050_v55 = vadd.f32 1.0, %v2793_v54  ;;  %v2795_v56 = vpop.eup %2794 }
 0x879   :  { %2804 = vrcp.f32 %v2061_v53  ;;  %v2062_v57 = vadd.f32 1.0, %v2795_v56  ;;  %v2797_v35 = vpop.eup %2796 }
 0x87a   :  { %2806 = vpow2.f32 %v2262_v17  ;;  %v2799_v58 = vpop.eup %2798 }
 0x87b   :  { %2808 = vrcp.f32 %v2050_v55  ;;  %v2801_v6 = vpop.eup %2800  ;;  %v2075_v7 = vadd.f32 1.0, %v2799_v58 }
 0x87c   :  { %2810 = vrcp.f32 %v2062_v57 }
 0x87d   :  { %2812 = vrcp.f32 %v2075_v7 }
 0x882   :  { %v2803_v59 = vpop.eup %2802 }
 0x883   :  { %v2805_v27 = vpop.eup %2804  ;;  %v2083_v14 = vmul.f32 %v2803_v59, %v2797_v35 }
 0x884   :  { %v2807_v10 = vpop.eup %2806  ;;  %v2081_v11 = vmul.f32 %v2805_v27, %v3739_v38 }
 0x885   :  { %v2809_v15 = vpop.eup %2808  ;;  %v2076_v32 = vadd.f32 1.0, %v2807_v10 }
 0x886   :  { %v2085_v18 = vadd.f32 %v2083_v14, %v2081_v11  ;;  %v2084_v20 = vmul.f32 %v2809_v15, %v2801_v6  ;;  %v2811_v61 = vpop.eup %2810 }
 0x887   :  { %v2082_v52 = vmul.f32 %v2811_v61, %v3743_v4  ;;  %v2813_v8 = vpop.eup %2812 }
 0x888   :  { %2814 = vtanh.f32 %v2085_v18 }
 0x889   :  { %v2086_v22 = vadd.f32 %v2084_v20, %v2082_v52  ;;  %2816 = vrcp.f32 %v2076_v32 }
 0x88b   :  { %2818 = vtanh.f32 %v2086_v22 }
 0x892   :  { %v2815_v9 = vpop.eup %2814 }
 0x893   :  { %v2089_v23 = vmul.f32 %v2815_v9, %v2813_v8  ;;  %v2817_v36 = vpop.eup %2816 }
 0x895   :  { %v2819_v37 = vpop.eup %2818 }
 0x896   :  { %v2090_v63 = vmul.f32 %v2819_v37, %v2817_v36 }
 0x898   :  { %v2321_v0 = vpack.c.bf16 %v2090_v63, %v2089_v23 }
 0x89a   :  { %2329 = vst [vmem:[%s3766_s4 + $0x38] sm:$0xff] %v2321_v0  }

// kernel: reg_lstm_forward.3
= control target key start
LH: loop header
LB: loop body
LE: loop exit
PB: predicated region body
PF: predicated region fallthrough
CT: control target
= control target key end

     0   :  { %9 = vsyncpa [#allocation6], 0  ;;  %s2642_s15 = smov [#allocation5]   ;;  %s3325_s0 = inlined_call_operand.vmem [shape: f32[1,128,8], index: 0, kind: input, shape index: {}]   ;;  %s3326_s1 = inlined_call_operand.vmem [shape: bf16[8,512], index: 1, kind: input, shape index: {}]   ;;  %s3327_s2 = inlined_call_operand.vmem [shape: f32[1,512], index: 2, kind: input, shape index: {}]   ;;  %s3328_s3 = inlined_call_operand.hbm [shape: bf16[128,512], index: 3, kind: input, shape index: {}]   ;;  %s3329_s4 = inlined_call_operand.vmem [shape: bf16[1,128,128], index: 4, kind: output, shape index: {}]  }
   0x1   :  { %s21_s16 = sshll.u32 %s2642_s15, 4  ;;  %s2618_s19 = scalar_lea.hbm %s3328_s3, 4096  ;;  %s22_s16 = int_to_ptr.vmem [resolvable:$true] %s21_s16 }
   0x2   :  { %p2619_p0 = scmp.ne.s32.totalorder %s3328_s3, %s2618_s19  ;;  %p2622_p1 = scmp.lt.u32.totalorder %s2618_s19, %s3328_s3 }
   0x4   :  { %p2624_p2 = pnand %p2622_p1, %p2619_p0 }
   0x6   :  { %2627 = shalt.err (!%p2624_p2)
}
   0x7   :  { %s2628_s24 = scalar_lea.vmem %s22_s16, 4096  ;;  %p2633_p4 = scmp.lt.s32.totalorder %s22_s16, %s22_s16 }
   0x8   :  { %p2629_p3 = scmp.ne.s32.totalorder %s22_s16, %s2628_s24  ;;  %p2634_p5 = scmp.lt.s32.totalorder %s2628_s24, %s2628_s24 }
   0xa   :  { %p2635_p6 = por %p2634_p5, %p2633_p4 }
   0xc   :  { %p2636_p7 = pnand %p2635_p6, %p2629_p3 }
   0xe   :  { %2639 = shalt.err (!%p2636_p7)
}
   0xf   :  { %s2643_s25 = smov 256   ;;  %s2644_s26 = smov 16  }
  0x10   :  { %27 = dma.hbm_to_vmem [thread:$0]  %s3328_s3, 4096, %s22_s16, [#allocation6], %s2643_s25, %s2643_s25, %s2644_s26  }
  0x11   :  { %2640 = dma.done.wait [#allocation6], 4096  }
  0x12   :  { %2641 = vsyncadd [#allocation6], 4294963200  ;;  %v2645_v0 = vmov 0   ;;  %v64_v1 = vld [vmem:[%s3326_s1] sm:$0xff]  ;;  %vm123_vm0 = vcmask 1043456   ;;  %v65_v2 = vld [vmem:[%s3326_s1 + $0x8] sm:$0xff] }
  0x13   :  { %168 = vmatprep.mubr.bf16.mxu0 %v2645_v0  ;;  %281 = vmatprep.mubr.bf16.mxu1 %v2645_v0  ;;  %v40_v3 = vld [vmem:[%s3325_s0] sm:$0xff]  ;;  %v1951_v4 = vcombine.high %v64_v1, %v64_v1  ;;  %v1953_v5 = vcombine.high %v65_v2, %v65_v2  ;;  %v1950_v6 = vcombine.low %v64_v1, %v64_v1  ;;  %v41_v8 = vld [vmem:[%s3325_s0 + $0x8] sm:$0xff]  ;;  %vm98_vm1 = vcmask 64512   ;;  %v42_v15 = vld [vmem:[%s3325_s0 + $0x10] sm:$0xff] }
  0x14   :  { %v1952_v7 = vcombine.low %v65_v2, %v65_v2  ;;  %v2698_v9 = vld [vmem:[#allocation5 + $0x4] ss:$16 sps:$4 sm:$0xff]   ;;  %v56_v12 = vpack.c.bf16 %v41_v8, %v40_v3  ;;  %v2700_v13 = vld [vmem:[#allocation5] ss:$16 sps:$4 sm:$0xff]   ;;  %v2708_v16 = vld [vmem:[#allocation5 + $0xc] ss:$16 sps:$4 sm:$0xff]   ;;  %v68_v3 = vlaneseq }
  0x15   :  { %1954 = vmatprep.subr.msk.bf16.mxu0 %vm123_vm0, %v1951_v4  ;;  %1963 = vmatprep.subr.msk.bf16.mxu1 %vm123_vm0, %v1953_v5  ;;  %v125_v10 = vsel %vm123_vm0, %v1950_v6, 0  ;;  %v2703_v14 = vld [vmem:[#allocation5 + $0x24] ss:$16 sps:$4 sm:$0xff]   ;;  %v43_v17 = vld [vmem:[%s3325_s0 + $0x18] sm:$0xff]  ;;  %v2715_v18 = vld [vmem:[#allocation5 + $0x20] ss:$16 sps:$4 sm:$0xff]  }
  0x16   :  { %v131_v11 = vsel %vm123_vm0, %v1952_v7, 0  ;;  %137 = vmatpush1.bf16.msra.mxu0 %v125_v10  ;;  %v2717_v19 = vld [vmem:[#allocation5 + $0x8] ss:$16 sps:$4 sm:$0xff]   ;;  %v2721_v20 = vld [vmem:[#allocation5 + $0x2c] ss:$16 sps:$4 sm:$0xff]   ;;  %v57_v22 = vpack.c.bf16 %v43_v17, %v42_v15  ;;  %v44_v27 = vld [vmem:[%s3325_s0 + $0x20] sm:$0xff] }
  0x17   :  { %250 = vmatpush1.bf16.msra.mxu1 %v131_v11  ;;  %634 = vmatprep.subr.bf16.mxu0 %v2698_v9  ;;  %v2725_v21 = vld [vmem:[#allocation5 + $0x44] ss:$16 sps:$4 sm:$0xff]   ;;  %v2730_v23 = vld [vmem:[#allocation5 + $0x40] ss:$16 sps:$4 sm:$0xff]   ;;  %v2734_v24 = vld [vmem:[#allocation5 + $0x28] ss:$16 sps:$4 sm:$0xff]  }
  0x18   :  { %677 = vmatprep.subr.bf16.mxu1 %v2708_v16  ;;  %v2736_v25 = vld [vmem:[#allocation5 + $0x64] ss:$16 sps:$4 sm:$0xff]   ;;  %v2738_v26 = vld [vmem:[#allocation5 + $0x4c] ss:$16 sps:$4 sm:$0xff]   ;;  %v2752_v29 = vld [vmem:[#allocation5 + $0x60] ss:$16 sps:$4 sm:$0xff]  }
  0x19   :  { %1955 = vmatmul.mubr.msk.bf16.vlgmr.msra.gmra.mrb[0].mxu0 %vm98_vm1, %v56_v12  ;;  %v45_v28 = vld [vmem:[%s3325_s0 + $0x28] sm:$0xff]  ;;  %v2754_v30 = vld [vmem:[#allocation5 + $0x84] ss:$16 sps:$4 sm:$0xff]   ;;  %v2762_v34 = vld [vmem:[#allocation5 + $0x80] ss:$16 sps:$4 sm:$0xff]   ;;  %v2646_v2 = vmov 0.0|0.0  }
  0x1a   :  { %1964 = vmatmul.mubr.msk.bf16.vlgmr.msra.gmra.mrb[0].mxu1 %vm98_vm1, %v56_v12  ;;  %635 = vmatpush1.bf16.msra.mxu0 %v2700_v13  ;;  %v2756_v31 = vld [vmem:[#allocation5 + $0x48] ss:$16 sps:$4 sm:$0xff]   ;;  %v2760_v32 = vld [vmem:[#allocation5 + $0x6c] ss:$16 sps:$4 sm:$0xff]   ;;  %v58_v33 = vpack.c.bf16 %v45_v28, %v44_v27  ;;  %v2770_v36 = vld [vmem:[#allocation5 + $0xa4] ss:$16 sps:$4 sm:$0xff]  }
  0x1b   :  { %178 = vmatprep.mubr.bf16.mxu0 %v2645_v0  ;;  %291 = vmatprep.mubr.bf16.mxu1 %v2645_v0  ;;  %v2766_v35 = vld [vmem:[#allocation5 + $0x68] ss:$16 sps:$4 sm:$0xff]   ;;  %v2772_v37 = vld [vmem:[#allocation5 + $0x8c] ss:$16 sps:$4 sm:$0xff]   ;;  %v46_v38 = vld [vmem:[%s3325_s0 + $0x30] sm:$0xff]  ;;  %v69_v4 = vshrl.u32 %v68_v3, 7 }
  0x1c   :  { %636 = vmatprep.subr.bf16.mxu0 %v2703_v14  ;;  %678 = vmatpush1.bf16.msra.mxu1 %v2717_v19  ;;  %v47_v39 = vld [vmem:[%s3325_s0 + $0x38] sm:$0xff]  ;;  %v2786_v40 = vld [vmem:[#allocation5 + $0xa0] ss:$16 sps:$4 sm:$0xff]   ;;  %v2788_v41 = vld [vmem:[#allocation5 + $0xc4] ss:$16 sps:$4 sm:$0xff]  }
  0x1d   :  { %679 = vmatprep.subr.bf16.mxu1 %v2721_v20  ;;  %v2790_v42 = vld [vmem:[#allocation5 + $0x88] ss:$16 sps:$4 sm:$0xff]   ;;  %v2794_v43 = vld [vmem:[#allocation5 + $0xac] ss:$16 sps:$4 sm:$0xff]   ;;  %v59_v44 = vpack.c.bf16 %v47_v39, %v46_v38  ;;  %v2798_v45 = vld [vmem:[#allocation5 + $0xc0] ss:$16 sps:$4 sm:$0xff]  }
  0x1e   :  { %637 = vmatpush1.bf16.msra.mxu0 %v2715_v18  ;;  %v2800_v46 = vld [vmem:[#allocation5 + $0xa8] ss:$16 sps:$4 sm:$0xff]   ;;  %v2804_v47 = vld [vmem:[#allocation5 + $0xe4] ss:$16 sps:$4 sm:$0xff]   ;;  %v2806_v48 = vld [vmem:[#allocation5 + $0xcc] ss:$16 sps:$4 sm:$0xff]  }
  0x1f   :  { %638 = vmatprep.subr.bf16.mxu0 %v2725_v21  ;;  %v48_v49 = vld [vmem:[%s3325_s0 + $0x40] sm:$0xff]  ;;  %v49_v50 = vld [vmem:[%s3325_s0 + $0x48] sm:$0xff]  ;;  %v50_v56 = vld [vmem:[%s3325_s0 + $0x50] sm:$0xff]  ;;  %v70_v5 = vsub.s32 0, %v69_v4  ;;  %v74_v7 = vsub.s32 1, %v69_v4  ;;  %v82_v15 = vsub.s32 3, %v69_v4 }
  0x20   :  { %680 = vmatpush1.bf16.msra.mxu1 %v2734_v24  ;;  %v2820_v51 = vld [vmem:[#allocation5 + $0xe0] ss:$16 sps:$4 sm:$0xff]   ;;  %v2822_v52 = vld [vmem:[#allocation5 + $0xc8] ss:$16 sps:$4 sm:$0xff]   ;;  %v2826_v53 = vld [vmem:[#allocation5 + $0xec] ss:$16 sps:$4 sm:$0xff]   ;;  %v60_v54 = vpack.c.bf16 %v49_v50, %v48_v49 }
  0x21   :  { %1956 = vmatmul.mubr.msk.bf16.gmra.mrb[4].mxu0 %vm98_vm1, %v57_v22  ;;  %681 = vmatprep.subr.bf16.mxu1 %v2738_v26  ;;  %v2830_v55 = vld [vmem:[#allocation5 + $0xe8] ss:$16 sps:$4 sm:$0xff]   ;;  %v52_v59 = vld [vmem:[%s3325_s0 + $0x60] sm:$0xff]  ;;  %v54_v62 = vld [vmem:[%s3325_s0 + $0x70] sm:$0xff] }
  0x22   :  { %1965 = vmatmul.mubr.msk.bf16.gmra.mrb[4].mxu1 %vm98_vm1, %v57_v22  ;;  %188 = vmatprep.mubr.bf16.mxu0 %v2645_v0  ;;  %v51_v57 = vld [vmem:[%s3325_s0 + $0x58] sm:$0xff]  ;;  %v53_v60 = vld [vmem:[%s3325_s0 + $0x68] sm:$0xff]  ;;  %v66_v6 = vld [vmem:[%s3327_s2] sm:$0xf] }
  0x23   :  { %301 = vmatprep.mubr.bf16.mxu1 %v2645_v0  ;;  %639 = vmatpush1.bf16.msra.mxu0 %v2730_v23  ;;  %v61_v58 = vpack.c.bf16 %v51_v57, %v50_v56  ;;  %v62_v61 = vpack.c.bf16 %v53_v60, %v52_v59  ;;  %v55_v63 = vld [vmem:[%s3325_s0 + $0x78] sm:$0xff]  ;;  %v2907_v8 = vrot.slane %v66_v6, %v70_v5 }
  0x24   :  { %640 = vmatprep.subr.bf16.mxu0 %v2736_v25  ;;  %682 = vmatpush1.bf16.msra.mxu1 %v2756_v31  ;;  %v63_v1 = vpack.c.bf16 %v55_v63, %v54_v62  ;;  %v2909_v10 = vrot.slane %v66_v6, %v74_v7  ;;  %v2914_v57 = vrot.slane %v66_v6, %v82_v15 }
  0x25   :  { %683 = vmatprep.subr.bf16.mxu1 %v2760_v32 }
  0x27   :  { %641 = vmatpush1.bf16.msra.mxu0 %v2752_v29 }
  0x28   :  { %642 = vmatprep.subr.bf16.mxu0 %v2754_v30  ;;  %684 = vmatpush1.bf16.msra.mxu1 %v2766_v35 }
  0x29   :  { %1957 = vmatmul.mubr.msk.bf16.gmra.mrb[8].mxu0 %vm98_vm1, %v58_v33  ;;  %685 = vmatprep.subr.bf16.mxu1 %v2772_v37 }
  0x2a   :  { %1966 = vmatmul.mubr.msk.bf16.gmra.mrb[8].mxu1 %vm98_vm1, %v58_v33  ;;  %198 = vmatprep.mubr.bf16.mxu0 %v2645_v0 }
  0x2b   :  { %311 = vmatprep.mubr.bf16.mxu1 %v2645_v0  ;;  %643 = vmatpush1.bf16.msra.mxu0 %v2762_v34 }
  0x2c   :  { %644 = vmatprep.subr.bf16.mxu0 %v2770_v36  ;;  %686 = vmatpush1.bf16.msra.mxu1 %v2790_v42 }
  0x2d   :  { %687 = vmatprep.subr.bf16.mxu1 %v2794_v43 }
  0x2f   :  { %645 = vmatpush1.bf16.msra.mxu0 %v2786_v40 }
  0x30   :  { %646 = vmatprep.subr.bf16.mxu0 %v2788_v41  ;;  %688 = vmatpush1.bf16.msra.mxu1 %v2800_v46 }
  0x31   :  { %1958 = vmatmul.mubr.msk.bf16.gmra.mrb[12].mxu0 %vm98_vm1, %v59_v44  ;;  %689 = vmatprep.subr.bf16.mxu1 %v2806_v48 }
  0x32   :  { %1967 = vmatmul.mubr.msk.bf16.gmra.mrb[12].mxu1 %vm98_vm1, %v59_v44  ;;  %208 = vmatprep.mubr.bf16.mxu0 %v2645_v0  ;;  %v78_v44 = vsub.s32 2, %v69_v4 }
  0x33   :  { %321 = vmatprep.mubr.bf16.mxu1 %v2645_v0  ;;  %647 = vmatpush1.bf16.msra.mxu0 %v2798_v45 }
  0x34   :  { %648 = vmatprep.subr.bf16.mxu0 %v2804_v47  ;;  %690 = vmatpush1.bf16.msra.mxu1 %v2822_v52 }
  0x35   :  { %691 = vmatprep.subr.bf16.mxu1 %v2826_v53 }
  0x37   :  { %649 = vmatpush1.bf16.msra.mxu0 %v2820_v51 }
  0x38   :  { %797 = vmatprep.subr.bf16.mxu0 %v2698_v9  ;;  %692 = vmatpush1.bf16.msra.mxu1 %v2830_v55 }
  0x39   :  { %1959 = vmatmul.mubr.msk.bf16.gmra.mrb[16].mxu0 %vm98_vm1, %v60_v54  ;;  %840 = vmatprep.subr.bf16.mxu1 %v2708_v16 }
  0x3a   :  { %1968 = vmatmul.mubr.msk.bf16.gmra.mrb[16].mxu1 %vm98_vm1, %v60_v54  ;;  %218 = vmatprep.mubr.bf16.mxu0 %v2645_v0 }
  0x3b   :  { %331 = vmatprep.mubr.bf16.mxu1 %v2645_v0 }
  0x41   :  { %1960 = vmatmul.mubr.msk.bf16.gmra.mrb[20].mxu0 %vm98_vm1, %v61_v58 }
  0x42   :  { %1969 = vmatmul.mubr.msk.bf16.gmra.mrb[20].mxu1 %vm98_vm1, %v61_v58  ;;  %228 = vmatprep.mubr.bf16.mxu0 %v2645_v0 }
  0x43   :  { %341 = vmatprep.mubr.bf16.mxu1 %v2645_v0 }
  0x49   :  { %1961 = vmatmul.mubr.msk.bf16.gmra.mrb[24].mxu0 %vm98_vm1, %v62_v61 }
  0x4a   :  { %1970 = vmatmul.mubr.msk.bf16.gmra.mrb[24].mxu1 %vm98_vm1, %v62_v61  ;;  %238 = vmatprep.mubr.bf16.mxu0 %v2645_v0  ;;  %v2917_v61 = vrot.slane %v66_v6, %v78_v44 }
  0x4b   :  { %351 = vmatprep.mubr.bf16.mxu1 %v2645_v0 }
  0x51   :  { %1962 = vmatmul.mubr.msk.bf16.gmra.mrb[28].mxu0 %vm98_vm1, %v63_v1 }
  0x52   :  { %1971 = vmatmul.mubr.msk.bf16.gmra.mrb[28].mxu1 %vm98_vm1, %v63_v1  ;;  %666 = vmatprep.mubr.bf16.mxu0 %v2645_v0 }
  0x53   :  { %709 = vmatprep.mubr.bf16.mxu1 %v2645_v0 }
  0x59   :  { %667 = vmatmul.mubr.bf16.vlgmr.msra.gmra.mrb[0].mxu0 %v2646_v2 }
  0x5a   :  { %710 = vmatmul.mubr.bf16.vlgmr.msra.gmra.mrb[0].mxu1 %v2646_v2  ;;  %798 = vmatpush1.bf16.msra.mxu0 %v2700_v13 }
  0x5b   :  { %841 = vmatpush1.bf16.msra.mxu1 %v2717_v19  ;;  %799 = vmatprep.subr.bf16.mxu0 %v2703_v14 }
  0x5c   :  { %842 = vmatprep.subr.bf16.mxu1 %v2721_v20  ;;  %829 = vmatprep.mubr.bf16.mxu0 %v2645_v0 }
  0x5d   :  { %872 = vmatprep.mubr.bf16.mxu1 %v2645_v0 }
  0x5e   :  { %800 = vmatpush1.bf16.msra.mxu0 %v2715_v18 }
  0x5f   :  { %843 = vmatpush1.bf16.msra.mxu1 %v2734_v24  ;;  %801 = vmatprep.subr.bf16.mxu0 %v2725_v21 }
  0x60   :  { %844 = vmatprep.subr.bf16.mxu1 %v2738_v26 }
  0x62   :  { %802 = vmatpush1.bf16.msra.mxu0 %v2730_v23 }
  0x63   :  { %845 = vmatpush1.bf16.msra.mxu1 %v2756_v31  ;;  %803 = vmatprep.subr.bf16.mxu0 %v2736_v25 }
  0x64   :  { %846 = vmatprep.subr.bf16.mxu1 %v2760_v32 }
  0x66   :  { %804 = vmatpush1.bf16.msra.mxu0 %v2752_v29 }
  0x67   :  { %847 = vmatpush1.bf16.msra.mxu1 %v2766_v35  ;;  %805 = vmatprep.subr.bf16.mxu0 %v2754_v30 }
  0x68   :  { %848 = vmatprep.subr.bf16.mxu1 %v2772_v37 }
  0x6a   :  { %806 = vmatpush1.bf16.msra.mxu0 %v2762_v34 }
  0x6b   :  { %849 = vmatpush1.bf16.msra.mxu1 %v2790_v42  ;;  %807 = vmatprep.subr.bf16.mxu0 %v2770_v36 }
  0x6c   :  { %850 = vmatprep.subr.bf16.mxu1 %v2794_v43 }
  0x6e   :  { %808 = vmatpush1.bf16.msra.mxu0 %v2786_v40 }
  0x6f   :  { %851 = vmatpush1.bf16.msra.mxu1 %v2800_v46  ;;  %809 = vmatprep.subr.bf16.mxu0 %v2788_v41 }
  0x70   :  { %852 = vmatprep.subr.bf16.mxu1 %v2806_v48 }
  0x72   :  { %810 = vmatpush1.bf16.msra.mxu0 %v2798_v45 }
  0x73   :  { %853 = vmatpush1.bf16.msra.mxu1 %v2822_v52  ;;  %811 = vmatprep.subr.bf16.mxu0 %v2804_v47 }
  0x74   :  { %854 = vmatprep.subr.bf16.mxu1 %v2826_v53 }
  0x76   :  { %812 = vmatpush1.bf16.msra.mxu0 %v2820_v51 }
  0x77   :  { %855 = vmatpush1.bf16.msra.mxu1 %v2830_v55  ;;  %961 = vmatprep.subr.bf16.mxu0 %v2698_v9 }
  0x78   :  { %1004 = vmatprep.subr.bf16.mxu1 %v2708_v16 }
 0x12c   :  { %v668_v11 = vpop.f32.mrb[0].mxu0 }
 0x12d   :  { %v711_v12 = vpop.f32.mrb[0].mxu1  ;;  %v2145_v17 = vadd.f32 %v668_v11, %v2907_v8  ;;  %v670_v22 = vpop.f32.mrb[1].mxu0 }
 0x12e   :  { %v713_v27 = vpop.f32.mrb[1].mxu1  ;;  %v2146_v28 = vadd.f32 %v670_v22, %v2909_v10  ;;  %v672_v33 = vpop.f32.mrb[2].mxu0  ;;  %v2177_v63 = vadd.f32 %v711_v12, %v2917_v61 }
 0x12f   :  { %v715_v38 = vpop.f32.mrb[2].mxu1  ;;  %v2004_v39 = vmul.f32 -1.442695, %v2145_v17  ;;  %v2147_v49 = vadd.f32 %v672_v33, %v2907_v8  ;;  %v674_v50 = vpop.f32.mrb[3].mxu0  ;;  %v2178_v62 = vadd.f32 %v713_v27, %v2914_v57 }
 0x130   :  { %v717_v54 = vpop.f32.mrb[3].mxu1  ;;  %v2006_v56 = vmul.f32 -1.442695, %v2146_v28  ;;  %v2148_v58 = vadd.f32 %v674_v50, %v2909_v10  ;;  %v2179_v3 = vadd.f32 %v715_v38, %v2917_v61 }
 0x131   :  { %2330 = vpow2.f32 %v2004_v39  ;;  %v2005_v59 = vmul.f32 -1.442695, %v2147_v49  ;;  %v2008_v1 = vmul.f32 -1.442695, %v2178_v62  ;;  %v2180_v2 = vadd.f32 %v717_v54, %v2914_v57 }
 0x132   :  { %2332 = vpow2.f32 %v2006_v56  ;;  %v2007_v60 = vmul.f32 -1.442695, %v2148_v58 }
 0x133   :  { %2334 = vpow2.f32 %v2005_v59  ;;  %v2009_v11 = vmul.f32 -1.442695, %v2180_v2 }
 0x134   :  { %2336 = vpow2.f32 %v2007_v60 }
 0x135   :  { %2338 = vtanh.f32 %v2177_v63 }
 0x136   :  { %2340 = vpow2.f32 %v2008_v1 }
 0x137   :  { %2342 = vtanh.f32 %v2179_v3 }
 0x13b   :  { %v2331_v4 = vpop.eup %2330 }
 0x13c   :  { %v2333_v5 = vpop.eup %2332  ;;  %v734_v7 = vadd.f32 1.0, %v2331_v4 }
 0x13d   :  { %v746_v15 = vadd.f32 1.0, %v2333_v5  ;;  %v2335_v6 = vpop.eup %2334 }
 0x13e   :  { %2344 = vrcp.f32 %v734_v7  ;;  %v735_v17 = vadd.f32 1.0, %v2335_v6  ;;  %v2337_v22 = vpop.eup %2336 }
 0x13f   :  { %2346 = vrcp.f32 %v746_v15  ;;  %v747_v12 = vadd.f32 1.0, %v2337_v22  ;;  %v2339_v27 = vpop.eup %2338 }
 0x140   :  { %2348 = vpow2.f32 %v2009_v11  ;;  %v2341_v28 = vpop.eup %2340 }
 0x141   :  { %2350 = vrcp.f32 %v735_v17  ;;  %v2343_v33 = vpop.eup %2342  ;;  %v760_v56 = vadd.f32 1.0, %v2341_v28 }
 0x142   :  { %2352 = vrcp.f32 %v747_v12 }
 0x143   :  { %2354 = vrcp.f32 %v760_v56 }
 0x148   :  { %v2345_v38 = vpop.eup %2344 }
 0x149   :  { %v2347_v39 = vpop.eup %2346  ;;  %v768_v44 = vmul.f32 %v2345_v38, %v2339_v27 }
 0x14a   :  { %v2349_v49 = vpop.eup %2348  ;;  %v766_v50 = vmul.f32 0.0, %v2347_v39 }
 0x14b   :  { %v2351_v54 = vpop.eup %2350  ;;  %v761_v62 = vadd.f32 1.0, %v2349_v49 }
 0x14c   :  { %v2923_v58 = vadd.f32 %v768_v44, %v766_v50  ;;  %v769_v59 = vmul.f32 %v2351_v54, %v2343_v33  ;;  %v2353_v60 = vpop.eup %2352 }
 0x14d   :  { %v767_v63 = vmul.f32 0.0, %v2353_v60  ;;  %v2355_v2 = vpop.eup %2354 }
 0x14e   :  { %2356 = vtanh.f32 %v2923_v58 }
 0x14f   :  { %v2926_v1 = vadd.f32 %v769_v59, %v767_v63  ;;  %2358 = vrcp.f32 %v761_v62 }
 0x151   :  { %2360 = vtanh.f32 %v2926_v1 }
 0x158   :  { %v2357_v3 = vpop.eup %2356 }
 0x159   :  { %v2359_v4 = vpop.eup %2358  ;;  %v774_v7 = vmul.f32 %v2357_v3, %v2355_v2 }
 0x15b   :  { %v2361_v5 = vpop.eup %2360 }
 0x15c   :  { %v775_v11 = vmul.f32 %v2361_v5, %v2359_v4 }
 0x15e   :  { %v776_v15 = vpack.c.bf16 %v775_v11, %v774_v7 }
 0x160   :  { %2102 = vst [vmem:[%s3329_s4] sm:$0xff] %v776_v15   ;;  %830 = vmatmul.mubr.bf16.vlgmr.msra.gmra.mrb[4].mxu0 %v776_v15  ;;  %873 = vmatmul.mubr.bf16.vlgmr.msra.gmra.mrb[4].mxu1 %v776_v15 }
 0x161   :  { %962 = vmatpush1.bf16.msra.mxu0 %v2700_v13  ;;  %1005 = vmatpush1.bf16.msra.mxu1 %v2717_v19 }
 0x162   :  { %963 = vmatprep.subr.bf16.mxu0 %v2703_v14  ;;  %1006 = vmatprep.subr.bf16.mxu1 %v2721_v20 }
 0x163   :  { %993 = vmatprep.mubr.bf16.mxu0 %v2645_v0  ;;  %1036 = vmatprep.mubr.bf16.mxu1 %v2645_v0 }
 0x165   :  { %964 = vmatpush1.bf16.msra.mxu0 %v2715_v18  ;;  %1007 = vmatpush1.bf16.msra.mxu1 %v2734_v24 }
 0x166   :  { %965 = vmatprep.subr.bf16.mxu0 %v2725_v21  ;;  %1008 = vmatprep.subr.bf16.mxu1 %v2738_v26 }
 0x169   :  { %966 = vmatpush1.bf16.msra.mxu0 %v2730_v23  ;;  %1009 = vmatpush1.bf16.msra.mxu1 %v2756_v31 }
 0x16a   :  { %967 = vmatprep.subr.bf16.mxu0 %v2736_v25  ;;  %1010 = vmatprep.subr.bf16.mxu1 %v2760_v32 }
 0x16d   :  { %968 = vmatpush1.bf16.msra.mxu0 %v2752_v29  ;;  %1011 = vmatpush1.bf16.msra.mxu1 %v2766_v35 }
 0x16e   :  { %969 = vmatprep.subr.bf16.mxu0 %v2754_v30  ;;  %1012 = vmatprep.subr.bf16.mxu1 %v2772_v37 }
 0x171   :  { %970 = vmatpush1.bf16.msra.mxu0 %v2762_v34  ;;  %1013 = vmatpush1.bf16.msra.mxu1 %v2790_v42 }
 0x172   :  { %971 = vmatprep.subr.bf16.mxu0 %v2770_v36  ;;  %1014 = vmatprep.subr.bf16.mxu1 %v2794_v43 }
 0x175   :  { %972 = vmatpush1.bf16.msra.mxu0 %v2786_v40  ;;  %1015 = vmatpush1.bf16.msra.mxu1 %v2800_v46 }
 0x176   :  { %973 = vmatprep.subr.bf16.mxu0 %v2788_v41  ;;  %1016 = vmatprep.subr.bf16.mxu1 %v2806_v48 }
 0x179   :  { %974 = vmatpush1.bf16.msra.mxu0 %v2798_v45  ;;  %1017 = vmatpush1.bf16.msra.mxu1 %v2822_v52 }
 0x17a   :  { %975 = vmatprep.subr.bf16.mxu0 %v2804_v47  ;;  %1018 = vmatprep.subr.bf16.mxu1 %v2826_v53 }
 0x17d   :  { %976 = vmatpush1.bf16.msra.mxu0 %v2820_v51  ;;  %1019 = vmatpush1.bf16.msra.mxu1 %v2830_v55 }
 0x17e   :  { %1125 = vmatprep.subr.bf16.mxu0 %v2698_v9  ;;  %1168 = vmatprep.subr.bf16.mxu1 %v2708_v16 }
 0x233   :  { %v831_v6 = vpop.f32.mrb[4].mxu0  ;;  %v874_v17 = vpop.f32.mrb[4].mxu1 }
 0x234   :  { %v2149_v22 = vadd.f32 %v831_v6, %v2907_v8  ;;  %v833_v12 = vpop.f32.mrb[5].mxu0  ;;  %v876_v27 = vpop.f32.mrb[5].mxu1  ;;  %v2181_v63 = vadd.f32 %v874_v17, %v2917_v61 }
 0x235   :  { %v2150_v28 = vadd.f32 %v833_v12, %v2909_v10  ;;  %v835_v33 = vpop.f32.mrb[6].mxu0  ;;  %v878_v38 = vpop.f32.mrb[6].mxu1  ;;  %v2182_v62 = vadd.f32 %v876_v27, %v2914_v57 }
 0x236   :  { %v2012_v39 = vmul.f32 -1.442695, %v2149_v22  ;;  %v2151_v44 = vadd.f32 %v835_v33, %v2907_v8  ;;  %v837_v49 = vpop.f32.mrb[7].mxu0  ;;  %v880_v50 = vpop.f32.mrb[7].mxu1  ;;  %v2183_v4 = vadd.f32 %v878_v38, %v2917_v61 }
 0x237   :  { %v2014_v54 = vmul.f32 -1.442695, %v2150_v28  ;;  %v2152_v56 = vadd.f32 %v837_v49, %v2909_v10  ;;  %v2016_v2 = vmul.f32 -1.442695, %v2182_v62  ;;  %v2184_v3 = vadd.f32 %v880_v50, %v2914_v57 }
 0x238   :  { %2362 = vpow2.f32 %v2012_v39  ;;  %v2013_v59 = vmul.f32 -1.442695, %v2151_v44 }
 0x239   :  { %2364 = vpow2.f32 %v2014_v54  ;;  %v2015_v60 = vmul.f32 -1.442695, %v2152_v56  ;;  %v2017_v15 = vmul.f32 -1.442695, %v2184_v3 }
 0x23a   :  { %2366 = vpow2.f32 %v2013_v59 }
 0x23b   :  { %2368 = vpow2.f32 %v2015_v60 }
 0x23c   :  { %2370 = vtanh.f32 %v2181_v63 }
 0x23d   :  { %2372 = vpow2.f32 %v2016_v2 }
 0x23e   :  { %2374 = vtanh.f32 %v2183_v4 }
 0x242   :  { %v2363_v5 = vpop.eup %2362 }
 0x243   :  { %v2365_v7 = vpop.eup %2364  ;;  %v897_v11 = vadd.f32 1.0, %v2363_v5 }
 0x244   :  { %v909_v6 = vadd.f32 1.0, %v2365_v7  ;;  %v2367_v22 = vpop.eup %2366 }
 0x245   :  { %2376 = vrcp.f32 %v897_v11  ;;  %v898_v12 = vadd.f32 1.0, %v2367_v22  ;;  %v2369_v27 = vpop.eup %2368 }
 0x246   :  { %2378 = vrcp.f32 %v909_v6  ;;  %v910_v17 = vadd.f32 1.0, %v2369_v27  ;;  %v2371_v28 = vpop.eup %2370 }
 0x247   :  { %2380 = vpow2.f32 %v2017_v15  ;;  %v2373_v33 = vpop.eup %2372 }
 0x248   :  { %2382 = vrcp.f32 %v898_v12  ;;  %v2375_v38 = vpop.eup %2374  ;;  %v923_v59 = vadd.f32 1.0, %v2373_v33 }
 0x249   :  { %2384 = vrcp.f32 %v910_v17 }
 0x24a   :  { %2386 = vrcp.f32 %v923_v59 }
 0x24f   :  { %v2377_v39 = vpop.eup %2376 }
 0x250   :  { %v2379_v44 = vpop.eup %2378  ;;  %v931_v49 = vmul.f32 %v2377_v39, %v2371_v28 }
 0x251   :  { %v2381_v50 = vpop.eup %2380  ;;  %v929_v54 = vmul.f32 %v2379_v44, %v2923_v58 }
 0x252   :  { %v2383_v56 = vpop.eup %2382  ;;  %v924_v2 = vadd.f32 1.0, %v2381_v50 }
 0x253   :  { %v2975_v60 = vadd.f32 %v931_v49, %v929_v54  ;;  %v932_v62 = vmul.f32 %v2383_v56, %v2375_v38  ;;  %v2385_v63 = vpop.eup %2384 }
 0x254   :  { %v930_v3 = vmul.f32 %v2385_v63, %v2926_v1  ;;  %v2387_v5 = vpop.eup %2386 }
 0x255   :  { %2388 = vtanh.f32 %v2975_v60 }
 0x256   :  { %v2979_v4 = vadd.f32 %v932_v62, %v930_v3  ;;  %2390 = vrcp.f32 %v924_v2 }
 0x258   :  { %2392 = vtanh.f32 %v2979_v4 }
 0x25f   :  { %v2389_v7 = vpop.eup %2388 }
 0x260   :  { %v2391_v58 = vpop.eup %2390  ;;  %v937_v15 = vmul.f32 %v2389_v7, %v2387_v5 }
 0x262   :  { %v2393_v11 = vpop.eup %2392 }
 0x263   :  { %v938_v6 = vmul.f32 %v2393_v11, %v2391_v58 }
 0x265   :  { %v939_v22 = vpack.c.bf16 %v938_v6, %v937_v15 }
 0x267   :  { %2138 = vst [vmem:[%s3329_s4 + $0x8] sm:$0xff] %v939_v22   ;;  %994 = vmatmul.mubr.bf16.vlgmr.msra.gmra.mrb[8].mxu0 %v939_v22  ;;  %1037 = vmatmul.mubr.bf16.vlgmr.msra.gmra.mrb[8].mxu1 %v939_v22 }
 0x268   :  { %1126 = vmatpush1.bf16.msra.mxu0 %v2700_v13  ;;  %1169 = vmatpush1.bf16.msra.mxu1 %v2717_v19 }
 0x269   :  { %1127 = vmatprep.subr.bf16.mxu0 %v2703_v14  ;;  %1170 = vmatprep.subr.bf16.mxu1 %v2721_v20 }
 0x26a   :  { %1157 = vmatprep.mubr.bf16.mxu0 %v2645_v0  ;;  %1200 = vmatprep.mubr.bf16.mxu1 %v2645_v0 }
 0x26c   :  { %1128 = vmatpush1.bf16.msra.mxu0 %v2715_v18  ;;  %1171 = vmatpush1.bf16.msra.mxu1 %v2734_v24 }
 0x26d   :  { %1129 = vmatprep.subr.bf16.mxu0 %v2725_v21  ;;  %1172 = vmatprep.subr.bf16.mxu1 %v2738_v26 }
 0x270   :  { %1130 = vmatpush1.bf16.msra.mxu0 %v2730_v23  ;;  %1173 = vmatpush1.bf16.msra.mxu1 %v2756_v31 }
 0x271   :  { %1131 = vmatprep.subr.bf16.mxu0 %v2736_v25  ;;  %1174 = vmatprep.subr.bf16.mxu1 %v2760_v32 }
 0x274   :  { %1132 = vmatpush1.bf16.msra.mxu0 %v2752_v29  ;;  %1175 = vmatpush1.bf16.msra.mxu1 %v2766_v35 }
 0x275   :  { %1133 = vmatprep.subr.bf16.mxu0 %v2754_v30  ;;  %1176 = vmatprep.subr.bf16.mxu1 %v2772_v37 }
 0x278   :  { %1134 = vmatpush1.bf16.msra.mxu0 %v2762_v34  ;;  %1177 = vmatpush1.bf16.msra.mxu1 %v2790_v42 }
 0x279   :  { %1135 = vmatprep.subr.bf16.mxu0 %v2770_v36  ;;  %1178 = vmatprep.subr.bf16.mxu1 %v2794_v43 }
 0x27c   :  { %1136 = vmatpush1.bf16.msra.mxu0 %v2786_v40  ;;  %1179 = vmatpush1.bf16.msra.mxu1 %v2800_v46 }
 0x27d   :  { %1137 = vmatprep.subr.bf16.mxu0 %v2788_v41  ;;  %1180 = vmatprep.subr.bf16.mxu1 %v2806_v48 }
 0x280   :  { %1138 = vmatpush1.bf16.msra.mxu0 %v2798_v45  ;;  %1181 = vmatpush1.bf16.msra.mxu1 %v2822_v52 }
 0x281   :  { %1139 = vmatprep.subr.bf16.mxu0 %v2804_v47  ;;  %1182 = vmatprep.subr.bf16.mxu1 %v2826_v53 }
 0x284   :  { %1140 = vmatpush1.bf16.msra.mxu0 %v2820_v51  ;;  %1183 = vmatpush1.bf16.msra.mxu1 %v2830_v55 }
 0x285   :  { %1289 = vmatprep.subr.bf16.mxu0 %v2698_v9  ;;  %1332 = vmatprep.subr.bf16.mxu1 %v2708_v16 }
 0x33a   :  { %v995_v1 = vpop.f32.mrb[8].mxu0  ;;  %v1038_v12 = vpop.f32.mrb[8].mxu1 }
 0x33b   :  { %v2153_v27 = vadd.f32 %v995_v1, %v2907_v8  ;;  %v997_v17 = vpop.f32.mrb[9].mxu0  ;;  %v1040_v28 = vpop.f32.mrb[9].mxu1  ;;  %v2185_v2 = vadd.f32 %v1038_v12, %v2917_v61 }
 0x33c   :  { %v2154_v33 = vadd.f32 %v997_v17, %v2909_v10  ;;  %v999_v38 = vpop.f32.mrb[10].mxu0  ;;  %v1042_v39 = vpop.f32.mrb[10].mxu1  ;;  %v2186_v63 = vadd.f32 %v1040_v28, %v2914_v57 }
 0x33d   :  { %v2022_v44 = vmul.f32 -1.442695, %v2153_v27  ;;  %v2155_v49 = vadd.f32 %v999_v38, %v2907_v8  ;;  %v1001_v50 = vpop.f32.mrb[11].mxu0  ;;  %v1044_v54 = vpop.f32.mrb[11].mxu1  ;;  %v2187_v7 = vadd.f32 %v1042_v39, %v2917_v61 }
 0x33e   :  { %v2024_v56 = vmul.f32 -1.442695, %v2154_v33  ;;  %v2156_v9 = vadd.f32 %v1001_v50, %v2909_v10  ;;  %v2026_v3 = vmul.f32 -1.442695, %v2186_v63  ;;  %v2188_v5 = vadd.f32 %v1044_v54, %v2914_v57 }
 0x33f   :  { %2394 = vpow2.f32 %v2022_v44  ;;  %v2023_v59 = vmul.f32 -1.442695, %v2155_v49 }
 0x340   :  { %2396 = vpow2.f32 %v2024_v56  ;;  %v2025_v62 = vmul.f32 -1.442695, %v2156_v9  ;;  %v2027_v6 = vmul.f32 -1.442695, %v2188_v5 }
 0x341   :  { %2398 = vpow2.f32 %v2023_v59 }
 0x342   :  { %2400 = vpow2.f32 %v2025_v62 }
 0x343   :  { %2402 = vtanh.f32 %v2185_v2 }
 0x344   :  { %2404 = vpow2.f32 %v2026_v3 }
 0x345   :  { %2406 = vtanh.f32 %v2187_v7 }
 0x349   :  { %v2395_v58 = vpop.eup %2394 }
 0x34a   :  { %v2397_v11 = vpop.eup %2396  ;;  %v1061_v15 = vadd.f32 1.0, %v2395_v58 }
 0x34b   :  { %v1073_v22 = vadd.f32 1.0, %v2397_v11  ;;  %v2399_v1 = vpop.eup %2398 }
 0x34c   :  { %2408 = vrcp.f32 %v1061_v15  ;;  %v1062_v27 = vadd.f32 1.0, %v2399_v1  ;;  %v2401_v17 = vpop.eup %2400 }
 0x34d   :  { %2410 = vrcp.f32 %v1073_v22  ;;  %v1074_v12 = vadd.f32 1.0, %v2401_v17  ;;  %v2403_v28 = vpop.eup %2402 }
 0x34e   :  { %2412 = vpow2.f32 %v2027_v6  ;;  %v2405_v33 = vpop.eup %2404 }
 0x34f   :  { %2414 = vrcp.f32 %v1062_v27  ;;  %v2407_v38 = vpop.eup %2406  ;;  %v1087_v9 = vadd.f32 1.0, %v2405_v33 }
 0x350   :  { %2416 = vrcp.f32 %v1074_v12 }
 0x351   :  { %2418 = vrcp.f32 %v1087_v9 }
 0x356   :  { %v2409_v39 = vpop.eup %2408 }
 0x357   :  { %v2411_v44 = vpop.eup %2410  ;;  %v1095_v49 = vmul.f32 %v2409_v39, %v2403_v28 }
 0x358   :  { %v2413_v50 = vpop.eup %2412  ;;  %v1093_v54 = vmul.f32 %v2411_v44, %v2975_v60 }
 0x359   :  { %v2415_v56 = vpop.eup %2414  ;;  %v1088_v2 = vadd.f32 1.0, %v2413_v50 }
 0x35a   :  { %v3028_v59 = vadd.f32 %v1095_v49, %v1093_v54  ;;  %v1096_v62 = vmul.f32 %v2415_v56, %v2407_v38  ;;  %v2417_v63 = vpop.eup %2416 }
 0x35b   :  { %v1094_v3 = vmul.f32 %v2417_v63, %v2979_v4  ;;  %v2419_v7 = vpop.eup %2418 }
 0x35c   :  { %2420 = vtanh.f32 %v3028_v59 }
 0x35d   :  { %v3032_v5 = vadd.f32 %v1096_v62, %v1094_v3  ;;  %2422 = vrcp.f32 %v1088_v2 }
 0x35f   :  { %2424 = vtanh.f32 %v3032_v5 }
 0x366   :  { %v2421_v58 = vpop.eup %2420 }
 0x367   :  { %v2423_v60 = vpop.eup %2422  ;;  %v1101_v15 = vmul.f32 %v2421_v58, %v2419_v7 }
 0x369   :  { %v2425_v11 = vpop.eup %2424 }
 0x36a   :  { %v1102_v6 = vmul.f32 %v2425_v11, %v2423_v60 }
 0x36c   :  { %v1103_v22 = vpack.c.bf16 %v1102_v6, %v1101_v15 }
 0x36e   :  { %2139 = vst [vmem:[%s3329_s4 + $0x10] sm:$0xff] %v1103_v22   ;;  %1158 = vmatmul.mubr.bf16.vlgmr.msra.gmra.mrb[12].mxu0 %v1103_v22  ;;  %1201 = vmatmul.mubr.bf16.vlgmr.msra.gmra.mrb[12].mxu1 %v1103_v22 }
 0x36f   :  { %1290 = vmatpush1.bf16.msra.mxu0 %v2700_v13  ;;  %1333 = vmatpush1.bf16.msra.mxu1 %v2717_v19  ;;  %v3070_v13 = vld [vmem:[#allocation5 + $0x4] ss:$16 sps:$4 sm:$0xff]  }
 0x370   :  { %1291 = vmatprep.subr.bf16.mxu0 %v2703_v14  ;;  %1334 = vmatprep.subr.bf16.mxu1 %v2721_v20 }
 0x371   :  { %1321 = vmatprep.mubr.bf16.mxu0 %v2645_v0  ;;  %1364 = vmatprep.mubr.bf16.mxu1 %v2645_v0 }
 0x373   :  { %1292 = vmatpush1.bf16.msra.mxu0 %v2715_v18  ;;  %1335 = vmatpush1.bf16.msra.mxu1 %v2734_v24 }
 0x374   :  { %1293 = vmatprep.subr.bf16.mxu0 %v2725_v21  ;;  %1336 = vmatprep.subr.bf16.mxu1 %v2738_v26 }
 0x377   :  { %1294 = vmatpush1.bf16.msra.mxu0 %v2730_v23  ;;  %1337 = vmatpush1.bf16.msra.mxu1 %v2756_v31 }
 0x378   :  { %1295 = vmatprep.subr.bf16.mxu0 %v2736_v25  ;;  %1338 = vmatprep.subr.bf16.mxu1 %v2760_v32 }
 0x37b   :  { %1296 = vmatpush1.bf16.msra.mxu0 %v2752_v29  ;;  %1339 = vmatpush1.bf16.msra.mxu1 %v2766_v35 }
 0x37c   :  { %1297 = vmatprep.subr.bf16.mxu0 %v2754_v30  ;;  %1340 = vmatprep.subr.bf16.mxu1 %v2772_v37 }
 0x37f   :  { %1298 = vmatpush1.bf16.msra.mxu0 %v2762_v34  ;;  %1341 = vmatpush1.bf16.msra.mxu1 %v2790_v42 }
 0x380   :  { %1299 = vmatprep.subr.bf16.mxu0 %v2770_v36  ;;  %1342 = vmatprep.subr.bf16.mxu1 %v2794_v43 }
 0x383   :  { %1300 = vmatpush1.bf16.msra.mxu0 %v2786_v40  ;;  %1343 = vmatpush1.bf16.msra.mxu1 %v2800_v46 }
 0x384   :  { %1301 = vmatprep.subr.bf16.mxu0 %v2788_v41  ;;  %1344 = vmatprep.subr.bf16.mxu1 %v2806_v48 }
 0x387   :  { %1302 = vmatpush1.bf16.msra.mxu0 %v2798_v45  ;;  %1345 = vmatpush1.bf16.msra.mxu1 %v2822_v52 }
 0x388   :  { %1303 = vmatprep.subr.bf16.mxu0 %v2804_v47  ;;  %1346 = vmatprep.subr.bf16.mxu1 %v2826_v53 }
 0x38b   :  { %1304 = vmatpush1.bf16.msra.mxu0 %v2820_v51  ;;  %1347 = vmatpush1.bf16.msra.mxu1 %v2830_v55 }
 0x38c   :  { %1453 = vmatprep.subr.bf16.mxu0 %v3070_v13  ;;  %1496 = vmatprep.subr.bf16.mxu1 %v2708_v16 }
 0x441   :  { %v1159_v14 = vpop.f32.mrb[12].mxu0  ;;  %v1202_v18 = vpop.f32.mrb[12].mxu1 }
 0x442   :  { %v2157_v19 = vadd.f32 %v1159_v14, %v2907_v8  ;;  %v1161_v20 = vpop.f32.mrb[13].mxu0  ;;  %v1204_v21 = vpop.f32.mrb[13].mxu1  ;;  %v2189_v37 = vadd.f32 %v1202_v18, %v2917_v61  ;;  %v3096_v18 = vld [vmem:[#allocation5 + $0x8] ss:$16 sps:$4 sm:$0xff]  }
 0x443   :  { %v2158_v23 = vadd.f32 %v1161_v20, %v2909_v10  ;;  %v1163_v24 = vpop.f32.mrb[14].mxu0  ;;  %v1206_v25 = vpop.f32.mrb[14].mxu1  ;;  %v2190_v36 = vadd.f32 %v1204_v21, %v2914_v57  ;;  %v3102_v20 = vld [vmem:[#allocation5 + $0x2c] ss:$16 sps:$4 sm:$0xff]   ;;  %v3107_v21 = vld [vmem:[#allocation5 + $0x20] ss:$16 sps:$4 sm:$0xff]  }
 0x444   :  { %v2032_v26 = vmul.f32 -1.442695, %v2157_v19  ;;  %v2159_v29 = vadd.f32 %v1163_v24, %v2907_v8  ;;  %v1165_v30 = vpop.f32.mrb[15].mxu0  ;;  %v1208_v31 = vpop.f32.mrb[15].mxu1  ;;  %v2191_v42 = vadd.f32 %v1206_v25, %v2917_v61  ;;  %v3099_v19 = vld [vmem:[#allocation5 + $0x24] ss:$16 sps:$4 sm:$0xff]  }
 0x445   :  { %v2034_v32 = vmul.f32 -1.442695, %v2158_v23  ;;  %v2160_v34 = vadd.f32 %v1165_v30, %v2909_v10  ;;  %v2036_v40 = vmul.f32 -1.442695, %v2190_v36  ;;  %v2192_v41 = vadd.f32 %v1208_v31, %v2914_v57  ;;  %v3110_v23 = vld [vmem:[#allocation5 + $0x28] ss:$16 sps:$4 sm:$0xff]  }
 0x446   :  { %2426 = vpow2.f32 %v2032_v26  ;;  %v2033_v16 = vmul.f32 -1.442695, %v2159_v29  ;;  %v3113_v24 = vld [vmem:[#allocation5 + $0x44] ss:$16 sps:$4 sm:$0xff]   ;;  %v3116_v25 = vld [vmem:[#allocation5 + $0x4c] ss:$16 sps:$4 sm:$0xff]  }
 0x447   :  { %2428 = vpow2.f32 %v2034_v32  ;;  %v2035_v35 = vmul.f32 -1.442695, %v2160_v34  ;;  %v2037_v47 = vmul.f32 -1.442695, %v2192_v41  ;;  %v3119_v26 = vld [vmem:[#allocation5 + $0x40] ss:$16 sps:$4 sm:$0xff]  }
 0x448   :  { %2430 = vpow2.f32 %v2033_v16  ;;  %v3122_v29 = vld [vmem:[#allocation5 + $0x48] ss:$16 sps:$4 sm:$0xff]   ;;  %v3125_v30 = vld [vmem:[#allocation5 + $0x64] ss:$16 sps:$4 sm:$0xff]   ;;  %v3128_v31 = vld [vmem:[#allocation5 + $0x6c] ss:$16 sps:$4 sm:$0xff]  }
 0x449   :  { %2432 = vpow2.f32 %v2035_v35  ;;  %v3131_v32 = vld [vmem:[#allocation5 + $0x60] ss:$16 sps:$4 sm:$0xff]   ;;  %v3134_v34 = vld [vmem:[#allocation5 + $0x68] ss:$16 sps:$4 sm:$0xff]   ;;  %v3137_v16 = vld [vmem:[#allocation5 + $0x84] ss:$16 sps:$4 sm:$0xff]  }
 0x44a   :  { %2434 = vtanh.f32 %v2189_v37  ;;  %v3140_v35 = vld [vmem:[#allocation5 + $0x8c] ss:$16 sps:$4 sm:$0xff]   ;;  %v3143_v36 = vld [vmem:[#allocation5 + $0x80] ss:$16 sps:$4 sm:$0xff]   ;;  %v3146_v37 = vld [vmem:[#allocation5 + $0x88] ss:$16 sps:$4 sm:$0xff]  }
 0x44b   :  { %2436 = vpow2.f32 %v2036_v40  ;;  %v3149_v40 = vld [vmem:[#allocation5 + $0xa4] ss:$16 sps:$4 sm:$0xff]   ;;  %v3152_v41 = vld [vmem:[#allocation5 + $0xac] ss:$16 sps:$4 sm:$0xff]  }
 0x44c   :  { %2438 = vtanh.f32 %v2191_v42  ;;  %v3155_v42 = vld [vmem:[#allocation5 + $0xa0] ss:$16 sps:$4 sm:$0xff]  }
 0x450   :  { %v2427_v43 = vpop.eup %2426 }
 0x451   :  { %v2429_v45 = vpop.eup %2428  ;;  %v1225_v46 = vadd.f32 1.0, %v2427_v43  ;;  %v3158_v43 = vld [vmem:[#allocation5 + $0xa8] ss:$16 sps:$4 sm:$0xff]  }
 0x452   :  { %v1237_v4 = vadd.f32 1.0, %v2429_v45  ;;  %v2431_v1 = vpop.eup %2430  ;;  %v3161_v45 = vld [vmem:[#allocation5 + $0xc4] ss:$16 sps:$4 sm:$0xff]  }
 0x453   :  { %2440 = vrcp.f32 %v1225_v46  ;;  %v1226_v27 = vadd.f32 1.0, %v2431_v1  ;;  %v2433_v17 = vpop.eup %2432  ;;  %v3165_v46 = vld [vmem:[#allocation5 + $0xc0] ss:$16 sps:$4 sm:$0xff]  }
 0x454   :  { %2442 = vrcp.f32 %v1237_v4  ;;  %v1238_v12 = vadd.f32 1.0, %v2433_v17  ;;  %v2435_v28 = vpop.eup %2434  ;;  %v3176_v4 = vld [vmem:[#allocation5 + $0xc] ss:$16 sps:$4 sm:$0xff]  }
 0x455   :  { %2444 = vpow2.f32 %v2037_v47  ;;  %v2437_v33 = vpop.eup %2436  ;;  %v3169_v47 = vld [vmem:[#allocation5 + $0xe4] ss:$16 sps:$4 sm:$0xff]  }
 0x456   :  { %2446 = vrcp.f32 %v1226_v27  ;;  %v2439_v38 = vpop.eup %2438  ;;  %v1251_v9 = vadd.f32 1.0, %v2437_v33 }
 0x457   :  { %2448 = vrcp.f32 %v1238_v12 }
 0x458   :  { %2450 = vrcp.f32 %v1251_v9 }
 0x45d   :  { %v2441_v39 = vpop.eup %2440 }
 0x45e   :  { %v2443_v44 = vpop.eup %2442  ;;  %v1259_v49 = vmul.f32 %v2441_v39, %v2435_v28 }
 0x45f   :  { %v2445_v50 = vpop.eup %2444  ;;  %v1257_v54 = vmul.f32 %v2443_v44, %v3028_v59 }
 0x460   :  { %v2447_v56 = vpop.eup %2446  ;;  %v1252_v3 = vadd.f32 1.0, %v2445_v50 }
 0x461   :  { %v3083_v62 = vadd.f32 %v1259_v49, %v1257_v54  ;;  %v1260_v63 = vmul.f32 %v2447_v56, %v2439_v38  ;;  %v2449_v2 = vpop.eup %2448 }
 0x462   :  { %v1258_v7 = vmul.f32 %v2449_v2, %v3032_v5  ;;  %v2451_v60 = vpop.eup %2450  ;;  %v3093_v5 = vld [vmem:[#allocation5] ss:$16 sps:$4 sm:$0xff]  }
 0x463   :  { %2452 = vtanh.f32 %v3083_v62 }
 0x464   :  { %v3087_v58 = vadd.f32 %v1260_v63, %v1258_v7  ;;  %2454 = vrcp.f32 %v1252_v3 }
 0x466   :  { %2456 = vtanh.f32 %v3087_v58 }
 0x46d   :  { %v2453_v11 = vpop.eup %2452 }
 0x46e   :  { %v2455_v59 = vpop.eup %2454  ;;  %v1265_v6 = vmul.f32 %v2453_v11, %v2451_v60 }
 0x470   :  { %v2457_v15 = vpop.eup %2456 }
 0x471   :  { %v1266_v22 = vmul.f32 %v2457_v15, %v2455_v59 }
 0x473   :  { %v1267_v14 = vpack.c.bf16 %v1266_v22, %v1265_v6 }
 0x475   :  { %2140 = vst [vmem:[%s3329_s4 + $0x18] sm:$0xff] %v1267_v14   ;;  %1322 = vmatmul.mubr.bf16.vlgmr.msra.gmra.mrb[16].mxu0 %v1267_v14  ;;  %1365 = vmatmul.mubr.bf16.vlgmr.msra.gmra.mrb[16].mxu1 %v1267_v14 }
 0x476   :  { %1454 = vmatpush1.bf16.msra.mxu0 %v3093_v5  ;;  %1497 = vmatpush1.bf16.msra.mxu1 %v3096_v18 }
 0x477   :  { %1455 = vmatprep.subr.bf16.mxu0 %v3099_v19  ;;  %1498 = vmatprep.subr.bf16.mxu1 %v3102_v20 }
 0x478   :  { %1485 = vmatprep.mubr.bf16.mxu0 %v2645_v0  ;;  %1528 = vmatprep.mubr.bf16.mxu1 %v2645_v0 }
 0x47a   :  { %1456 = vmatpush1.bf16.msra.mxu0 %v3107_v21  ;;  %1499 = vmatpush1.bf16.msra.mxu1 %v3110_v23 }
 0x47b   :  { %1457 = vmatprep.subr.bf16.mxu0 %v3113_v24  ;;  %1500 = vmatprep.subr.bf16.mxu1 %v3116_v25 }
 0x47e   :  { %1458 = vmatpush1.bf16.msra.mxu0 %v3119_v26  ;;  %1501 = vmatpush1.bf16.msra.mxu1 %v3122_v29 }
 0x47f   :  { %1459 = vmatprep.subr.bf16.mxu0 %v3125_v30  ;;  %1502 = vmatprep.subr.bf16.mxu1 %v3128_v31 }
 0x482   :  { %1460 = vmatpush1.bf16.msra.mxu0 %v3131_v32  ;;  %1503 = vmatpush1.bf16.msra.mxu1 %v3134_v34 }
 0x483   :  { %1461 = vmatprep.subr.bf16.mxu0 %v3137_v16  ;;  %1504 = vmatprep.subr.bf16.mxu1 %v3140_v35 }
 0x486   :  { %1462 = vmatpush1.bf16.msra.mxu0 %v3143_v36  ;;  %1505 = vmatpush1.bf16.msra.mxu1 %v3146_v37 }
 0x487   :  { %1463 = vmatprep.subr.bf16.mxu0 %v3149_v40  ;;  %1506 = vmatprep.subr.bf16.mxu1 %v3152_v41 }
 0x48a   :  { %1464 = vmatpush1.bf16.msra.mxu0 %v3155_v42  ;;  %1507 = vmatpush1.bf16.msra.mxu1 %v3158_v43 }
 0x48b   :  { %1465 = vmatprep.subr.bf16.mxu0 %v3161_v45  ;;  %1508 = vmatprep.subr.bf16.mxu1 %v2806_v48 }
 0x48e   :  { %1466 = vmatpush1.bf16.msra.mxu0 %v3165_v46  ;;  %1509 = vmatpush1.bf16.msra.mxu1 %v2822_v52 }
 0x48f   :  { %1467 = vmatprep.subr.bf16.mxu0 %v3169_v47  ;;  %1510 = vmatprep.subr.bf16.mxu1 %v2826_v53 }
 0x492   :  { %1468 = vmatpush1.bf16.msra.mxu0 %v2820_v51  ;;  %1511 = vmatpush1.bf16.msra.mxu1 %v2830_v55 }
 0x493   :  { %1617 = vmatprep.subr.bf16.mxu0 %v3070_v13  ;;  %1660 = vmatprep.subr.bf16.mxu1 %v3176_v4 }
 0x548   :  { %v1323_v48 = vpop.f32.mrb[16].mxu0  ;;  %v1366_v1 = vpop.f32.mrb[16].mxu1 }
 0x549   :  { %v2161_v52 = vadd.f32 %v1323_v48, %v2907_v8  ;;  %v1325_v27 = vpop.f32.mrb[17].mxu0  ;;  %v1368_v17 = vpop.f32.mrb[17].mxu1  ;;  %v2193_v56 = vadd.f32 %v1366_v1, %v2917_v61 }
 0x54a   :  { %v2162_v12 = vadd.f32 %v1325_v27, %v2909_v10  ;;  %v1327_v28 = vpop.f32.mrb[18].mxu0  ;;  %v1370_v53 = vpop.f32.mrb[18].mxu1  ;;  %v2194_v54 = vadd.f32 %v1368_v17, %v2914_v57 }
 0x54b   :  { %v2042_v33 = vmul.f32 -1.442695, %v2161_v52  ;;  %v2163_v51 = vadd.f32 %v1327_v28, %v2907_v8  ;;  %v1329_v55 = vpop.f32.mrb[19].mxu0  ;;  %v1372_v38 = vpop.f32.mrb[19].mxu1  ;;  %v2195_v2 = vadd.f32 %v1370_v53, %v2917_v61 }
 0x54c   :  { %v2044_v39 = vmul.f32 -1.442695, %v2162_v12  ;;  %v2164_v44 = vadd.f32 %v1329_v55, %v2909_v10  ;;  %v2046_v9 = vmul.f32 -1.442695, %v2194_v54  ;;  %v2196_v63 = vadd.f32 %v1372_v38, %v2914_v57 }
 0x54d   :  { %2458 = vpow2.f32 %v2042_v33  ;;  %v2043_v49 = vmul.f32 -1.442695, %v2163_v51 }
 0x54e   :  { %2460 = vpow2.f32 %v2044_v39  ;;  %v2045_v50 = vmul.f32 -1.442695, %v2164_v44  ;;  %v2047_v11 = vmul.f32 -1.442695, %v2196_v63 }
 0x54f   :  { %2462 = vpow2.f32 %v2043_v49 }
 0x550   :  { %2464 = vpow2.f32 %v2045_v50 }
 0x551   :  { %2466 = vtanh.f32 %v2193_v56 }
 0x552   :  { %2468 = vpow2.f32 %v2046_v9 }
 0x553   :  { %2470 = vtanh.f32 %v2195_v2 }
 0x557   :  { %v2459_v3 = vpop.eup %2458 }
 0x558   :  { %v2461_v7 = vpop.eup %2460  ;;  %v1389_v60 = vadd.f32 1.0, %v2459_v3 }
 0x559   :  { %v1401_v59 = vadd.f32 1.0, %v2461_v7  ;;  %v2463_v15 = vpop.eup %2462  ;;  %v3227_v7 = vld [vmem:[#allocation5 + $0xc8] ss:$16 sps:$4 sm:$0xff]  }
 0x55a   :  { %2472 = vrcp.f32 %v1389_v60  ;;  %v1390_v6 = vadd.f32 1.0, %v2463_v15  ;;  %v2465_v22 = vpop.eup %2464  ;;  %v3231_v60 = vld [vmem:[#allocation5 + $0xec] ss:$16 sps:$4 sm:$0xff]  }
 0x55b   :  { %2474 = vrcp.f32 %v1401_v59  ;;  %v1402_v14 = vadd.f32 1.0, %v2465_v22  ;;  %v2467_v48 = vpop.eup %2466  ;;  %v3237_v59 = vld [vmem:[#allocation5 + $0xe8] ss:$16 sps:$4 sm:$0xff]  }
 0x55c   :  { %2476 = vpow2.f32 %v2047_v11  ;;  %v2469_v1 = vpop.eup %2468  ;;  %v3234_v11 = vld [vmem:[#allocation5 + $0xe0] ss:$16 sps:$4 sm:$0xff]  }
 0x55d   :  { %2478 = vrcp.f32 %v1390_v6  ;;  %v2471_v52 = vpop.eup %2470  ;;  %v1415_v51 = vadd.f32 1.0, %v2469_v1 }
 0x55e   :  { %2480 = vrcp.f32 %v1402_v14 }
 0x55f   :  { %2482 = vrcp.f32 %v1415_v51 }
 0x564   :  { %v2473_v27 = vpop.eup %2472 }
 0x565   :  { %v2475_v17 = vpop.eup %2474  ;;  %v1423_v12 = vmul.f32 %v2473_v27, %v2467_v48 }
 0x566   :  { %v2477_v28 = vpop.eup %2476  ;;  %v1421_v53 = vmul.f32 %v2475_v17, %v3083_v62 }
 0x567   :  { %v2479_v33 = vpop.eup %2478  ;;  %v1416_v44 = vadd.f32 1.0, %v2477_v28 }
 0x568   :  { %v3188_v55 = vadd.f32 %v1423_v12, %v1421_v53  ;;  %v1424_v38 = vmul.f32 %v2479_v33, %v2471_v52  ;;  %v2481_v39 = vpop.eup %2480 }
 0x569   :  { %v1422_v49 = vmul.f32 %v2481_v39, %v3087_v58  ;;  %v2483_v54 = vpop.eup %2482  ;;  %v3223_v58 = vld [vmem:[#allocation5 + $0xcc] ss:$16 sps:$4 sm:$0xff]  }
 0x56a   :  { %2484 = vtanh.f32 %v3188_v55 }
 0x56b   :  { %v3192_v50 = vadd.f32 %v1424_v38, %v1422_v49  ;;  %2486 = vrcp.f32 %v1416_v44 }
 0x56d   :  { %2488 = vtanh.f32 %v3192_v50 }
 0x574   :  { %v2485_v56 = vpop.eup %2484 }
 0x575   :  { %v2487_v62 = vpop.eup %2486  ;;  %v1429_v63 = vmul.f32 %v2485_v56, %v2483_v54 }
 0x577   :  { %v2489_v9 = vpop.eup %2488 }
 0x578   :  { %v1430_v2 = vmul.f32 %v2489_v9, %v2487_v62 }
 0x57a   :  { %v1431_v3 = vpack.c.bf16 %v1430_v2, %v1429_v63 }
 0x57c   :  { %2141 = vst [vmem:[%s3329_s4 + $0x20] sm:$0xff] %v1431_v3   ;;  %1486 = vmatmul.mubr.bf16.vlgmr.msra.gmra.mrb[20].mxu0 %v1431_v3  ;;  %1529 = vmatmul.mubr.bf16.vlgmr.msra.gmra.mrb[20].mxu1 %v1431_v3 }
 0x57d   :  { %1618 = vmatpush1.bf16.msra.mxu0 %v3093_v5  ;;  %1661 = vmatpush1.bf16.msra.mxu1 %v3096_v18 }
 0x57e   :  { %1619 = vmatprep.subr.bf16.mxu0 %v3099_v19  ;;  %1662 = vmatprep.subr.bf16.mxu1 %v3102_v20 }
 0x57f   :  { %1649 = vmatprep.mubr.bf16.mxu0 %v2645_v0  ;;  %1692 = vmatprep.mubr.bf16.mxu1 %v2645_v0 }
 0x581   :  { %1620 = vmatpush1.bf16.msra.mxu0 %v3107_v21  ;;  %1663 = vmatpush1.bf16.msra.mxu1 %v3110_v23 }
 0x582   :  { %1621 = vmatprep.subr.bf16.mxu0 %v3113_v24  ;;  %1664 = vmatprep.subr.bf16.mxu1 %v3116_v25 }
 0x585   :  { %1622 = vmatpush1.bf16.msra.mxu0 %v3119_v26  ;;  %1665 = vmatpush1.bf16.msra.mxu1 %v3122_v29 }
 0x586   :  { %1623 = vmatprep.subr.bf16.mxu0 %v3125_v30  ;;  %1666 = vmatprep.subr.bf16.mxu1 %v3128_v31 }
 0x589   :  { %1624 = vmatpush1.bf16.msra.mxu0 %v3131_v32  ;;  %1667 = vmatpush1.bf16.msra.mxu1 %v3134_v34 }
 0x58a   :  { %1625 = vmatprep.subr.bf16.mxu0 %v3137_v16  ;;  %1668 = vmatprep.subr.bf16.mxu1 %v3140_v35 }
 0x58d   :  { %1626 = vmatpush1.bf16.msra.mxu0 %v3143_v36  ;;  %1669 = vmatpush1.bf16.msra.mxu1 %v3146_v37 }
 0x58e   :  { %1627 = vmatprep.subr.bf16.mxu0 %v3149_v40  ;;  %1670 = vmatprep.subr.bf16.mxu1 %v3152_v41 }
 0x591   :  { %1628 = vmatpush1.bf16.msra.mxu0 %v3155_v42  ;;  %1671 = vmatpush1.bf16.msra.mxu1 %v3158_v43 }
 0x592   :  { %1629 = vmatprep.subr.bf16.mxu0 %v3161_v45  ;;  %1672 = vmatprep.subr.bf16.mxu1 %v3223_v58 }
 0x595   :  { %1630 = vmatpush1.bf16.msra.mxu0 %v3165_v46  ;;  %1673 = vmatpush1.bf16.msra.mxu1 %v3227_v7 }
 0x596   :  { %1631 = vmatprep.subr.bf16.mxu0 %v3169_v47  ;;  %1674 = vmatprep.subr.bf16.mxu1 %v3231_v60 }
 0x599   :  { %1632 = vmatpush1.bf16.msra.mxu0 %v3234_v11  ;;  %1675 = vmatpush1.bf16.msra.mxu1 %v3237_v59 }
 0x59a   :  { %1781 = vmatprep.subr.bf16.mxu0 %v3070_v13  ;;  %1824 = vmatprep.subr.bf16.mxu1 %v3176_v4 }
 0x64f   :  { %v1487_v15 = vpop.f32.mrb[20].mxu0  ;;  %v1530_v6 = vpop.f32.mrb[20].mxu1 }
 0x650   :  { %v2165_v22 = vadd.f32 %v1487_v15, %v2907_v8  ;;  %v1489_v14 = vpop.f32.mrb[21].mxu0  ;;  %v1532_v48 = vpop.f32.mrb[21].mxu1  ;;  %v2197_v39 = vadd.f32 %v1530_v6, %v2917_v61 }
 0x651   :  { %v2166_v1 = vadd.f32 %v1489_v14, %v2909_v10  ;;  %v1491_v52 = vpop.f32.mrb[22].mxu0  ;;  %v1534_v27 = vpop.f32.mrb[22].mxu1  ;;  %v2198_v38 = vadd.f32 %v1532_v48, %v2914_v57 }
 0x652   :  { %v2052_v17 = vmul.f32 -1.442695, %v2165_v22  ;;  %v2167_v12 = vadd.f32 %v1491_v52, %v2907_v8  ;;  %v1493_v28 = vpop.f32.mrb[23].mxu0  ;;  %v1536_v53 = vpop.f32.mrb[23].mxu1  ;;  %v2199_v54 = vadd.f32 %v1534_v27, %v2917_v61 }
 0x653   :  { %v2054_v33 = vmul.f32 -1.442695, %v2166_v1  ;;  %v2168_v13 = vadd.f32 %v1493_v28, %v2909_v10  ;;  %v2056_v44 = vmul.f32 -1.442695, %v2198_v38  ;;  %v2200_v49 = vadd.f32 %v1536_v53, %v2914_v57 }
 0x654   :  { %2490 = vpow2.f32 %v2052_v17  ;;  %v2053_v4 = vmul.f32 -1.442695, %v2167_v12 }
 0x655   :  { %2492 = vpow2.f32 %v2054_v33  ;;  %v2055_v51 = vmul.f32 -1.442695, %v2168_v13  ;;  %v2057_v63 = vmul.f32 -1.442695, %v2200_v49 }
 0x656   :  { %2494 = vpow2.f32 %v2053_v4 }
 0x657   :  { %2496 = vpow2.f32 %v2055_v51 }
 0x658   :  { %2498 = vtanh.f32 %v2197_v39 }
 0x659   :  { %2500 = vpow2.f32 %v2056_v44 }
 0x65a   :  { %2502 = vtanh.f32 %v2199_v54 }
 0x65e   :  { %v2491_v56 = vpop.eup %2490 }
 0x65f   :  { %v2493_v62 = vpop.eup %2492  ;;  %v1553_v9 = vadd.f32 1.0, %v2491_v56 }
 0x660   :  { %v1565_v2 = vadd.f32 1.0, %v2493_v62  ;;  %v2495_v3 = vpop.eup %2494 }
 0x661   :  { %2504 = vrcp.f32 %v1553_v9  ;;  %v1554_v15 = vadd.f32 1.0, %v2495_v3  ;;  %v2497_v22 = vpop.eup %2496 }
 0x662   :  { %2506 = vrcp.f32 %v1565_v2  ;;  %v1566_v6 = vadd.f32 1.0, %v2497_v22  ;;  %v2499_v14 = vpop.eup %2498 }
 0x663   :  { %2508 = vpow2.f32 %v2057_v63  ;;  %v2501_v48 = vpop.eup %2500 }
 0x664   :  { %2510 = vrcp.f32 %v1554_v15  ;;  %v2503_v1 = vpop.eup %2502  ;;  %v1579_v33 = vadd.f32 1.0, %v2501_v48 }
 0x665   :  { %2512 = vrcp.f32 %v1566_v6 }
 0x666   :  { %2514 = vrcp.f32 %v1579_v33 }
 0x66b   :  { %v2505_v52 = vpop.eup %2504 }
 0x66c   :  { %v2507_v27 = vpop.eup %2506  ;;  %v1587_v17 = vmul.f32 %v2505_v52, %v2499_v14 }
 0x66d   :  { %v2509_v12 = vpop.eup %2508  ;;  %v1585_v28 = vmul.f32 %v2507_v27, %v3188_v55 }
 0x66e   :  { %v2511_v53 = vpop.eup %2510  ;;  %v1580_v38 = vadd.f32 1.0, %v2509_v12 }
 0x66f   :  { %v3251_v13 = vadd.f32 %v1587_v17, %v1585_v28  ;;  %v1588_v4 = vmul.f32 %v2511_v53, %v2503_v1  ;;  %v2513_v51 = vpop.eup %2512 }
 0x670   :  { %v1586_v39 = vmul.f32 %v2513_v51, %v3192_v50  ;;  %v2515_v49 = vpop.eup %2514 }
 0x671   :  { %2516 = vtanh.f32 %v3251_v13 }
 0x672   :  { %v3255_v44 = vadd.f32 %v1588_v4, %v1586_v39  ;;  %2518 = vrcp.f32 %v1580_v38 }
 0x674   :  { %2520 = vtanh.f32 %v3255_v44 }
 0x67b   :  { %v2517_v54 = vpop.eup %2516 }
 0x67c   :  { %v2519_v55 = vpop.eup %2518  ;;  %v1593_v62 = vmul.f32 %v2517_v54, %v2515_v49 }
 0x67e   :  { %v2521_v56 = vpop.eup %2520 }
 0x67f   :  { %v1594_v9 = vmul.f32 %v2521_v56, %v2519_v55 }
 0x681   :  { %v1595_v63 = vpack.c.bf16 %v1594_v9, %v1593_v62 }
 0x683   :  { %2142 = vst [vmem:[%s3329_s4 + $0x28] sm:$0xff] %v1595_v63   ;;  %1650 = vmatmul.mubr.bf16.vlgmr.msra.gmra.mrb[24].mxu0 %v1595_v63  ;;  %1693 = vmatmul.mubr.bf16.vlgmr.msra.gmra.mrb[24].mxu1 %v1595_v63 }
 0x684   :  { %1782 = vmatpush1.bf16.msra.mxu0 %v3093_v5  ;;  %1825 = vmatpush1.bf16.msra.mxu1 %v3096_v18 }
 0x685   :  { %1783 = vmatprep.subr.bf16.mxu0 %v3099_v19  ;;  %1826 = vmatprep.subr.bf16.mxu1 %v3102_v20 }
 0x686   :  { %1813 = vmatprep.mubr.bf16.mxu0 %v2645_v0  ;;  %1856 = vmatprep.mubr.bf16.mxu1 %v2645_v0 }
 0x688   :  { %1784 = vmatpush1.bf16.msra.mxu0 %v3107_v21  ;;  %1827 = vmatpush1.bf16.msra.mxu1 %v3110_v23 }
 0x689   :  { %1785 = vmatprep.subr.bf16.mxu0 %v3113_v24  ;;  %1828 = vmatprep.subr.bf16.mxu1 %v3116_v25 }
 0x68c   :  { %1786 = vmatpush1.bf16.msra.mxu0 %v3119_v26  ;;  %1829 = vmatpush1.bf16.msra.mxu1 %v3122_v29 }
 0x68d   :  { %1787 = vmatprep.subr.bf16.mxu0 %v3125_v30  ;;  %1830 = vmatprep.subr.bf16.mxu1 %v3128_v31 }
 0x690   :  { %1788 = vmatpush1.bf16.msra.mxu0 %v3131_v32  ;;  %1831 = vmatpush1.bf16.msra.mxu1 %v3134_v34 }
 0x691   :  { %1789 = vmatprep.subr.bf16.mxu0 %v3137_v16  ;;  %1832 = vmatprep.subr.bf16.mxu1 %v3140_v35 }
 0x694   :  { %1790 = vmatpush1.bf16.msra.mxu0 %v3143_v36  ;;  %1833 = vmatpush1.bf16.msra.mxu1 %v3146_v37 }
 0x695   :  { %1791 = vmatprep.subr.bf16.mxu0 %v3149_v40  ;;  %1834 = vmatprep.subr.bf16.mxu1 %v3152_v41 }
 0x698   :  { %1792 = vmatpush1.bf16.msra.mxu0 %v3155_v42  ;;  %1835 = vmatpush1.bf16.msra.mxu1 %v3158_v43 }
 0x699   :  { %1793 = vmatprep.subr.bf16.mxu0 %v3161_v45  ;;  %1836 = vmatprep.subr.bf16.mxu1 %v3223_v58 }
 0x69c   :  { %1794 = vmatpush1.bf16.msra.mxu0 %v3165_v46  ;;  %1837 = vmatpush1.bf16.msra.mxu1 %v3227_v7 }
 0x69d   :  { %1795 = vmatprep.subr.bf16.mxu0 %v3169_v47  ;;  %1838 = vmatprep.subr.bf16.mxu1 %v3231_v60 }
 0x6a0   :  { %1796 = vmatpush1.bf16.msra.mxu0 %v3234_v11  ;;  %1839 = vmatpush1.bf16.msra.mxu1 %v3237_v59 }
 0x756   :  { %v1651_v0 = vpop.f32.mrb[24].mxu0  ;;  %v1694_v5 = vpop.f32.mrb[24].mxu1 }
 0x757   :  { %v2169_v18 = vadd.f32 %v1651_v0, %v2907_v8  ;;  %v1653_v19 = vpop.f32.mrb[25].mxu0  ;;  %v1696_v20 = vpop.f32.mrb[25].mxu1  ;;  %v2201_v36 = vadd.f32 %v1694_v5, %v2917_v61 }
 0x758   :  { %v2170_v21 = vadd.f32 %v1653_v19, %v2909_v10  ;;  %v1655_v23 = vpop.f32.mrb[26].mxu0  ;;  %v1698_v24 = vpop.f32.mrb[26].mxu1  ;;  %v2202_v35 = vadd.f32 %v1696_v20, %v2914_v57 }
 0x759   :  { %v2062_v25 = vmul.f32 -1.442695, %v2169_v18  ;;  %v2171_v26 = vadd.f32 %v1655_v23, %v2907_v8  ;;  %v1657_v29 = vpop.f32.mrb[27].mxu0  ;;  %v1700_v30 = vpop.f32.mrb[27].mxu1  ;;  %v2203_v41 = vadd.f32 %v1698_v24, %v2917_v61 }
 0x75a   :  { %v2064_v31 = vmul.f32 -1.442695, %v2170_v21  ;;  %v2172_v32 = vadd.f32 %v1657_v29, %v2909_v10  ;;  %v2066_v37 = vmul.f32 -1.442695, %v2202_v35  ;;  %v2204_v40 = vadd.f32 %v1700_v30, %v2914_v57 }
 0x75b   :  { %2522 = vpow2.f32 %v2062_v25  ;;  %v2063_v34 = vmul.f32 -1.442695, %v2171_v26 }
 0x75c   :  { %2524 = vpow2.f32 %v2064_v31  ;;  %v2065_v16 = vmul.f32 -1.442695, %v2172_v32  ;;  %v2067_v46 = vmul.f32 -1.442695, %v2204_v40 }
 0x75d   :  { %2526 = vpow2.f32 %v2063_v34 }
 0x75e   :  { %2528 = vpow2.f32 %v2065_v16 }
 0x75f   :  { %2530 = vtanh.f32 %v2201_v36 }
 0x760   :  { %2532 = vpow2.f32 %v2066_v37 }
 0x761   :  { %2534 = vtanh.f32 %v2203_v41 }
 0x765   :  { %v2523_v42 = vpop.eup %2522 }
 0x766   :  { %v2525_v43 = vpop.eup %2524  ;;  %v1717_v45 = vadd.f32 1.0, %v2523_v42 }
 0x767   :  { %v1729_v47 = vadd.f32 1.0, %v2525_v43  ;;  %v2527_v50 = vpop.eup %2526 }
 0x768   :  { %2536 = vrcp.f32 %v1717_v45  ;;  %v1718_v58 = vadd.f32 1.0, %v2527_v50  ;;  %v2529_v7 = vpop.eup %2528 }
 0x769   :  { %2538 = vrcp.f32 %v1729_v47  ;;  %v1730_v60 = vadd.f32 1.0, %v2529_v7  ;;  %v2531_v11 = vpop.eup %2530 }
 0x76a   :  { %2540 = vpow2.f32 %v2067_v46  ;;  %v2533_v59 = vpop.eup %2532 }
 0x76b   :  { %2542 = vrcp.f32 %v1718_v58  ;;  %v2535_v2 = vpop.eup %2534  ;;  %v1743_v1 = vadd.f32 1.0, %v2533_v59 }
 0x76c   :  { %2544 = vrcp.f32 %v1730_v60 }
 0x76d   :  { %2546 = vrcp.f32 %v1743_v1 }
 0x772   :  { %v2537_v3 = vpop.eup %2536 }
 0x773   :  { %v2539_v15 = vpop.eup %2538  ;;  %v1751_v22 = vmul.f32 %v2537_v3, %v2531_v11 }
 0x774   :  { %v2541_v6 = vpop.eup %2540  ;;  %v1749_v14 = vmul.f32 %v2539_v15, %v3251_v13 }
 0x775   :  { %v2543_v48 = vpop.eup %2542  ;;  %v1744_v12 = vadd.f32 1.0, %v2541_v6 }
 0x776   :  { %v3302_v52 = vadd.f32 %v1751_v22, %v1749_v14  ;;  %v1752_v27 = vmul.f32 %v2543_v48, %v2535_v2  ;;  %v2545_v17 = vpop.eup %2544 }
 0x777   :  { %v1750_v28 = vmul.f32 %v2545_v17, %v3255_v44  ;;  %v2547_v33 = vpop.eup %2546 }
 0x778   :  { %2548 = vtanh.f32 %v3302_v52 }
 0x779   :  { %v3306_v53 = vadd.f32 %v1752_v27, %v1750_v28  ;;  %2550 = vrcp.f32 %v1744_v12 }
 0x77b   :  { %2552 = vtanh.f32 %v3306_v53 }
 0x782   :  { %v2549_v4 = vpop.eup %2548 }
 0x783   :  { %v2551_v13 = vpop.eup %2550  ;;  %v1757_v38 = vmul.f32 %v2549_v4, %v2547_v33 }
 0x785   :  { %v2553_v51 = vpop.eup %2552 }
 0x786   :  { %v1758_v39 = vmul.f32 %v2553_v51, %v2551_v13 }
 0x788   :  { %v1759_v49 = vpack.c.bf16 %v1758_v39, %v1757_v38 }
 0x78a   :  { %2143 = vst [vmem:[%s3329_s4 + $0x30] sm:$0xff] %v1759_v49   ;;  %1814 = vmatmul.mubr.bf16.vlgmr.msra.gmra.mrb[28].mxu0 %v1759_v49  ;;  %1857 = vmatmul.mubr.bf16.vlgmr.msra.gmra.mrb[28].mxu1 %v1759_v49 }
 0x85d   :  { %v1815_v44 = vpop.f32.mrb[28].mxu0  ;;  %v1858_v54 = vpop.f32.mrb[28].mxu1 }
 0x85e   :  { %v2173_v55 = vadd.f32 %v1815_v44, %v2907_v8  ;;  %v1817_v56 = vpop.f32.mrb[29].mxu0  ;;  %v1860_v62 = vpop.f32.mrb[29].mxu1  ;;  %v2205_v29 = vadd.f32 %v1858_v54, %v2917_v61 }
 0x85f   :  { %v2174_v9 = vadd.f32 %v1817_v56, %v2909_v10  ;;  %v1819_v63 = vpop.f32.mrb[30].mxu0  ;;  %v1862_v0 = vpop.f32.mrb[30].mxu1  ;;  %v2206_v26 = vadd.f32 %v1860_v62, %v2914_v57 }
 0x860   :  { %v2072_v5 = vmul.f32 -1.442695, %v2173_v55  ;;  %v2175_v18 = vadd.f32 %v1819_v63, %v2907_v8  ;;  %v1821_v19 = vpop.f32.mrb[31].mxu0  ;;  %v1864_v20 = vpop.f32.mrb[31].mxu1  ;;  %v2207_v8 = vadd.f32 %v1862_v0, %v2917_v61 }
 0x861   :  { %v2074_v21 = vmul.f32 -1.442695, %v2174_v9  ;;  %v2176_v23 = vadd.f32 %v1821_v19, %v2909_v10  ;;  %v2076_v30 = vmul.f32 -1.442695, %v2206_v26  ;;  %v2208_v31 = vadd.f32 %v1864_v20, %v2914_v57 }
 0x862   :  { %2554 = vpow2.f32 %v2072_v5  ;;  %v2073_v24 = vmul.f32 -1.442695, %v2175_v18 }
 0x863   :  { %2556 = vpow2.f32 %v2074_v21  ;;  %v2075_v25 = vmul.f32 -1.442695, %v2176_v23  ;;  %v2077_v10 = vmul.f32 -1.442695, %v2208_v31 }
 0x864   :  { %2558 = vpow2.f32 %v2073_v24 }
 0x865   :  { %2560 = vpow2.f32 %v2075_v25 }
 0x866   :  { %2562 = vtanh.f32 %v2205_v29 }
 0x867   :  { %2564 = vpow2.f32 %v2076_v30 }
 0x868   :  { %2566 = vtanh.f32 %v2207_v8 }
 0x86c   :  { %v2555_v32 = vpop.eup %2554 }
 0x86d   :  { %v2557_v34 = vpop.eup %2556  ;;  %v1881_v16 = vadd.f32 1.0, %v2555_v32 }
 0x86e   :  { %v1893_v35 = vadd.f32 1.0, %v2557_v34  ;;  %v2559_v36 = vpop.eup %2558 }
 0x86f   :  { %2568 = vrcp.f32 %v1881_v16  ;;  %v1882_v37 = vadd.f32 1.0, %v2559_v36  ;;  %v2561_v40 = vpop.eup %2560 }
 0x870   :  { %2570 = vrcp.f32 %v1893_v35  ;;  %v1894_v41 = vadd.f32 1.0, %v2561_v40  ;;  %v2563_v57 = vpop.eup %2562 }
 0x871   :  { %2572 = vpow2.f32 %v2077_v10  ;;  %v2565_v42 = vpop.eup %2564 }
 0x872   :  { %2574 = vrcp.f32 %v1882_v37  ;;  %v2567_v61 = vpop.eup %2566  ;;  %v1907_v47 = vadd.f32 1.0, %v2565_v42 }
 0x873   :  { %2576 = vrcp.f32 %v1894_v41 }
 0x874   :  { %2578 = vrcp.f32 %v1907_v47 }
 0x879   :  { %v2569_v43 = vpop.eup %2568 }
 0x87a   :  { %v2571_v45 = vpop.eup %2570  ;;  %v1915_v46 = vmul.f32 %v2569_v43, %v2563_v57 }
 0x87b   :  { %v2573_v50 = vpop.eup %2572  ;;  %v1913_v58 = vmul.f32 %v2571_v45, %v3302_v52 }
 0x87c   :  { %v2575_v7 = vpop.eup %2574  ;;  %v1908_v2 = vadd.f32 1.0, %v2573_v50 }
 0x87d   :  { %v1917_v60 = vadd.f32 %v1915_v46, %v1913_v58  ;;  %v1916_v11 = vmul.f32 %v2575_v7, %v2567_v61  ;;  %v2577_v59 = vpop.eup %2576 }
 0x87e   :  { %v1914_v3 = vmul.f32 %v2577_v59, %v3306_v53  ;;  %v2579_v22 = vpop.eup %2578 }
 0x87f   :  { %2580 = vtanh.f32 %v1917_v60 }
 0x880   :  { %v1918_v15 = vadd.f32 %v1916_v11, %v1914_v3  ;;  %2582 = vrcp.f32 %v1908_v2 }
 0x882   :  { %2584 = vtanh.f32 %v1918_v15 }
 0x889   :  { %v2581_v6 = vpop.eup %2580 }
 0x88a   :  { %v1921_v14 = vmul.f32 %v2581_v6, %v2579_v22  ;;  %v2583_v48 = vpop.eup %2582 }
 0x88c   :  { %v2585_v1 = vpop.eup %2584 }
 0x88d   :  { %v1922_v27 = vmul.f32 %v2585_v1, %v2583_v48 }
 0x88f   :  { %v2136_v17 = vpack.c.bf16 %v1922_v27, %v1921_v14 }
 0x891   :  { %2144 = vst [vmem:[%s3329_s4 + $0x38] sm:$0xff] %v2136_v17  }
 0x892   :  { %1942 = vsyncpa [#allocation6], 1 }

</bundles_post_ra>
